<compile_context>
chip_gen: v7x
topology: tpu7x:2x2x1
jax: 0.10.0
libtpu: 0.0.40
codegen_flags: <defaults>
</compile_context>

<pallas_src>
import functools

import jax
import jax.numpy as jnp
from jax.experimental import pallas as pl
from jax.experimental.pallas import tpu as pltpu

EPS = 1e-5
VMEM_LIMIT = 32 * 1024 * 1024  # explicit, safe on v5e/v6e/v7x


def _round_up(x, m):
    return (x + m - 1) // m * m


def _pick_row_tile(m):
    """Largest row tile <= 1024 that divides m (prefer >= 2 grid steps)."""
    for t in (1024, 512, 256, 128, 64, 32, 16, 8):
        if m % t == 0 and m // t >= 2:
            return t
    return m


# ----------------------------------------------------------------------------
# Stage 1 / Stage 3: (optional folded-BN+relu on input) -> 1x1 conv (matmul)
#                    + per-tile partial (sum, sumsq) of the output channels.
# ----------------------------------------------------------------------------
def _conv1x1_stats_kernel(*refs, fuse_input_bn_relu):
    if fuse_input_bn_relu:
        x_ref, a_ref, b_ref, w_ref, z_ref, st_ref = refs
        x = jnp.maximum(x_ref[...] * a_ref[...] + b_ref[...], 0.0)
    else:
        x_ref, w_ref, z_ref, st_ref = refs
        x = x_ref[...]
    z = jnp.dot(x.astype(jnp.bfloat16), w_ref[...].astype(jnp.bfloat16),
                preferred_element_type=jnp.float32)
    z_ref[...] = z
    s1 = jnp.sum(z, axis=0, keepdims=True)          # (1, cout)
    s2 = jnp.sum(z * z, axis=0, keepdims=True)      # (1, cout)
    st_ref[0] = jnp.concatenate([s1, s2], axis=0)   # (2, cout)


def _conv1x1_stats(x, w, *, tm, in_affine=None):
    m, cin = x.shape
    cout = w.shape[1]
    nt = m // tm
    fuse = in_affine is not None
    kernel = functools.partial(_conv1x1_stats_kernel, fuse_input_bn_relu=fuse)

    in_arrays = [x]
    in_specs = [pl.BlockSpec((tm, cin), lambda i: (i, 0))]
    if fuse:
        a, b = in_affine
        in_arrays += [a, b]
        in_specs += [pl.BlockSpec((1, cin), lambda i: (0, 0)),
                     pl.BlockSpec((1, cin), lambda i: (0, 0))]
    in_arrays.append(w)
    in_specs.append(pl.BlockSpec((cin, cout), lambda i: (0, 0)))

    z, st = pl.pallas_call(
        kernel,
        grid=(nt,),
        in_specs=in_specs,
        out_specs=(pl.BlockSpec((tm, cout), lambda i: (i, 0)),
                   pl.BlockSpec((1, 2, cout), lambda i: (i, 0, 0))),
        out_shape=(jax.ShapeDtypeStruct((m, cout), jnp.float32),
                   jax.ShapeDtypeStruct((nt, 2, cout), jnp.float32)),
        compiler_params=pltpu.CompilerParams(
            dimension_semantics=("parallel",),
            vmem_limit_bytes=VMEM_LIMIT),
    )(*in_arrays)
    return z, st


# ----------------------------------------------------------------------------
# Stage 2: folded-BN1+relu -> 3x3 conv (padding=1) + per-image partial stats.
# One image per grid step; 9 taps = contiguous row slices of a flat padded
# VMEM buffer of row width Wp (multiple of 8).
# ----------------------------------------------------------------------------
def _conv3x3_stats_kernel(z1_ref, a_ref, b_ref, w2_ref, z2_ref, st_ref, pad_ref,
                          *, H, W, Wp, CH):
    f1 = z1_ref.shape[-1]
    f2 = w2_ref.shape[-1]

    # bn1 (folded affine) + relu on this image: (H, W, f1)
    a = a_ref[...].reshape(1, 1, f1)
    b = b_ref[...].reshape(1, 1, f1)
    y = jnp.maximum(z1_ref[0] * a + b, 0.0)

    # Build the padded image and write it with 3 aligned stores:
    #   rows [0, 2*Wp)           : zero top halo
    #   rows [2*Wp, (H+2)*Wp)    : data rows, each right-padded to Wp columns
    #   rows [(H+2)*Wp, (H+4)*Wp): zero bottom halo (+ slack for the taps)
    body = jnp.concatenate(
        [y, jnp.zeros((H, Wp - W, f1), jnp.float32)], axis=1)  # (H, Wp, f1)
    pad_ref[0:2 * Wp, :] = jnp.zeros((2 * Wp, f1), jnp.float32)
    pad_ref[2 * Wp:(H + 2) * Wp, :] = body.reshape(H * Wp, f1)
    pad_ref[(H + 2) * Wp:(H + 4) * Wp, :] = jnp.zeros((2 * Wp, f1), jnp.float32)

    w2 = w2_ref[...].astype(jnp.bfloat16)  # (9, f1, f2)

    s_sum = jnp.zeros((1, f2), jnp.float32)
    s_sq = jnp.zeros((1, f2), jnp.float32)

    n_chunks = -(-H // CH)
    for c in range(n_chunks):                 # static, bounds vreg live ranges
        h0 = c * CH
        ch = min(CH, H - h0)
        L = ch * Wp
        qs = (h0 + 1) * Wp - 1                # flat index of output (h0, 0)
        acc = jnp.zeros((L, f2), jnp.float32)
        for kh in range(3):
            for kw in range(3):
                off = qs + kh * Wp + kw
                lhs = pad_ref[off:off + L, :].astype(jnp.bfloat16)
                acc = acc + jnp.dot(lhs, w2[kh * 3 + kw],
                                    preferred_element_type=jnp.float32)
        # Valid output columns are 0..W-1; columns W..Wp-1 are discarded.
        valid = acc.reshape(ch, Wp, f2)[:, :W, :]          # (ch, W, f2)
        z2_ref[0, h0:h0 + ch] = valid.astype(z2_ref.dtype)
        s_sum = s_sum + jnp.sum(valid, axis=(0, 1), keepdims=True).reshape(1, f2)
        s_sq = s_sq + jnp.sum(valid * valid, axis=(0, 1),
                              keepdims=True).reshape(1, f2)

    st_ref[0] = jnp.concatenate([s_sum, s_sq], axis=0)      # (2, f2)


def _conv3x3_stats(z1_img, scale1, shift1, w2_hwio):
    B, H, W, f1 = z1_img.shape
    f2 = w2_hwio.shape[-1]
    Wp = _round_up(W + 2, 8)
    CH = H if H <= 8 else 8
    w2 = w2_hwio.reshape(9, f1, f2)

    kernel = functools.partial(_conv3x3_stats_kernel, H=H, W=W, Wp=Wp, CH=CH)
    z2, st = pl.pallas_call(
        kernel,
        grid=(B,),
        in_specs=[pl.BlockSpec((1, H, W, f1), lambda b: (b, 0, 0, 0)),
                  pl.BlockSpec((1, f1), lambda b: (0, 0)),
                  pl.BlockSpec((1, f1), lambda b: (0, 0)),
                  pl.BlockSpec((9, f1, f2), lambda b: (0, 0, 0))],
        out_specs=(pl.BlockSpec((1, H, W, f2), lambda b: (b, 0, 0, 0)),
                   pl.BlockSpec((1, 2, f2), lambda b: (b, 0, 0))),
        out_shape=(jax.ShapeDtypeStruct((B, H, W, f2), jnp.float32),
                   jax.ShapeDtypeStruct((B, 2, f2), jnp.float32)),
        scratch_shapes=[pltpu.VMEM(((H + 4) * Wp, f1), jnp.float32)],
        compiler_params=pltpu.CompilerParams(
            dimension_semantics=("parallel",),
            vmem_limit_bytes=VMEM_LIMIT),
    )(z1_img, scale1, shift1, w2)
    return z2, st


# ----------------------------------------------------------------------------
# Stage 4: folded-BN3 + residual add + relu (elementwise).
# ----------------------------------------------------------------------------
def _residual_kernel(z3_ref, x_ref, a_ref, b_ref, o_ref):
    o_ref[...] = jnp.maximum(
        z3_ref[...] * a_ref[...] + b_ref[...] + x_ref[...], 0.0
    ).astype(o_ref.dtype)


def _residual(z3, x_flat, scale3, shift3, *, tm, out_dtype):
    m, f3 = z3.shape
    nt = m // tm
    return pl.pallas_call(
        _residual_kernel,
        grid=(nt,),
        in_specs=[pl.BlockSpec((tm, f3), lambda i: (i, 0)),
                  pl.BlockSpec((tm, f3), lambda i: (i, 0)),
                  pl.BlockSpec((1, f3), lambda i: (0, 0)),
                  pl.BlockSpec((1, f3), lambda i: (0, 0))],
        out_specs=pl.BlockSpec((tm, f3), lambda i: (i, 0)),
        out_shape=jax.ShapeDtypeStruct((m, f3), out_dtype),
        compiler_params=pltpu.CompilerParams(
            dimension_semantics=("parallel",),
            vmem_limit_bytes=VMEM_LIMIT),
    )(z3, x_flat, scale3, shift3)


# ----------------------------------------------------------------------------
# BN fold (tiny XLA glue between pallas calls): partials -> (scale, shift).
# ----------------------------------------------------------------------------
def _fold_bn(st_partials, count, gamma, beta):
    s = jnp.sum(st_partials, axis=0)                      # (2, F)
    mu = s[0] / count
    var = jnp.maximum(s[1] / count - mu * mu, 0.0)        # biased var (torch)
    scale = gamma * jax.lax.rsqrt(var + EPS)              # (1, F)
    shift = beta - mu * scale                             # (1, F)
    return scale, shift


# ----------------------------------------------------------------------------
# Block forward.
# ----------------------------------------------------------------------------
def identity_block_nhwc(x_nhwc, params):
    (w1, g1, be1, w2, g2, be2, w3, g3, be3) = params
    B, H, W, C = x_nhwc.shape
    f1 = w1.shape[1]
    f2 = w2.shape[3]
    f3 = w3.shape[1]
    assert f3 == C, "identity block requires filter3 == in_channels"

    M = B * H * W
    tm = _pick_row_tile(M)
    x_flat = x_nhwc.reshape(M, C).astype(jnp.float32)

    # conv1 (1x1) + BN1 batch stats
    z1, st1 = _conv1x1_stats(x_flat, w1, tm=tm)
    scale1, shift1 = _fold_bn(st1, M, g1, be1)

    # bn1+relu fused into conv2 (3x3, pad=1) + BN2 batch stats
    z1_img = z1.reshape(B, H, W, f1)
    z2_img, st2 = _conv3x3_stats(z1_img, scale1, shift1, w2)
    scale2, shift2 = _fold_bn(st2, M, g2, be2)

    # bn2+relu fused into conv3 (1x1) + BN3 batch stats
    z2_flat = z2_img.reshape(M, f2)
    z3, st3 = _conv1x1_stats(z2_flat, w3, tm=tm, in_affine=(scale2, shift2))
    scale3, shift3 = _fold_bn(st3, M, g3, be3)

    # bn3 + residual + relu
    out_flat = _residual(z3, x_flat, scale3, shift3, tm=tm,
                         out_dtype=x_nhwc.dtype)
    return out_flat.reshape(B, H, W, f3)


def identity_block_nchw(x_nchw, params):
    """PyTorch-facing entry point: NCHW in, NCHW out.

    Prefer identity_block_nhwc to avoid the two HBM transposes if the model
    can stay channels-last.
    """
    x_nhwc = jnp.transpose(x_nchw, (0, 2, 3, 1))
    y = identity_block_nhwc(x_nhwc, params)
    return jnp.transpose(y, (0, 3, 1, 2))


# ----------------------------------------------------------------------------
# Parameters & reference.
# ----------------------------------------------------------------------------
def init_params(key, in_channels, filters):
    """Synthetic parameters in kernel-friendly layouts.

      w1: (C, f1)         (torch (f1, C, 1, 1))
      w2: (3, 3, f1, f2)  HWIO (torch (f2, f1, 3, 3))
      w3: (f2, f3)        (torch (f3, f2, 1, 1))
      BN gamma/beta: (1, F)
    """
    f1, f2, f3 = filters
    ks = jax.random.split(key, 9)
    w1 = jax.random.normal(ks[0], (in_channels, f1), jnp.float32) * 0.1
    w2 = jax.random.normal(ks[1], (3, 3, f1, f2), jnp.float32) * 0.1
    w3 = jax.random.normal(ks[2], (f2, f3), jnp.float32) * 0.1
    g1 = 1.0 + 0.1 * jax.random.normal(ks[3], (1, f1), jnp.float32)
    b1 = 0.1 * jax.random.normal(ks[4], (1, f1), jnp.float32)
    g2 = 1.0 + 0.1 * jax.random.normal(ks[5], (1, f2), jnp.float32)
    b2 = 0.1 * jax.random.normal(ks[6], (1, f2), jnp.float32)
    g3 = 1.0 + 0.1 * jax.random.normal(ks[7], (1, f3), jnp.float32)
    b3 = 0.1 * jax.random.normal(ks[8], (1, f3), jnp.float32)
    return (w1, g1, b1, w2, g2, b2, w3, g3, b3)


def _reference_nhwc(x, params):
    """Pure-JAX reference mirroring the kernel's bf16-matmul / fp32-BN numerics."""
    (w1, g1, b1, w2, g2, b2, w3, g3, b3) = params
    hi = jax.lax.Precision.HIGHEST

    def bf(v):
        return v.astype(jnp.bfloat16).astype(jnp.float32)

    def bn(z, g, b, relu):
        mu = z.mean(axis=(0, 1, 2), keepdims=True)
        var = ((z - mu) ** 2).mean(axis=(0, 1, 2), keepdims=True)
        y = (z - mu) * jax.lax.rsqrt(var + EPS) * g.reshape(1, 1, 1, -1) \
            + b.reshape(1, 1, 1, -1)
        return jnp.maximum(y, 0.0) if relu else y

    y = jnp.einsum('bhwc,cf->bhwf', bf(x), bf(w1),
                   preferred_element_type=jnp.float32, precision=hi)
    y = bn(y, g1, b1, relu=True)
    y = jax.lax.conv_general_dilated(
        bf(y), bf(w2), window_strides=(1, 1), padding='SAME',
        dimension_numbers=('NHWC', 'HWIO', 'NHWC'),
        preferred_element_type=jnp.float32, precision=hi)
    y = bn(y, g2, b2, relu=True)
    y = jnp.einsum('bhwc,cf->bhwf', bf(y), bf(w3),
                   preferred_element_type=jnp.float32, precision=hi)
    y = bn(y, g3, b3, relu=False)
    return jnp.maximum(y + x, 0.0)


if __name__ == "__main__":
    # Small shapes consistent with the module (filter3 == in_channels so the
    # residual add type-checks). Real ResNet channels (256/64/64/256) are
    # lane-dense; these demo channels are intentionally tiny.
    B, C, H, W = 2, 16, 16, 16
    filters = (8, 8, 16)

    key = jax.random.PRNGKey(0)
    k_x, k_p = jax.random.split(key)
    x_nchw = jax.random.normal(k_x, (B, C, H, W), jnp.float32)
    params = init_params(k_p, C, filters)

    fwd = jax.jit(identity_block_nchw)
    out = jax.block_until_ready(fwd(x_nchw, params))

    ref = _reference_nhwc(jnp.transpose(x_nchw, (0, 2, 3, 1)), params)
    ref = jnp.transpose(ref, (0, 3, 1, 2))

    assert out.shape == (B, C, H, W)
    max_err = float(jnp.max(jnp.abs(out - ref)))
    assert jnp.allclose(out, ref, atol=2e-3, rtol=2e-3), max_err

    print("KERNEL_OK")
</pallas_src>

<mosaic_0001>
module attributes {stable_mosaic.version = 11 : i64} {
  func.func @_conv1x1_stats_kernel(%arg0: i32, %arg1: memref<256x16xf32, #tpu.memory_space<vmem>>, %arg2: memref<16x8xf32, #tpu.memory_space<vmem>>, %arg3: memref<256x8xf32, #tpu.memory_space<vmem>>, %arg4: memref<1x2x8xf32, #tpu.memory_space<vmem>>) attributes {dimension_semantics = [#tpu.dimension_semantics<parallel>], iteration_bounds = array<i64: 2>, scalar_prefetch = 0 : i64, scratch_operands = 0 : i64, tpu.core_type = #tpu.core_type<tc>, window_params = [{transform_indices = @transform_0, window_bounds = array<i64: 256, 16>}, {pipeline_mode = #tpu.pipeline_mode<synchronous>, transform_indices = @transform_1, window_bounds = array<i64: 16, 8>}, {transform_indices = @transform_2, window_bounds = array<i64: 256, 8>}, {transform_indices = @transform_3, window_bounds = array<i64: 1, 2, 8>}]} {
    %c0 = arith.constant 0 : index
    %c0_0 = arith.constant 0 : index
    %0 = vector.load %arg1[%c0, %c0_0] : memref<256x16xf32, #tpu.memory_space<vmem>>, vector<256x16xf32>
    %1 = arith.truncf %0 : vector<256x16xf32> to vector<256x16xbf16>
    %c0_1 = arith.constant 0 : index
    %c0_2 = arith.constant 0 : index
    %2 = vector.load %arg2[%c0_1, %c0_2] : memref<16x8xf32, #tpu.memory_space<vmem>>, vector<16x8xf32>
    %3 = arith.truncf %2 : vector<16x8xf32> to vector<16x8xbf16>
    %cst = arith.constant dense<0.000000e+00> : vector<256x8xf32>
    %4 = tpu.matmul %1, %3, %cst {dimension_numbers = #tpu.dot_dimension_numbers<[1], [0], [0], [1], [0, 0, 1, 1], [], []>} : vector<256x16xbf16>, vector<16x8xbf16>, vector<256x8xf32> -> vector<256x8xf32>
    %c0_3 = arith.constant 0 : index
    %c0_4 = arith.constant 0 : index
    %5 = vector.load %arg3[%c0_3, %c0_4] : memref<256x8xf32, #tpu.memory_space<vmem>>, vector<256x8xf32>
    tpu.vector_store %arg3[%c0_3, %c0_4], %4 {strides = array<i32>} : memref<256x8xf32, #tpu.memory_space<vmem>>, vector<256x8xf32>,
    %cst_5 = arith.constant dense<0.000000e+00> : vector<8xf32>
    %6 = vector.multi_reduction <add>, %4, %cst_5 [0] : vector<256x8xf32> to vector<8xf32>
    %7 = vector.shape_cast %6 : vector<8xf32> to vector<1x8xf32>
    %8 = arith.mulf %4, %4 : vector<256x8xf32>
    %cst_6 = arith.constant dense<0.000000e+00> : vector<8xf32>
    %9 = vector.multi_reduction <add>, %8, %cst_6 [0] : vector<256x8xf32> to vector<8xf32>
    %10 = vector.shape_cast %9 : vector<8xf32> to vector<1x8xf32>
    %11 = tpu.concatenate %7, %10 in 0 : vector<1x8xf32>, vector<1x8xf32> -> vector<2x8xf32>
    %c0_7 = arith.constant 0 : index
    %c0_8 = arith.constant 0 : index
    %c0_9 = arith.constant 0 : index
    %12 = vector.load %arg4[%c0_7, %c0_8, %c0_9] : memref<1x2x8xf32, #tpu.memory_space<vmem>>, vector<1x2x8xf32>
    %13 = vector.shape_cast %12 : vector<1x2x8xf32> to vector<2x8xf32>
    %14 = vector.shape_cast %11 : vector<2x8xf32> to vector<1x2x8xf32>
    tpu.vector_store %arg4[%c0_7, %c0_8, %c0_9], %14 {strides = array<i32>} : memref<1x2x8xf32, #tpu.memory_space<vmem>>, vector<1x2x8xf32>,
    return
  }
  func.func @transform_0(%arg0: i32) -> (i32, i32) {
    %c0_i32 = arith.constant 0 : i32
    %c0_i32_0 = arith.constant 0 : i32
    return %arg0, %c0_i32 : i32, i32
  }
  func.func @transform_1(%arg0: i32) -> (i32, i32) {
    %c0_i32 = arith.constant 0 : i32
    %c0_i32_0 = arith.constant 0 : i32
    %c0_i32_1 = arith.constant 0 : i32
    return %c0_i32, %c0_i32_0 : i32, i32
  }
  func.func @transform_2(%arg0: i32) -> (i32, i32) {
    %c0_i32 = arith.constant 0 : i32
    %c0_i32_0 = arith.constant 0 : i32
    return %arg0, %c0_i32 : i32, i32
  }
  func.func @transform_3(%arg0: i32) -> (i32, i32, i32) {
    %c0_i32 = arith.constant 0 : i32
    %c0_i32_0 = arith.constant 0 : i32
    %c0_i32_1 = arith.constant 0 : i32
    return %arg0, %c0_i32, %c0_i32_0 : i32, i32, i32
  }
}

module attributes {stable_mosaic.version = 11 : i64} {
  func.func @_conv3x3_stats_kernel(%arg0: i32, %arg1: memref<1x16x16x8xf32, #tpu.memory_space<vmem>>, %arg2: memref<1x8xf32, #tpu.memory_space<vmem>>, %arg3: memref<1x8xf32, #tpu.memory_space<vmem>>, %arg4: memref<9x8x8xf32, #tpu.memory_space<vmem>>, %arg5: memref<1x16x16x8xf32, #tpu.memory_space<vmem>>, %arg6: memref<1x2x8xf32, #tpu.memory_space<vmem>>, %arg7: memref<480x8xf32, #tpu.memory_space<vmem>>) attributes {dimension_semantics = [#tpu.dimension_semantics<parallel>], iteration_bounds = array<i64: 2>, scalar_prefetch = 0 : i64, scratch_operands = 1 : i64, tpu.core_type = #tpu.core_type<tc>, window_params = [{transform_indices = @transform_0, window_bounds = array<i64: 1, 16, 16, 8>}, {pipeline_mode = #tpu.pipeline_mode<synchronous>, transform_indices = @transform_1, window_bounds = array<i64: 1, 8>}, {pipeline_mode = #tpu.pipeline_mode<synchronous>, transform_indices = @transform_2, window_bounds = array<i64: 1, 8>}, {pipeline_mode = #tpu.pipeline_mode<synchronous>, transform_indices = @transform_3, window_bounds = array<i64: 9, 8, 8>}, {transform_indices = @transform_4, window_bounds = array<i64: 1, 16, 16, 8>}, {transform_indices = @transform_5, window_bounds = array<i64: 1, 2, 8>}]} {
    %c0 = arith.constant 0 : index
    %c0_0 = arith.constant 0 : index
    %0 = vector.load %arg2[%c0, %c0_0] : memref<1x8xf32, #tpu.memory_space<vmem>>, vector<1x8xf32>
    %1 = vector.shape_cast %0 : vector<1x8xf32> to vector<1x1x8xf32>
    %c0_1 = arith.constant 0 : index
    %c0_2 = arith.constant 0 : index
    %2 = vector.load %arg3[%c0_1, %c0_2] : memref<1x8xf32, #tpu.memory_space<vmem>>, vector<1x8xf32>
    %3 = vector.shape_cast %2 : vector<1x8xf32> to vector<1x1x8xf32>
    %c0_3 = arith.constant 0 : index
    %c0_4 = arith.constant 0 : index
    %c0_5 = arith.constant 0 : index
    %c0_6 = arith.constant 0 : index
    %4 = vector.load %arg1[%c0_3, %c0_4, %c0_5, %c0_6] : memref<1x16x16x8xf32, #tpu.memory_space<vmem>>, vector<1x16x16x8xf32>
    %5 = vector.shape_cast %4 : vector<1x16x16x8xf32> to vector<16x16x8xf32>
    %6 = vector.broadcast %1 : vector<1x1x8xf32> to vector<16x16x8xf32>
    %7 = arith.mulf %5, %6 : vector<16x16x8xf32>
    %8 = vector.broadcast %3 : vector<1x1x8xf32> to vector<16x16x8xf32>
    %9 = arith.addf %7, %8 : vector<16x16x8xf32>
    %cst = arith.constant 0.000000e+00 : f32
    %10 = vector.broadcast %cst : f32 to vector<16x16x8xf32>
    %11 = arith.maximumf %9, %10 : vector<16x16x8xf32>
    %cst_7 = arith.constant 0.000000e+00 : f32
    %12 = vector.broadcast %cst_7 : f32 to vector<16x8x8xf32>
    %13 = tpu.concatenate %11, %12 in 1 : vector<16x16x8xf32>, vector<16x8x8xf32> -> vector<16x24x8xf32>
    %cst_8 = arith.constant 0.000000e+00 : f32
    %14 = vector.broadcast %cst_8 : f32 to vector<48x8xf32>
    %c0_9 = arith.constant 0 : index
    %c0_10 = arith.constant 0 : index
    %15 = vector.load %arg7[%c0_9, %c0_10] : memref<480x8xf32, #tpu.memory_space<vmem>>, vector<48x8xf32>
    tpu.vector_store %arg7[%c0_9, %c0_10], %14 {strides = array<i32>} : memref<480x8xf32, #tpu.memory_space<vmem>>, vector<48x8xf32>,
    %16 = vector.shape_cast %13 : vector<16x24x8xf32> to vector<384x8xf32>
    %c48 = arith.constant 48 : index
    %c0_11 = arith.constant 0 : index
    %17 = vector.load %arg7[%c48, %c0_11] : memref<480x8xf32, #tpu.memory_space<vmem>>, vector<384x8xf32>
    tpu.vector_store %arg7[%c48, %c0_11], %16 {strides = array<i32>} : memref<480x8xf32, #tpu.memory_space<vmem>>, vector<384x8xf32>,
    %cst_12 = arith.constant 0.000000e+00 : f32
    %18 = vector.broadcast %cst_12 : f32 to vector<48x8xf32>
    %c432 = arith.constant 432 : index
    %c0_13 = arith.constant 0 : index
    %19 = vector.load %arg7[%c432, %c0_13] : memref<480x8xf32, #tpu.memory_space<vmem>>, vector<48x8xf32>
    tpu.vector_store %arg7[%c432, %c0_13], %18 {strides = array<i32>} : memref<480x8xf32, #tpu.memory_space<vmem>>, vector<48x8xf32>,
    %c0_14 = arith.constant 0 : index
    %c0_15 = arith.constant 0 : index
    %c0_16 = arith.constant 0 : index
    %20 = vector.load %arg4[%c0_14, %c0_15, %c0_16] : memref<9x8x8xf32, #tpu.memory_space<vmem>>, vector<9x8x8xf32>
    %21 = arith.truncf %20 : vector<9x8x8xf32> to vector<9x8x8xbf16>
    %cst_17 = arith.constant 0.000000e+00 : f32
    %22 = vector.broadcast %cst_17 : f32 to vector<1x8xf32>
    %cst_18 = arith.constant 0.000000e+00 : f32
    %23 = vector.broadcast %cst_18 : f32 to vector<1x8xf32>
    %cst_19 = arith.constant 0.000000e+00 : f32
    %24 = vector.broadcast %cst_19 : f32 to vector<192x8xf32>
    %c23 = arith.constant 23 : index
    %c0_20 = arith.constant 0 : index
    %25 = vector.load %arg7[%c23, %c0_20] : memref<480x8xf32, #tpu.memory_space<vmem>>, vector<192x8xf32>
    %26 = arith.truncf %25 : vector<192x8xf32> to vector<192x8xbf16>
    %27 = vector.extract_strided_slice %21 {offsets = [0, 0, 0], sizes = [1, 8, 8], strides = [1, 1, 1]} : vector<9x8x8xbf16> to vector<1x8x8xbf16>
    %28 = vector.shape_cast %27 : vector<1x8x8xbf16> to vector<8x8xbf16>
    %cst_21 = arith.constant dense<0.000000e+00> : vector<192x8xf32>
    %29 = tpu.matmul %26, %28, %cst_21 {dimension_numbers = #tpu.dot_dimension_numbers<[1], [0], [0], [1], [0, 0, 1, 1], [], []>} : vector<192x8xbf16>, vector<8x8xbf16>, vector<192x8xf32> -> vector<192x8xf32>
    %30 = arith.addf %24, %29 : vector<192x8xf32>
    %c24 = arith.constant 24 : index
    %c0_22 = arith.constant 0 : index
    %31 = vector.load %arg7[%c24, %c0_22] : memref<480x8xf32, #tpu.memory_space<vmem>>, vector<192x8xf32>
    %32 = arith.truncf %31 : vector<192x8xf32> to vector<192x8xbf16>
    %33 = vector.extract_strided_slice %21 {offsets = [1, 0, 0], sizes = [1, 8, 8], strides = [1, 1, 1]} : vector<9x8x8xbf16> to vector<1x8x8xbf16>
    %34 = vector.shape_cast %33 : vector<1x8x8xbf16> to vector<8x8xbf16>
    %cst_23 = arith.constant dense<0.000000e+00> : vector<192x8xf32>
    %35 = tpu.matmul %32, %34, %cst_23 {dimension_numbers = #tpu.dot_dimension_numbers<[1], [0], [0], [1], [0, 0, 1, 1], [], []>} : vector<192x8xbf16>, vector<8x8xbf16>, vector<192x8xf32> -> vector<192x8xf32>
    %36 = arith.addf %30, %35 : vector<192x8xf32>
    %c25 = arith.constant 25 : index
    %c0_24 = arith.constant 0 : index
    %37 = vector.load %arg7[%c25, %c0_24] : memref<480x8xf32, #tpu.memory_space<vmem>>, vector<192x8xf32>
    %38 = arith.truncf %37 : vector<192x8xf32> to vector<192x8xbf16>
    %39 = vector.extract_strided_slice %21 {offsets = [2, 0, 0], sizes = [1, 8, 8], strides = [1, 1, 1]} : vector<9x8x8xbf16> to vector<1x8x8xbf16>
    %40 = vector.shape_cast %39 : vector<1x8x8xbf16> to vector<8x8xbf16>
    %cst_25 = arith.constant dense<0.000000e+00> : vector<192x8xf32>
    %41 = tpu.matmul %38, %40, %cst_25 {dimension_numbers = #tpu.dot_dimension_numbers<[1], [0], [0], [1], [0, 0, 1, 1], [], []>} : vector<192x8xbf16>, vector<8x8xbf16>, vector<192x8xf32> -> vector<192x8xf32>
    %42 = arith.addf %36, %41 : vector<192x8xf32>
    %c47 = arith.constant 47 : index
    %c0_26 = arith.constant 0 : index
    %43 = vector.load %arg7[%c47, %c0_26] : memref<480x8xf32, #tpu.memory_space<vmem>>, vector<192x8xf32>
    %44 = arith.truncf %43 : vector<192x8xf32> to vector<192x8xbf16>
    %45 = vector.extract_strided_slice %21 {offsets = [3, 0, 0], sizes = [1, 8, 8], strides = [1, 1, 1]} : vector<9x8x8xbf16> to vector<1x8x8xbf16>
    %46 = vector.shape_cast %45 : vector<1x8x8xbf16> to vector<8x8xbf16>
    %cst_27 = arith.constant dense<0.000000e+00> : vector<192x8xf32>
    %47 = tpu.matmul %44, %46, %cst_27 {dimension_numbers = #tpu.dot_dimension_numbers<[1], [0], [0], [1], [0, 0, 1, 1], [], []>} : vector<192x8xbf16>, vector<8x8xbf16>, vector<192x8xf32> -> vector<192x8xf32>
    %48 = arith.addf %42, %47 : vector<192x8xf32>
    %c48_28 = arith.constant 48 : index
    %c0_29 = arith.constant 0 : index
    %49 = vector.load %arg7[%c48_28, %c0_29] : memref<480x8xf32, #tpu.memory_space<vmem>>, vector<192x8xf32>
    %50 = arith.truncf %49 : vector<192x8xf32> to vector<192x8xbf16>
    %51 = vector.extract_strided_slice %21 {offsets = [4, 0, 0], sizes = [1, 8, 8], strides = [1, 1, 1]} : vector<9x8x8xbf16> to vector<1x8x8xbf16>
    %52 = vector.shape_cast %51 : vector<1x8x8xbf16> to vector<8x8xbf16>
    %cst_30 = arith.constant dense<0.000000e+00> : vector<192x8xf32>
    %53 = tpu.matmul %50, %52, %cst_30 {dimension_numbers = #tpu.dot_dimension_numbers<[1], [0], [0], [1], [0, 0, 1, 1], [], []>} : vector<192x8xbf16>, vector<8x8xbf16>, vector<192x8xf32> -> vector<192x8xf32>
    %54 = arith.addf %48, %53 : vector<192x8xf32>
    %c49 = arith.constant 49 : index
    %c0_31 = arith.constant 0 : index
    %55 = vector.load %arg7[%c49, %c0_31] : memref<480x8xf32, #tpu.memory_space<vmem>>, vector<192x8xf32>
    %56 = arith.truncf %55 : vector<192x8xf32> to vector<192x8xbf16>
    %57 = vector.extract_strided_slice %21 {offsets = [5, 0, 0], sizes = [1, 8, 8], strides = [1, 1, 1]} : vector<9x8x8xbf16> to vector<1x8x8xbf16>
    %58 = vector.shape_cast %57 : vector<1x8x8xbf16> to vector<8x8xbf16>
    %cst_32 = arith.constant dense<0.000000e+00> : vector<192x8xf32>
    %59 = tpu.matmul %56, %58, %cst_32 {dimension_numbers = #tpu.dot_dimension_numbers<[1], [0], [0], [1], [0, 0, 1, 1], [], []>} : vector<192x8xbf16>, vector<8x8xbf16>, vector<192x8xf32> -> vector<192x8xf32>
    %60 = arith.addf %54, %59 : vector<192x8xf32>
    %c71 = arith.constant 71 : index
    %c0_33 = arith.constant 0 : index
    %61 = vector.load %arg7[%c71, %c0_33] : memref<480x8xf32, #tpu.memory_space<vmem>>, vector<192x8xf32>
    %62 = arith.truncf %61 : vector<192x8xf32> to vector<192x8xbf16>
    %63 = vector.extract_strided_slice %21 {offsets = [6, 0, 0], sizes = [1, 8, 8], strides = [1, 1, 1]} : vector<9x8x8xbf16> to vector<1x8x8xbf16>
    %64 = vector.shape_cast %63 : vector<1x8x8xbf16> to vector<8x8xbf16>
    %cst_34 = arith.constant dense<0.000000e+00> : vector<192x8xf32>
    %65 = tpu.matmul %62, %64, %cst_34 {dimension_numbers = #tpu.dot_dimension_numbers<[1], [0], [0], [1], [0, 0, 1, 1], [], []>} : vector<192x8xbf16>, vector<8x8xbf16>, vector<192x8xf32> -> vector<192x8xf32>
    %66 = arith.addf %60, %65 : vector<192x8xf32>
    %c72 = arith.constant 72 : index
    %c0_35 = arith.constant 0 : index
    %67 = vector.load %arg7[%c72, %c0_35] : memref<480x8xf32, #tpu.memory_space<vmem>>, vector<192x8xf32>
    %68 = arith.truncf %67 : vector<192x8xf32> to vector<192x8xbf16>
    %69 = vector.extract_strided_slice %21 {offsets = [7, 0, 0], sizes = [1, 8, 8], strides = [1, 1, 1]} : vector<9x8x8xbf16> to vector<1x8x8xbf16>
    %70 = vector.shape_cast %69 : vector<1x8x8xbf16> to vector<8x8xbf16>
    %cst_36 = arith.constant dense<0.000000e+00> : vector<192x8xf32>
    %71 = tpu.matmul %68, %70, %cst_36 {dimension_numbers = #tpu.dot_dimension_numbers<[1], [0], [0], [1], [0, 0, 1, 1], [], []>} : vector<192x8xbf16>, vector<8x8xbf16>, vector<192x8xf32> -> vector<192x8xf32>
    %72 = arith.addf %66, %71 : vector<192x8xf32>
    %c73 = arith.constant 73 : index
    %c0_37 = arith.constant 0 : index
    %73 = vector.load %arg7[%c73, %c0_37] : memref<480x8xf32, #tpu.memory_space<vmem>>, vector<192x8xf32>
    %74 = arith.truncf %73 : vector<192x8xf32> to vector<192x8xbf16>
    %75 = vector.extract_strided_slice %21 {offsets = [8, 0, 0], sizes = [1, 8, 8], strides = [1, 1, 1]} : vector<9x8x8xbf16> to vector<1x8x8xbf16>
    %76 = vector.shape_cast %75 : vector<1x8x8xbf16> to vector<8x8xbf16>
    %cst_38 = arith.constant dense<0.000000e+00> : vector<192x8xf32>
    %77 = tpu.matmul %74, %76, %cst_38 {dimension_numbers = #tpu.dot_dimension_numbers<[1], [0], [0], [1], [0, 0, 1, 1], [], []>} : vector<192x8xbf16>, vector<8x8xbf16>, vector<192x8xf32> -> vector<192x8xf32>
    %78 = arith.addf %72, %77 : vector<192x8xf32>
    %79 = vector.shape_cast %78 : vector<192x8xf32> to vector<8x24x8xf32>
    %80 = vector.extract_strided_slice %79 {offsets = [0, 0, 0], sizes = [8, 16, 8], strides = [1, 1, 1]} : vector<8x24x8xf32> to vector<8x16x8xf32>
    %c0_39 = arith.constant 0 : index
    %c0_40 = arith.constant 0 : index
    %c0_41 = arith.constant 0 : index
    %c0_42 = arith.constant 0 : index
    %81 = vector.load %arg5[%c0_39, %c0_40, %c0_41, %c0_42] : memref<1x16x16x8xf32, #tpu.memory_space<vmem>>, vector<1x8x16x8xf32>
    %82 = vector.shape_cast %81 : vector<1x8x16x8xf32> to vector<8x16x8xf32>
    %83 = vector.shape_cast %80 : vector<8x16x8xf32> to vector<1x8x16x8xf32>
    tpu.vector_store %arg5[%c0_39, %c0_40, %c0_41, %c0_42], %83 {strides = array<i32>} : memref<1x16x16x8xf32, #tpu.memory_space<vmem>>, vector<1x8x16x8xf32>,
    %cst_43 = arith.constant dense<0.000000e+00> : vector<8xf32>
    %84 = vector.multi_reduction <add>, %80, %cst_43 [0, 1] : vector<8x16x8xf32> to vector<8xf32>
    %85 = vector.shape_cast %84 : vector<8xf32> to vector<1x1x8xf32>
    %86 = vector.shape_cast %85 : vector<1x1x8xf32> to vector<1x8xf32>
    %87 = arith.addf %22, %86 : vector<1x8xf32>
    %88 = arith.mulf %80, %80 : vector<8x16x8xf32>
    %cst_44 = arith.constant dense<0.000000e+00> : vector<8xf32>
    %89 = vector.multi_reduction <add>, %88, %cst_44 [0, 1] : vector<8x16x8xf32> to vector<8xf32>
    %90 = vector.shape_cast %89 : vector<8xf32> to vector<1x1x8xf32>
    %91 = vector.shape_cast %90 : vector<1x1x8xf32> to vector<1x8xf32>
    %92 = arith.addf %23, %91 : vector<1x8xf32>
    %cst_45 = arith.constant 0.000000e+00 : f32
    %93 = vector.broadcast %cst_45 : f32 to vector<192x8xf32>
    %c215 = arith.constant 215 : index
    %c0_46 = arith.constant 0 : index
    %94 = vector.load %arg7[%c215, %c0_46] : memref<480x8xf32, #tpu.memory_space<vmem>>, vector<192x8xf32>
    %95 = arith.truncf %94 : vector<192x8xf32> to vector<192x8xbf16>
    %96 = vector.extract_strided_slice %21 {offsets = [0, 0, 0], sizes = [1, 8, 8], strides = [1, 1, 1]} : vector<9x8x8xbf16> to vector<1x8x8xbf16>
    %97 = vector.shape_cast %96 : vector<1x8x8xbf16> to vector<8x8xbf16>
    %cst_47 = arith.constant dense<0.000000e+00> : vector<192x8xf32>
    %98 = tpu.matmul %95, %97, %cst_47 {dimension_numbers = #tpu.dot_dimension_numbers<[1], [0], [0], [1], [0, 0, 1, 1], [], []>} : vector<192x8xbf16>, vector<8x8xbf16>, vector<192x8xf32> -> vector<192x8xf32>
    %99 = arith.addf %93, %98 : vector<192x8xf32>
    %c216 = arith.constant 216 : index
    %c0_48 = arith.constant 0 : index
    %100 = vector.load %arg7[%c216, %c0_48] : memref<480x8xf32, #tpu.memory_space<vmem>>, vector<192x8xf32>
    %101 = arith.truncf %100 : vector<192x8xf32> to vector<192x8xbf16>
    %102 = vector.extract_strided_slice %21 {offsets = [1, 0, 0], sizes = [1, 8, 8], strides = [1, 1, 1]} : vector<9x8x8xbf16> to vector<1x8x8xbf16>
    %103 = vector.shape_cast %102 : vector<1x8x8xbf16> to vector<8x8xbf16>
    %cst_49 = arith.constant dense<0.000000e+00> : vector<192x8xf32>
    %104 = tpu.matmul %101, %103, %cst_49 {dimension_numbers = #tpu.dot_dimension_numbers<[1], [0], [0], [1], [0, 0, 1, 1], [], []>} : vector<192x8xbf16>, vector<8x8xbf16>, vector<192x8xf32> -> vector<192x8xf32>
    %105 = arith.addf %99, %104 : vector<192x8xf32>
    %c217 = arith.constant 217 : index
    %c0_50 = arith.constant 0 : index
    %106 = vector.load %arg7[%c217, %c0_50] : memref<480x8xf32, #tpu.memory_space<vmem>>, vector<192x8xf32>
    %107 = arith.truncf %106 : vector<192x8xf32> to vector<192x8xbf16>
    %108 = vector.extract_strided_slice %21 {offsets = [2, 0, 0], sizes = [1, 8, 8], strides = [1, 1, 1]} : vector<9x8x8xbf16> to vector<1x8x8xbf16>
    %109 = vector.shape_cast %108 : vector<1x8x8xbf16> to vector<8x8xbf16>
    %cst_51 = arith.constant dense<0.000000e+00> : vector<192x8xf32>
    %110 = tpu.matmul %107, %109, %cst_51 {dimension_numbers = #tpu.dot_dimension_numbers<[1], [0], [0], [1], [0, 0, 1, 1], [], []>} : vector<192x8xbf16>, vector<8x8xbf16>, vector<192x8xf32> -> vector<192x8xf32>
    %111 = arith.addf %105, %110 : vector<192x8xf32>
    %c239 = arith.constant 239 : index
    %c0_52 = arith.constant 0 : index
    %112 = vector.load %arg7[%c239, %c0_52] : memref<480x8xf32, #tpu.memory_space<vmem>>, vector<192x8xf32>
    %113 = arith.truncf %112 : vector<192x8xf32> to vector<192x8xbf16>
    %114 = vector.extract_strided_slice %21 {offsets = [3, 0, 0], sizes = [1, 8, 8], strides = [1, 1, 1]} : vector<9x8x8xbf16> to vector<1x8x8xbf16>
    %115 = vector.shape_cast %114 : vector<1x8x8xbf16> to vector<8x8xbf16>
    %cst_53 = arith.constant dense<0.000000e+00> : vector<192x8xf32>
    %116 = tpu.matmul %113, %115, %cst_53 {dimension_numbers = #tpu.dot_dimension_numbers<[1], [0], [0], [1], [0, 0, 1, 1], [], []>} : vector<192x8xbf16>, vector<8x8xbf16>, vector<192x8xf32> -> vector<192x8xf32>
    %117 = arith.addf %111, %116 : vector<192x8xf32>
    %c240 = arith.constant 240 : index
    %c0_54 = arith.constant 0 : index
    %118 = vector.load %arg7[%c240, %c0_54] : memref<480x8xf32, #tpu.memory_space<vmem>>, vector<192x8xf32>
    %119 = arith.truncf %118 : vector<192x8xf32> to vector<192x8xbf16>
    %120 = vector.extract_strided_slice %21 {offsets = [4, 0, 0], sizes = [1, 8, 8], strides = [1, 1, 1]} : vector<9x8x8xbf16> to vector<1x8x8xbf16>
    %121 = vector.shape_cast %120 : vector<1x8x8xbf16> to vector<8x8xbf16>
    %cst_55 = arith.constant dense<0.000000e+00> : vector<192x8xf32>
    %122 = tpu.matmul %119, %121, %cst_55 {dimension_numbers = #tpu.dot_dimension_numbers<[1], [0], [0], [1], [0, 0, 1, 1], [], []>} : vector<192x8xbf16>, vector<8x8xbf16>, vector<192x8xf32> -> vector<192x8xf32>
    %123 = arith.addf %117, %122 : vector<192x8xf32>
    %c241 = arith.constant 241 : index
    %c0_56 = arith.constant 0 : index
    %124 = vector.load %arg7[%c241, %c0_56] : memref<480x8xf32, #tpu.memory_space<vmem>>, vector<192x8xf32>
    %125 = arith.truncf %124 : vector<192x8xf32> to vector<192x8xbf16>
    %126 = vector.extract_strided_slice %21 {offsets = [5, 0, 0], sizes = [1, 8, 8], strides = [1, 1, 1]} : vector<9x8x8xbf16> to vector<1x8x8xbf16>
    %127 = vector.shape_cast %126 : vector<1x8x8xbf16> to vector<8x8xbf16>
    %cst_57 = arith.constant dense<0.000000e+00> : vector<192x8xf32>
    %128 = tpu.matmul %125, %127, %cst_57 {dimension_numbers = #tpu.dot_dimension_numbers<[1], [0], [0], [1], [0, 0, 1, 1], [], []>} : vector<192x8xbf16>, vector<8x8xbf16>, vector<192x8xf32> -> vector<192x8xf32>
    %129 = arith.addf %123, %128 : vector<192x8xf32>
    %c263 = arith.constant 263 : index
    %c0_58 = arith.constant 0 : index
    %130 = vector.load %arg7[%c263, %c0_58] : memref<480x8xf32, #tpu.memory_space<vmem>>, vector<192x8xf32>
    %131 = arith.truncf %130 : vector<192x8xf32> to vector<192x8xbf16>
    %132 = vector.extract_strided_slice %21 {offsets = [6, 0, 0], sizes = [1, 8, 8], strides = [1, 1, 1]} : vector<9x8x8xbf16> to vector<1x8x8xbf16>
    %133 = vector.shape_cast %132 : vector<1x8x8xbf16> to vector<8x8xbf16>
    %cst_59 = arith.constant dense<0.000000e+00> : vector<192x8xf32>
    %134 = tpu.matmul %131, %133, %cst_59 {dimension_numbers = #tpu.dot_dimension_numbers<[1], [0], [0], [1], [0, 0, 1, 1], [], []>} : vector<192x8xbf16>, vector<8x8xbf16>, vector<192x8xf32> -> vector<192x8xf32>
    %135 = arith.addf %129, %134 : vector<192x8xf32>
    %c264 = arith.constant 264 : index
    %c0_60 = arith.constant 0 : index
    %136 = vector.load %arg7[%c264, %c0_60] : memref<480x8xf32, #tpu.memory_space<vmem>>, vector<192x8xf32>
    %137 = arith.truncf %136 : vector<192x8xf32> to vector<192x8xbf16>
    %138 = vector.extract_strided_slice %21 {offsets = [7, 0, 0], sizes = [1, 8, 8], strides = [1, 1, 1]} : vector<9x8x8xbf16> to vector<1x8x8xbf16>
    %139 = vector.shape_cast %138 : vector<1x8x8xbf16> to vector<8x8xbf16>
    %cst_61 = arith.constant dense<0.000000e+00> : vector<192x8xf32>
    %140 = tpu.matmul %137, %139, %cst_61 {dimension_numbers = #tpu.dot_dimension_numbers<[1], [0], [0], [1], [0, 0, 1, 1], [], []>} : vector<192x8xbf16>, vector<8x8xbf16>, vector<192x8xf32> -> vector<192x8xf32>
    %141 = arith.addf %135, %140 : vector<192x8xf32>
    %c265 = arith.constant 265 : index
    %c0_62 = arith.constant 0 : index
    %142 = vector.load %arg7[%c265, %c0_62] : memref<480x8xf32, #tpu.memory_space<vmem>>, vector<192x8xf32>
    %143 = arith.truncf %142 : vector<192x8xf32> to vector<192x8xbf16>
    %144 = vector.extract_strided_slice %21 {offsets = [8, 0, 0], sizes = [1, 8, 8], strides = [1, 1, 1]} : vector<9x8x8xbf16> to vector<1x8x8xbf16>
    %145 = vector.shape_cast %144 : vector<1x8x8xbf16> to vector<8x8xbf16>
    %cst_63 = arith.constant dense<0.000000e+00> : vector<192x8xf32>
    %146 = tpu.matmul %143, %145, %cst_63 {dimension_numbers = #tpu.dot_dimension_numbers<[1], [0], [0], [1], [0, 0, 1, 1], [], []>} : vector<192x8xbf16>, vector<8x8xbf16>, vector<192x8xf32> -> vector<192x8xf32>
    %147 = arith.addf %141, %146 : vector<192x8xf32>
    %148 = vector.shape_cast %147 : vector<192x8xf32> to vector<8x24x8xf32>
    %149 = vector.extract_strided_slice %148 {offsets = [0, 0, 0], sizes = [8, 16, 8], strides = [1, 1, 1]} : vector<8x24x8xf32> to vector<8x16x8xf32>
    %c0_64 = arith.constant 0 : index
    %c8 = arith.constant 8 : index
    %c0_65 = arith.constant 0 : index
    %c0_66 = arith.constant 0 : index
    %150 = vector.load %arg5[%c0_64, %c8, %c0_65, %c0_66] : memref<1x16x16x8xf32, #tpu.memory_space<vmem>>, vector<1x8x16x8xf32>
    %151 = vector.shape_cast %150 : vector<1x8x16x8xf32> to vector<8x16x8xf32>
    %152 = vector.shape_cast %149 : vector<8x16x8xf32> to vector<1x8x16x8xf32>
    tpu.vector_store %arg5[%c0_64, %c8, %c0_65, %c0_66], %152 {strides = array<i32>} : memref<1x16x16x8xf32, #tpu.memory_space<vmem>>, vector<1x8x16x8xf32>,
    %cst_67 = arith.constant dense<0.000000e+00> : vector<8xf32>
    %153 = vector.multi_reduction <add>, %149, %cst_67 [0, 1] : vector<8x16x8xf32> to vector<8xf32>
    %154 = vector.shape_cast %153 : vector<8xf32> to vector<1x1x8xf32>
    %155 = vector.shape_cast %154 : vector<1x1x8xf32> to vector<1x8xf32>
    %156 = arith.addf %87, %155 : vector<1x8xf32>
    %157 = arith.mulf %149, %149 : vector<8x16x8xf32>
    %cst_68 = arith.constant dense<0.000000e+00> : vector<8xf32>
    %158 = vector.multi_reduction <add>, %157, %cst_68 [0, 1] : vector<8x16x8xf32> to vector<8xf32>
    %159 = vector.shape_cast %158 : vector<8xf32> to vector<1x1x8xf32>
    %160 = vector.shape_cast %159 : vector<1x1x8xf32> to vector<1x8xf32>
    %161 = arith.addf %92, %160 : vector<1x8xf32>
    %162 = tpu.concatenate %156, %161 in 0 : vector<1x8xf32>, vector<1x8xf32> -> vector<2x8xf32>
    %c0_69 = arith.constant 0 : index
    %c0_70 = arith.constant 0 : index
    %c0_71 = arith.constant 0 : index
    %163 = vector.load %arg6[%c0_69, %c0_70, %c0_71] : memref<1x2x8xf32, #tpu.memory_space<vmem>>, vector<1x2x8xf32>
    %164 = vector.shape_cast %163 : vector<1x2x8xf32> to vector<2x8xf32>
    %165 = vector.shape_cast %162 : vector<2x8xf32> to vector<1x2x8xf32>
    tpu.vector_store %arg6[%c0_69, %c0_70, %c0_71], %165 {strides = array<i32>} : memref<1x2x8xf32, #tpu.memory_space<vmem>>, vector<1x2x8xf32>,
    return
  }
  func.func @transform_0(%arg0: i32) -> (i32, i32, i32, i32) {
    %c0_i32 = arith.constant 0 : i32
    %c0_i32_0 = arith.constant 0 : i32
    %c0_i32_1 = arith.constant 0 : i32
    %c0_i32_2 = arith.constant 0 : i32
    return %arg0, %c0_i32, %c0_i32_0, %c0_i32_1 : i32, i32, i32, i32
  }
  func.func @transform_1(%arg0: i32) -> (i32, i32) {
    %c0_i32 = arith.constant 0 : i32
    %c0_i32_0 = arith.constant 0 : i32
    %c0_i32_1 = arith.constant 0 : i32
    return %c0_i32, %c0_i32_0 : i32, i32
  }
  func.func @transform_2(%arg0: i32) -> (i32, i32) {
    %c0_i32 = arith.constant 0 : i32
    %c0_i32_0 = arith.constant 0 : i32
    %c0_i32_1 = arith.constant 0 : i32
    return %c0_i32, %c0_i32_0 : i32, i32
  }
  func.func @transform_3(%arg0: i32) -> (i32, i32, i32) {
    %c0_i32 = arith.constant 0 : i32
    %c0_i32_0 = arith.constant 0 : i32
    %c0_i32_1 = arith.constant 0 : i32
    %c0_i32_2 = arith.constant 0 : i32
    return %c0_i32, %c0_i32_0, %c0_i32_1 : i32, i32, i32
  }
  func.func @transform_4(%arg0: i32) -> (i32, i32, i32, i32) {
    %c0_i32 = arith.constant 0 : i32
    %c0_i32_0 = arith.constant 0 : i32
    %c0_i32_1 = arith.constant 0 : i32
    %c0_i32_2 = arith.constant 0 : i32
    return %arg0, %c0_i32, %c0_i32_0, %c0_i32_1 : i32, i32, i32, i32
  }
  func.func @transform_5(%arg0: i32) -> (i32, i32, i32) {
    %c0_i32 = arith.constant 0 : i32
    %c0_i32_0 = arith.constant 0 : i32
    %c0_i32_1 = arith.constant 0 : i32
    return %arg0, %c0_i32, %c0_i32_0 : i32, i32, i32
  }
}

module attributes {stable_mosaic.version = 11 : i64} {
  func.func @_conv1x1_stats_kernel(%arg0: i32, %arg1: memref<256x8xf32, #tpu.memory_space<vmem>>, %arg2: memref<1x8xf32, #tpu.memory_space<vmem>>, %arg3: memref<1x8xf32, #tpu.memory_space<vmem>>, %arg4: memref<8x16xf32, #tpu.memory_space<vmem>>, %arg5: memref<256x16xf32, #tpu.memory_space<vmem>>, %arg6: memref<1x2x16xf32, #tpu.memory_space<vmem>>) attributes {dimension_semantics = [#tpu.dimension_semantics<parallel>], iteration_bounds = array<i64: 2>, scalar_prefetch = 0 : i64, scratch_operands = 0 : i64, tpu.core_type = #tpu.core_type<tc>, window_params = [{transform_indices = @transform_0, window_bounds = array<i64: 256, 8>}, {pipeline_mode = #tpu.pipeline_mode<synchronous>, transform_indices = @transform_1, window_bounds = array<i64: 1, 8>}, {pipeline_mode = #tpu.pipeline_mode<synchronous>, transform_indices = @transform_2, window_bounds = array<i64: 1, 8>}, {pipeline_mode = #tpu.pipeline_mode<synchronous>, transform_indices = @transform_3, window_bounds = array<i64: 8, 16>}, {transform_indices = @transform_4, window_bounds = array<i64: 256, 16>}, {transform_indices = @transform_5, window_bounds = array<i64: 1, 2, 16>}]} {
    %c0 = arith.constant 0 : index
    %c0_0 = arith.constant 0 : index
    %0 = vector.load %arg1[%c0, %c0_0] : memref<256x8xf32, #tpu.memory_space<vmem>>, vector<256x8xf32>
    %c0_1 = arith.constant 0 : index
    %c0_2 = arith.constant 0 : index
    %1 = vector.load %arg2[%c0_1, %c0_2] : memref<1x8xf32, #tpu.memory_space<vmem>>, vector<1x8xf32>
    %2 = vector.broadcast %1 : vector<1x8xf32> to vector<256x8xf32>
    %3 = arith.mulf %0, %2 : vector<256x8xf32>
    %c0_3 = arith.constant 0 : index
    %c0_4 = arith.constant 0 : index
    %4 = vector.load %arg3[%c0_3, %c0_4] : memref<1x8xf32, #tpu.memory_space<vmem>>, vector<1x8xf32>
    %5 = vector.broadcast %4 : vector<1x8xf32> to vector<256x8xf32>
    %6 = arith.addf %3, %5 : vector<256x8xf32>
    %cst = arith.constant 0.000000e+00 : f32
    %7 = vector.broadcast %cst : f32 to vector<256x8xf32>
    %8 = arith.maximumf %6, %7 : vector<256x8xf32>
    %9 = arith.truncf %8 : vector<256x8xf32> to vector<256x8xbf16>
    %c0_5 = arith.constant 0 : index
    %c0_6 = arith.constant 0 : index
    %10 = vector.load %arg4[%c0_5, %c0_6] : memref<8x16xf32, #tpu.memory_space<vmem>>, vector<8x16xf32>
    %11 = arith.truncf %10 : vector<8x16xf32> to vector<8x16xbf16>
    %cst_7 = arith.constant dense<0.000000e+00> : vector<256x16xf32>
    %12 = tpu.matmul %9, %11, %cst_7 {dimension_numbers = #tpu.dot_dimension_numbers<[1], [0], [0], [1], [0, 0, 1, 1], [], []>} : vector<256x8xbf16>, vector<8x16xbf16>, vector<256x16xf32> -> vector<256x16xf32>
    %c0_8 = arith.constant 0 : index
    %c0_9 = arith.constant 0 : index
    %13 = vector.load %arg5[%c0_8, %c0_9] : memref<256x16xf32, #tpu.memory_space<vmem>>, vector<256x16xf32>
    tpu.vector_store %arg5[%c0_8, %c0_9], %12 {strides = array<i32>} : memref<256x16xf32, #tpu.memory_space<vmem>>, vector<256x16xf32>,
    %cst_10 = arith.constant dense<0.000000e+00> : vector<16xf32>
    %14 = vector.multi_reduction <add>, %12, %cst_10 [0] : vector<256x16xf32> to vector<16xf32>
    %15 = vector.shape_cast %14 : vector<16xf32> to vector<1x16xf32>
    %16 = arith.mulf %12, %12 : vector<256x16xf32>
    %cst_11 = arith.constant dense<0.000000e+00> : vector<16xf32>
    %17 = vector.multi_reduction <add>, %16, %cst_11 [0] : vector<256x16xf32> to vector<16xf32>
    %18 = vector.shape_cast %17 : vector<16xf32> to vector<1x16xf32>
    %19 = tpu.concatenate %15, %18 in 0 : vector<1x16xf32>, vector<1x16xf32> -> vector<2x16xf32>
    %c0_12 = arith.constant 0 : index
    %c0_13 = arith.constant 0 : index
    %c0_14 = arith.constant 0 : index
    %20 = vector.load %arg6[%c0_12, %c0_13, %c0_14] : memref<1x2x16xf32, #tpu.memory_space<vmem>>, vector<1x2x16xf32>
    %21 = vector.shape_cast %20 : vector<1x2x16xf32> to vector<2x16xf32>
    %22 = vector.shape_cast %19 : vector<2x16xf32> to vector<1x2x16xf32>
    tpu.vector_store %arg6[%c0_12, %c0_13, %c0_14], %22 {strides = array<i32>} : memref<1x2x16xf32, #tpu.memory_space<vmem>>, vector<1x2x16xf32>,
    return
  }
  func.func @transform_0(%arg0: i32) -> (i32, i32) {
    %c0_i32 = arith.constant 0 : i32
    %c0_i32_0 = arith.constant 0 : i32
    return %arg0, %c0_i32 : i32, i32
  }
  func.func @transform_1(%arg0: i32) -> (i32, i32) {
    %c0_i32 = arith.constant 0 : i32
    %c0_i32_0 = arith.constant 0 : i32
    %c0_i32_1 = arith.constant 0 : i32
    return %c0_i32, %c0_i32_0 : i32, i32
  }
  func.func @transform_2(%arg0: i32) -> (i32, i32) {
    %c0_i32 = arith.constant 0 : i32
    %c0_i32_0 = arith.constant 0 : i32
    %c0_i32_1 = arith.constant 0 : i32
    return %c0_i32, %c0_i32_0 : i32, i32
  }
  func.func @transform_3(%arg0: i32) -> (i32, i32) {
    %c0_i32 = arith.constant 0 : i32
    %c0_i32_0 = arith.constant 0 : i32
    %c0_i32_1 = arith.constant 0 : i32
    return %c0_i32, %c0_i32_0 : i32, i32
  }
  func.func @transform_4(%arg0: i32) -> (i32, i32) {
    %c0_i32 = arith.constant 0 : i32
    %c0_i32_0 = arith.constant 0 : i32
    return %arg0, %c0_i32 : i32, i32
  }
  func.func @transform_5(%arg0: i32) -> (i32, i32, i32) {
    %c0_i32 = arith.constant 0 : i32
    %c0_i32_0 = arith.constant 0 : i32
    %c0_i32_1 = arith.constant 0 : i32
    return %arg0, %c0_i32, %c0_i32_0 : i32, i32, i32
  }
}

module attributes {stable_mosaic.version = 11 : i64} {
  func.func @_residual_kernel(%arg0: i32, %arg1: memref<256x16xf32, #tpu.memory_space<vmem>>, %arg2: memref<256x16xf32, #tpu.memory_space<vmem>>, %arg3: memref<1x16xf32, #tpu.memory_space<vmem>>, %arg4: memref<1x16xf32, #tpu.memory_space<vmem>>, %arg5: memref<256x16xf32, #tpu.memory_space<vmem>>) attributes {dimension_semantics = [#tpu.dimension_semantics<parallel>], iteration_bounds = array<i64: 2>, scalar_prefetch = 0 : i64, scratch_operands = 0 : i64, tpu.core_type = #tpu.core_type<tc>, window_params = [{transform_indices = @transform_0, window_bounds = array<i64: 256, 16>}, {transform_indices = @transform_1, window_bounds = array<i64: 256, 16>}, {pipeline_mode = #tpu.pipeline_mode<synchronous>, transform_indices = @transform_2, window_bounds = array<i64: 1, 16>}, {pipeline_mode = #tpu.pipeline_mode<synchronous>, transform_indices = @transform_3, window_bounds = array<i64: 1, 16>}, {transform_indices = @transform_4, window_bounds = array<i64: 256, 16>}]} {
    %c0 = arith.constant 0 : index
    %c0_0 = arith.constant 0 : index
    %0 = vector.load %arg1[%c0, %c0_0] : memref<256x16xf32, #tpu.memory_space<vmem>>, vector<256x16xf32>
    %c0_1 = arith.constant 0 : index
    %c0_2 = arith.constant 0 : index
    %1 = vector.load %arg3[%c0_1, %c0_2] : memref<1x16xf32, #tpu.memory_space<vmem>>, vector<1x16xf32>
    %2 = vector.broadcast %1 : vector<1x16xf32> to vector<256x16xf32>
    %3 = arith.mulf %0, %2 : vector<256x16xf32>
    %c0_3 = arith.constant 0 : index
    %c0_4 = arith.constant 0 : index
    %4 = vector.load %arg4[%c0_3, %c0_4] : memref<1x16xf32, #tpu.memory_space<vmem>>, vector<1x16xf32>
    %5 = vector.broadcast %4 : vector<1x16xf32> to vector<256x16xf32>
    %6 = arith.addf %3, %5 : vector<256x16xf32>
    %c0_5 = arith.constant 0 : index
    %c0_6 = arith.constant 0 : index
    %7 = vector.load %arg2[%c0_5, %c0_6] : memref<256x16xf32, #tpu.memory_space<vmem>>, vector<256x16xf32>
    %8 = arith.addf %6, %7 : vector<256x16xf32>
    %cst = arith.constant 0.000000e+00 : f32
    %9 = vector.broadcast %cst : f32 to vector<256x16xf32>
    %10 = arith.maximumf %8, %9 : vector<256x16xf32>
    %c0_7 = arith.constant 0 : index
    %c0_8 = arith.constant 0 : index
    %11 = vector.load %arg5[%c0_7, %c0_8] : memref<256x16xf32, #tpu.memory_space<vmem>>, vector<256x16xf32>
    tpu.vector_store %arg5[%c0_7, %c0_8], %10 {strides = array<i32>} : memref<256x16xf32, #tpu.memory_space<vmem>>, vector<256x16xf32>,
    return
  }
  func.func @transform_0(%arg0: i32) -> (i32, i32) {
    %c0_i32 = arith.constant 0 : i32
    %c0_i32_0 = arith.constant 0 : i32
    return %arg0, %c0_i32 : i32, i32
  }
  func.func @transform_1(%arg0: i32) -> (i32, i32) {
    %c0_i32 = arith.constant 0 : i32
    %c0_i32_0 = arith.constant 0 : i32
    return %arg0, %c0_i32 : i32, i32
  }
  func.func @transform_2(%arg0: i32) -> (i32, i32) {
    %c0_i32 = arith.constant 0 : i32
    %c0_i32_0 = arith.constant 0 : i32
    %c0_i32_1 = arith.constant 0 : i32
    return %c0_i32, %c0_i32_0 : i32, i32
  }
  func.func @transform_3(%arg0: i32) -> (i32, i32) {
    %c0_i32 = arith.constant 0 : i32
    %c0_i32_0 = arith.constant 0 : i32
    %c0_i32_1 = arith.constant 0 : i32
    return %c0_i32, %c0_i32_0 : i32, i32
  }
  func.func @transform_4(%arg0: i32) -> (i32, i32) {
    %c0_i32 = arith.constant 0 : i32
    %c0_i32_0 = arith.constant 0 : i32
    return %arg0, %c0_i32 : i32, i32
  }
}

</mosaic_0001>

<bundles_post_ra>
// kernel: identity_block_nchw.4
= control target key start
LH: loop header
LB: loop body
LE: loop exit
PB: predicated region body
PF: predicated region fallthrough
CT: control target
= control target key end

     0   :  { %s858_s12 = smov 0   ;;  %s1172_s0 = inlined_call_operand.vmem [shape: f32[512,16], index: 0, kind: input, shape index: {}]   ;;  %s1173_s1 = inlined_call_operand.vmem [shape: f32[16,8], index: 1, kind: input, shape index: {}]   ;;  %s1174_s2 = inlined_call_operand.vmem [shape: f32[512,8], index: 2, kind: output, shape index: {0}]   ;;  %s1175_s3 = inlined_call_operand.vmem [shape: f32[2,2,8], index: 3, kind: output, shape index: {1}]  }
   0x1 LB: > { %s864_s13 = sadd.s32 4294967295, %s836_s12   ;;  %p745_p0 = scmp.ge.s32.totalorder %s836_s12, 1  ;;  %s836_s12 = sphi %s858_s12, %s14_s12  }
   0x2   : > { %p141_p1 = scmp.lt.s32.totalorder %s836_s12, 3 }
   0x4   : > { %p142_p2 = pnand %p745_p0, %p141_p1 }
   0x5   : > { %v234_v0 = vld [vmem:[%s1173_s1] sm:$0xff] (!%p142_p2)  ;;  %v235_v1 = vld [vmem:[%s1173_s1 + $0x8] sm:$0xff] (!%p142_p2)  ;;  %s746_s18 = sshll.u32 (!%p142_p2), %s864_s13, 5  ;;  %vm237_vm0 = vcmask (!%p142_p2), 130048   ;;  %vm447_vm1 = vcmask (!%p142_p2), 64512   ;;  %p181_p4 = scmp.lt.s32.totalorder (!%p142_p2), %s864_s13, 1 }
   0x6   : > { %145 = sbr.rel (%p142_p2) target bundleno = 314 (0x13a), region = 28  ;;  %v236_v2 = vpack.c.bf16 (!%p142_p2), %v235_v1, %v234_v0  ;;  %p170_p3 = scmp.lt.s32.totalorder (!%p142_p2), %s746_s18, 63  ;;  %vm650_vm2 = vcmask (!%p142_p2), 1040384   ;;  %vm652_vm3 = vcmask (!%p142_p2), 58368  }
   0x8   : > { %786 = vmatprep.subr.bf16.mxu0 (!%p142_p2), %v236_v2  ;;  %820 = vmatprep.subr.bf16.mxu1 (!%p142_p2), %v236_v2 }
   0x9   : > { %787 = vmatpush3.bf16.msra.mxu0 (!%p142_p2), %v236_v2  ;;  %821 = vmatpush3.bf16.msra.mxu1 (!%p142_p2), %v236_v2 }
   0xd   : > { %s1177_s18 = smov (!%p170_p3, %s746_s18), 63  ;;  %s1179_s13 = smov (!%p181_p4, %s864_s13), 1 }
   0xe   : > { %s747_s19 = sshll.u32 %s1177_s18, 3  ;;  %s750_s26 = sshll.u32 %s1179_s13, 1 }
   0xf   : > { %s883_s22 = scalar_lea.vmem %s1172_s0, %s747_s19  ;;  %s938_s25 = scalar_lea.vmem %s1174_s2, %s747_s19 }
  0x10   : > { %v186_v3 = vld [vmem:[%s883_s22] sm:$0xff]  ;;  %v187_v4 = vld [vmem:[%s883_s22 + $0x8] sm:$0xff]  ;;  %v188_v5 = vld [vmem:[%s883_s22 + $0x10] sm:$0xff]  ;;  %s184_s29 = scalar_lea.vmem %s1175_s3, %s750_s26 }
  0x11   : > { %v218_v6 = vpack.c.bf16 %v187_v4, %v186_v3  ;;  %v189_v7 = vld [vmem:[%s883_s22 + $0x18] sm:$0xff]  ;;  %v190_v8 = vld [vmem:[%s883_s22 + $0x20] sm:$0xff]  ;;  %v191_v9 = vld [vmem:[%s883_s22 + $0x28] sm:$0xff] }
  0x12   : > { %v219_v10 = vpack.c.bf16 %v189_v7, %v188_v5  ;;  %v220_v11 = vpack.c.bf16 %v191_v9, %v190_v8  ;;  %v192_v12 = vld [vmem:[%s883_s22 + $0x30] sm:$0xff]  ;;  %v193_v13 = vld [vmem:[%s883_s22 + $0x38] sm:$0xff]  ;;  %v194_v14 = vld [vmem:[%s883_s22 + $0x40] sm:$0xff] }
  0x13   : > { %788 = vmatprep.mubr.msk.bf16.mxu0 %vm237_vm0, %v218_v6  ;;  %v195_v15 = vld [vmem:[%s883_s22 + $0x48] sm:$0xff]  ;;  %v202_v16 = vld [vmem:[%s883_s22 + $0x80] sm:$0xff]  ;;  %v204_v19 = vld [vmem:[%s883_s22 + $0x90] sm:$0xff]  ;;  %v221_v24 = vpack.c.bf16 %v193_v13, %v192_v12 }
  0x14   : > { %789 = vmatmul.mubr.msk.bf16.vlgmr.msra.gmra.mrb[0].mxu0 %vm237_vm0, %v219_v10  ;;  %v203_v17 = vld [vmem:[%s883_s22 + $0x88] sm:$0xff]  ;;  %v205_v20 = vld [vmem:[%s883_s22 + $0x98] sm:$0xff]  ;;  %v206_v21 = vld [vmem:[%s883_s22 + $0xa0] sm:$0xff]  ;;  %v222_v26 = vpack.c.bf16 %v195_v15, %v194_v14 }
  0x15   : > { %792 = vmatprep.mubr.msk.bf16.mxu0 %vm237_vm0, %v220_v11  ;;  %v226_v18 = vpack.c.bf16 %v203_v17, %v202_v16  ;;  %v227_v22 = vpack.c.bf16 %v205_v20, %v204_v19  ;;  %v207_v23 = vld [vmem:[%s883_s22 + $0xa8] sm:$0xff]  ;;  %v208_v27 = vld [vmem:[%s883_s22 + $0xb0] sm:$0xff]  ;;  %v209_v28 = vld [vmem:[%s883_s22 + $0xb8] sm:$0xff] }
  0x16   : > { %v228_v25 = vpack.c.bf16 %v207_v23, %v206_v21  ;;  %v210_v29 = vld [vmem:[%s883_s22 + $0xc0] sm:$0xff]  ;;  %v211_v30 = vld [vmem:[%s883_s22 + $0xc8] sm:$0xff]  ;;  %v196_v31 = vld [vmem:[%s883_s22 + $0x50] sm:$0xff]  ;;  %v229_v33 = vpack.c.bf16 %v209_v28, %v208_v27 }
  0x17   : > { %804 = vmatprep.mubr.msk.bf16.mxu1 %vm237_vm0, %v226_v18  ;;  %v197_v32 = vld [vmem:[%s883_s22 + $0x58] sm:$0xff]  ;;  %v198_v34 = vld [vmem:[%s883_s22 + $0x60] sm:$0xff]  ;;  %v199_v35 = vld [vmem:[%s883_s22 + $0x68] sm:$0xff]  ;;  %v230_v36 = vpack.c.bf16 %v211_v30, %v210_v29 }
  0x18   : > { %805 = vmatmul.mubr.msk.bf16.vlgmr.msra.gmra.mrb[0].mxu1 %vm237_vm0, %v227_v22  ;;  %v223_v37 = vpack.c.bf16 %v197_v32, %v196_v31  ;;  %v224_v38 = vpack.c.bf16 %v199_v35, %v198_v34  ;;  %v212_v39 = vld [vmem:[%s883_s22 + $0xd0] sm:$0xff]  ;;  %v213_v40 = vld [vmem:[%s883_s22 + $0xd8] sm:$0xff]  ;;  %v214_v41 = vld [vmem:[%s883_s22 + $0xe0] sm:$0xff] }
  0x19   : > { %808 = vmatprep.mubr.msk.bf16.mxu1 %vm237_vm0, %v228_v25  ;;  %v215_v42 = vld [vmem:[%s883_s22 + $0xe8] sm:$0xff]  ;;  %v200_v43 = vld [vmem:[%s883_s22 + $0x70] sm:$0xff]  ;;  %v201_v44 = vld [vmem:[%s883_s22 + $0x78] sm:$0xff]  ;;  %v231_v45 = vpack.c.bf16 %v213_v40, %v212_v39 }
  0x1a   : > { %v232_v46 = vpack.c.bf16 %v215_v42, %v214_v41  ;;  %v225_v47 = vpack.c.bf16 %v201_v44, %v200_v43  ;;  %v216_v48 = vld [vmem:[%s883_s22 + $0xf0] sm:$0xff]  ;;  %v217_v49 = vld [vmem:[%s883_s22 + $0xf8] sm:$0xff] }
  0x1b   : > { %v233_v50 = vpack.c.bf16 %v217_v49, %v216_v48 }
  0x1c   : > { %793 = vmatmul.mubr.msk.bf16.gmra.mrb[4].mxu0 %vm237_vm0, %v221_v24 }
  0x1d   : > { %796 = vmatprep.mubr.msk.bf16.mxu0 %vm237_vm0, %v222_v26 }
  0x20   : > { %809 = vmatmul.mubr.msk.bf16.gmra.mrb[4].mxu1 %vm237_vm0, %v229_v33 }
  0x21   : > { %812 = vmatprep.mubr.msk.bf16.mxu1 %vm237_vm0, %v230_v36 }
  0x24   : > { %797 = vmatmul.mubr.msk.bf16.gmra.mrb[8].mxu0 %vm237_vm0, %v223_v37 }
  0x25   : > { %800 = vmatprep.mubr.msk.bf16.mxu0 %vm237_vm0, %v224_v38 }
  0x28   : > { %813 = vmatmul.mubr.msk.bf16.gmra.mrb[8].mxu1 %vm237_vm0, %v231_v45 }
  0x29   : > { %816 = vmatprep.mubr.msk.bf16.mxu1 %vm237_vm0, %v232_v46 }
  0x2c   : > { %801 = vmatmul.mubr.msk.bf16.gmra.mrb[12].mxu0 %vm237_vm0, %v225_v47 }
  0x30   : > { %817 = vmatmul.mubr.msk.bf16.gmra.mrb[12].mxu1 %vm237_vm0, %v233_v50 }
  0xe7   : > { %v790_v51 = vpop.f32.mrb[0].mxu0 }
  0xe8   : > { %450 = vst.msk [vmem:[%s938_s25 + $0x10] sm:$0xff] %vm447_vm1, %v790_v51  ;;  %v320_v52 = vpop.f32.mrb[1].mxu0  ;;  %v551_v56 = vmul.f32 %v790_v51, %v790_v51  ;;  %v483_v62 = vsel %vm447_vm1, %v790_v51, 0.0 }
  0xe9   : > { %448 = vst.msk [vmem:[%s938_s25] sm:$0xff] %vm447_vm1, %v320_v52  ;;  %v549_v53 = vmul.f32 %v320_v52, %v320_v52  ;;  %v791_v54 = vpop.f32.mrb[2].mxu0  ;;  %v480_v57 = vsel %vm447_vm1, %v320_v52, 0.0 }
  0xea   : > { %451 = vst.msk [vmem:[%s938_s25 + $0x18] sm:$0xff] %vm447_vm1, %v791_v54  ;;  %v323_v55 = vpop.f32.mrb[3].mxu0  ;;  %v552_v0 = vmul.f32 %v791_v54, %v791_v54  ;;  %v584_v6 = vsel %vm447_vm1, %v551_v56, 0.0  ;;  %v485_v7 = vsel %vm447_vm1, %v791_v54, 0.0 }
  0xeb   : > { %449 = vst.msk [vmem:[%s938_s25 + $0x8] sm:$0xff] %vm447_vm1, %v323_v55  ;;  %v481_v58 = vsel %vm447_vm1, %v323_v55, 0.0  ;;  %v550_v59 = vmul.f32 %v323_v55, %v323_v55  ;;  %v950_v61 = vpop.f32.mrb[0].mxu1  ;;  %v581_v63 = vsel %vm447_vm1, %v549_v53, 0.0 }
  0xec   : > { %v482_v60 = vadd.f32 %v481_v58, %v480_v57  ;;  %466 = vst.msk [vmem:[%s938_s25 + $0x90] sm:$0xff] %vm447_vm1, %v950_v61  ;;  %v958_v2 = vpop.f32.mrb[1].mxu1  ;;  %v586_v13 = vsel %vm447_vm1, %v552_v0, 0.0 }
  0xed   : > { %v582_v1 = vsel %vm447_vm1, %v550_v59, 0.0  ;;  %464 = vst.msk [vmem:[%s938_s25 + $0x80] sm:$0xff] %vm447_vm1, %v958_v2  ;;  %v963_v5 = vpop.f32.mrb[2].mxu1 }
  0xee   : > { %v484_v3 = vadd.f32 %v483_v62, %v482_v60  ;;  %v583_v4 = vadd.f32 %v582_v1, %v581_v63  ;;  %467 = vst.msk [vmem:[%s938_s25 + $0x98] sm:$0xff] %vm447_vm1, %v963_v5  ;;  %v970_v9 = vpop.f32.mrb[3].mxu1 }
  0xef   : > { %v794_v8 = vpop.f32.mrb[4].mxu0  ;;  %465 = vst.msk [vmem:[%s938_s25 + $0x88] sm:$0xff] %vm447_vm1, %v970_v9 }
  0xf0   : > { %v585_v10 = vadd.f32 %v584_v6, %v583_v4  ;;  %454 = vst.msk [vmem:[%s938_s25 + $0x30] sm:$0xff] %vm447_vm1, %v794_v8  ;;  %v336_v11 = vpop.f32.mrb[5].mxu0  ;;  %v486_v12 = vadd.f32 %v485_v7, %v484_v3  ;;  %v555_v20 = vmul.f32 %v794_v8, %v794_v8  ;;  %v491_v27 = vsel %vm447_vm1, %v794_v8, 0.0 }
  0xf1   : > { %452 = vst.msk [vmem:[%s938_s25 + $0x20] sm:$0xff] %vm447_vm1, %v336_v11  ;;  %v487_v14 = vsel %vm447_vm1, %v336_v11, 0.0  ;;  %v553_v15 = vmul.f32 %v336_v11, %v336_v11  ;;  %v795_v16 = vpop.f32.mrb[6].mxu0 }
  0xf2   : > { %v488_v17 = vadd.f32 %v487_v14, %v486_v12  ;;  %v587_v18 = vadd.f32 %v586_v13, %v585_v10  ;;  %455 = vst.msk [vmem:[%s938_s25 + $0x38] sm:$0xff] %vm447_vm1, %v795_v16  ;;  %v339_v19 = vpop.f32.mrb[7].mxu0  ;;  %v556_v28 = vmul.f32 %v795_v16, %v795_v16  ;;  %v592_v34 = vsel %vm447_vm1, %v555_v20, 0.0 }
  0xf3   : > { %v588_v21 = vsel %vm447_vm1, %v553_v15, 0.0  ;;  %453 = vst.msk [vmem:[%s938_s25 + $0x28] sm:$0xff] %vm447_vm1, %v339_v19  ;;  %v489_v22 = vsel %vm447_vm1, %v339_v19, 0.0  ;;  %v554_v23 = vmul.f32 %v339_v19, %v339_v19  ;;  %v987_v26 = vpop.f32.mrb[4].mxu1  ;;  %v493_v35 = vsel %vm447_vm1, %v795_v16, 0.0 }
  0xf4   : > { %v589_v24 = vadd.f32 %v588_v21, %v587_v18  ;;  %v490_v25 = vadd.f32 %v489_v22, %v488_v17  ;;  %470 = vst.msk [vmem:[%s938_s25 + $0xb0] sm:$0xff] %vm447_vm1, %v987_v26  ;;  %v994_v30 = vpop.f32.mrb[5].mxu1  ;;  %v594_v41 = vsel %vm447_vm1, %v556_v28, 0.0 }
  0xf5   : > { %v590_v29 = vsel %vm447_vm1, %v554_v23, 0.0  ;;  %468 = vst.msk [vmem:[%s938_s25 + $0xa0] sm:$0xff] %vm447_vm1, %v994_v30  ;;  %v999_v33 = vpop.f32.mrb[6].mxu1 }
  0xf6   : > { %v492_v31 = vadd.f32 %v491_v27, %v490_v25  ;;  %v591_v32 = vadd.f32 %v590_v29, %v589_v24  ;;  %471 = vst.msk [vmem:[%s938_s25 + $0xb8] sm:$0xff] %vm447_vm1, %v999_v33  ;;  %v1006_v37 = vpop.f32.mrb[7].mxu1  ;;  %v565_v27 = vmul.f32 %v958_v2, %v958_v2 }
  0xf7   : > { %v798_v36 = vpop.f32.mrb[8].mxu0  ;;  %469 = vst.msk [vmem:[%s938_s25 + $0xa8] sm:$0xff] %vm447_vm1, %v1006_v37 }
  0xf8   : > { %v593_v38 = vadd.f32 %v592_v34, %v591_v32  ;;  %458 = vst.msk [vmem:[%s938_s25 + $0x50] sm:$0xff] %vm447_vm1, %v798_v36  ;;  %v352_v39 = vpop.f32.mrb[9].mxu0  ;;  %v494_v40 = vadd.f32 %v493_v35, %v492_v31  ;;  %v559_v48 = vmul.f32 %v798_v36, %v798_v36  ;;  %v499_v55 = vsel %vm447_vm1, %v798_v36, 0.0 }
  0xf9   : > { %456 = vst.msk [vmem:[%s938_s25 + $0x40] sm:$0xff] %vm447_vm1, %v352_v39  ;;  %v495_v42 = vsel %vm447_vm1, %v352_v39, 0.0  ;;  %v557_v43 = vmul.f32 %v352_v39, %v352_v39  ;;  %v799_v44 = vpop.f32.mrb[10].mxu0  ;;  %v511_v32 = vsel %vm447_vm1, %v958_v2, 0.0 }
  0xfa   : > { %v496_v45 = vadd.f32 %v495_v42, %v494_v40  ;;  %v595_v46 = vadd.f32 %v594_v41, %v593_v38  ;;  %459 = vst.msk [vmem:[%s938_s25 + $0x58] sm:$0xff] %vm447_vm1, %v799_v44  ;;  %v355_v47 = vpop.f32.mrb[11].mxu0  ;;  %v560_v56 = vmul.f32 %v799_v44, %v799_v44  ;;  %v600_v63 = vsel %vm447_vm1, %v559_v48, 0.0 }
  0xfb   : > { %v596_v49 = vsel %vm447_vm1, %v557_v43, 0.0  ;;  %457 = vst.msk [vmem:[%s938_s25 + $0x48] sm:$0xff] %vm447_vm1, %v355_v47  ;;  %v497_v50 = vsel %vm447_vm1, %v355_v47, 0.0  ;;  %v558_v51 = vmul.f32 %v355_v47, %v355_v47  ;;  %v1023_v54 = vpop.f32.mrb[8].mxu1  ;;  %v501_v0 = vsel %vm447_vm1, %v799_v44, 0.0 }
  0xfc   : > { %v597_v52 = vadd.f32 %v596_v49, %v595_v46  ;;  %v498_v53 = vadd.f32 %v497_v50, %v496_v45  ;;  %474 = vst.msk [vmem:[%s938_s25 + $0xd0] sm:$0xff] %vm447_vm1, %v1023_v54  ;;  %v1030_v58 = vpop.f32.mrb[9].mxu1  ;;  %v602_v8 = vsel %vm447_vm1, %v560_v56, 0.0  ;;  %v612_v43 = vsel %vm447_vm1, %v565_v27, 0.0 }
  0xfd   : > { %v598_v57 = vsel %vm447_vm1, %v558_v51, 0.0  ;;  %472 = vst.msk [vmem:[%s938_s25 + $0xc0] sm:$0xff] %vm447_vm1, %v1030_v58  ;;  %v1035_v62 = vpop.f32.mrb[10].mxu1  ;;  %v566_v44 = vmul.f32 %v970_v9, %v970_v9  ;;  %v567_v48 = vmul.f32 %v950_v61, %v950_v61  ;;  %v513_v49 = vsel %vm447_vm1, %v970_v9, 0.0 }
  0xfe   : > { %v500_v59 = vadd.f32 %v499_v55, %v498_v53  ;;  %v599_v60 = vadd.f32 %v598_v57, %v597_v52  ;;  %475 = vst.msk [vmem:[%s938_s25 + $0xd8] sm:$0xff] %vm447_vm1, %v1035_v62  ;;  %v1042_v3 = vpop.f32.mrb[11].mxu1  ;;  %v515_v52 = vsel %vm447_vm1, %v950_v61, 0.0  ;;  %v568_v53 = vmul.f32 %v963_v5, %v963_v5 }
  0xff   : > { %v802_v1 = vpop.f32.mrb[12].mxu0  ;;  %473 = vst.msk [vmem:[%s938_s25 + $0xc8] sm:$0xff] %vm447_vm1, %v1042_v3  ;;  %v614_v55 = vsel %vm447_vm1, %v566_v44, 0.0  ;;  %v569_v56 = vmul.f32 %v994_v30, %v994_v30  ;;  %v517_v9 = vsel %vm447_vm1, %v963_v5, 0.0  ;;  %v521_v5 = vsel %vm447_vm1, %v1006_v37, 0.0 }
 0x100   : > { %v601_v4 = vadd.f32 %v600_v63, %v599_v60  ;;  %462 = vst.msk [vmem:[%s938_s25 + $0x70] sm:$0xff] %vm447_vm1, %v802_v1  ;;  %v368_v6 = vpop.f32.mrb[13].mxu0  ;;  %v502_v7 = vadd.f32 %v501_v0, %v500_v59  ;;  %v563_v16 = vmul.f32 %v802_v1, %v802_v1  ;;  %v507_v23 = vsel %vm447_vm1, %v802_v1, 0.0 }
 0x101   : > { %460 = vst.msk [vmem:[%s938_s25 + $0x60] sm:$0xff] %vm447_vm1, %v368_v6  ;;  %v503_v10 = vsel %vm447_vm1, %v368_v6, 0.0  ;;  %v561_v11 = vmul.f32 %v368_v6, %v368_v6  ;;  %v803_v12 = vpop.f32.mrb[14].mxu0  ;;  %v616_v60 = vsel %vm447_vm1, %v567_v48, 0.0  ;;  %v519_v63 = vsel %vm447_vm1, %v994_v30, 0.0 }
 0x102   : > { %v504_v13 = vadd.f32 %v503_v10, %v502_v7  ;;  %v603_v14 = vadd.f32 %v602_v8, %v601_v4  ;;  %463 = vst.msk [vmem:[%s938_s25 + $0x78] sm:$0xff] %vm447_vm1, %v803_v12  ;;  %v371_v15 = vpop.f32.mrb[15].mxu0  ;;  %v564_v24 = vmul.f32 %v803_v12, %v803_v12  ;;  %v608_v35 = vsel %vm447_vm1, %v563_v16, 0.0 }
 0x103   : > { %v604_v17 = vsel %vm447_vm1, %v561_v11, 0.0  ;;  %461 = vst.msk [vmem:[%s938_s25 + $0x68] sm:$0xff] %vm447_vm1, %v371_v15  ;;  %v505_v18 = vsel %vm447_vm1, %v371_v15, 0.0  ;;  %v562_v19 = vmul.f32 %v371_v15, %v371_v15  ;;  %v1059_v22 = vpop.f32.mrb[12].mxu1  ;;  %v509_v36 = vsel %vm447_vm1, %v803_v12, 0.0 }
 0x104   : > { %v605_v20 = vadd.f32 %v604_v17, %v603_v14  ;;  %v506_v21 = vadd.f32 %v505_v18, %v504_v13  ;;  %478 = vst.msk [vmem:[%s938_s25 + $0xf0] sm:$0xff] %vm447_vm1, %v1059_v22  ;;  %v1068_v28 = vpop.f32.mrb[13].mxu1  ;;  %v610_v2 = vsel %vm447_vm1, %v564_v24, 0.0  ;;  %v618_v1 = vsel %vm447_vm1, %v568_v53, 0.0 }
 0x105   : > { %v606_v25 = vsel %vm447_vm1, %v562_v19, 0.0  ;;  %476 = vst.msk [vmem:[%s938_s25 + $0xe0] sm:$0xff] %vm447_vm1, %v1068_v28  ;;  %v819_v34 = vpop.f32.mrb[14].mxu1  ;;  %v620_v4 = vsel %vm447_vm1, %v569_v56, 0.0  ;;  %v570_v6 = vmul.f32 %v1006_v37, %v1006_v37  ;;  %v571_v10 = vmul.f32 %v987_v26, %v987_v26 }
 0x106   : > { %v508_v29 = vadd.f32 %v507_v23, %v506_v21  ;;  %v607_v31 = vadd.f32 %v606_v25, %v605_v20  ;;  %479 = vst.msk [vmem:[%s938_s25 + $0xf8] sm:$0xff] %vm447_vm1, %v819_v34  ;;  %v1080_v38 = vsel %vm447_vm1, %v819_v34, 0.0  ;;  %v580_v39 = vmul.f32 %v819_v34, %v819_v34  ;;  %v1082_v40 = vpop.f32.mrb[15].mxu1 }
 0x107   : > { %477 = vst.msk [vmem:[%s938_s25 + $0xe8] sm:$0xff] %vm447_vm1, %v1082_v40  ;;  %v523_v30 = vsel %vm447_vm1, %v987_v26, 0.0  ;;  %v572_v13 = vmul.f32 %v999_v33, %v999_v33  ;;  %v622_v14 = vsel %vm447_vm1, %v570_v6, 0.0  ;;  %v573_v15 = vmul.f32 %v1030_v58, %v1030_v58 }
 0x108   : > { %v609_v41 = vadd.f32 %v608_v35, %v607_v31  ;;  %v510_v42 = vadd.f32 %v509_v36, %v508_v29  ;;  %v1092_v45 = vsel %vm447_vm1, %v580_v39, 0.0  ;;  %v624_v18 = vsel %vm447_vm1, %v571_v10, 0.0 }
 0x109   : > { %v525_v37 = vsel %vm447_vm1, %v999_v33, 0.0  ;;  %v527_v19 = vsel %vm447_vm1, %v1030_v58, 0.0  ;;  %v626_v21 = vsel %vm447_vm1, %v572_v13, 0.0  ;;  %v628_v23 = vsel %vm447_vm1, %v573_v15, 0.0 }
 0x10a   : > { %v512_v46 = vadd.f32 %v511_v32, %v510_v42  ;;  %v611_v47 = vadd.f32 %v610_v2, %v609_v41  ;;  %v574_v24 = vmul.f32 %v1042_v3, %v1042_v3  ;;  %v575_v29 = vmul.f32 %v1023_v54, %v1023_v54 }
 0x10b   : > { %v529_v33 = vsel %vm447_vm1, %v1042_v3, 0.0  ;;  %v531_v58 = vsel %vm447_vm1, %v1023_v54, 0.0  ;;  %v576_v34 = vmul.f32 %v1035_v62, %v1035_v62  ;;  %v577_v36 = vmul.f32 %v1068_v28, %v1068_v28 }
 0x10c   : > { %v613_v50 = vadd.f32 %v612_v43, %v611_v47  ;;  %v514_v51 = vadd.f32 %v513_v49, %v512_v46  ;;  %v630_v35 = vsel %vm447_vm1, %v574_v24, 0.0  ;;  %v632_v42 = vsel %vm447_vm1, %v575_v29, 0.0 }
 0x10d   : > { %v533_v3 = vsel %vm447_vm1, %v1035_v62, 0.0  ;;  %v535_v2 = vsel %vm447_vm1, %v1068_v28, 0.0  ;;  %v634_v44 = vsel %vm447_vm1, %v576_v34, 0.0  ;;  %v636_v46 = vsel %vm447_vm1, %v577_v36, 0.0 }
 0x10e   : > { %v516_v57 = vadd.f32 %v515_v52, %v514_v51  ;;  %v615_v59 = vadd.f32 %v614_v55, %v613_v50  ;;  %v578_v47 = vmul.f32 %v1082_v40, %v1082_v40  ;;  %v579_v50 = vmul.f32 %v1059_v22, %v1059_v22 }
 0x10f   : > { %v537_v62 = vsel %vm447_vm1, %v1082_v40, 0.0  ;;  %v539_v52 = vsel %vm447_vm1, %v1059_v22, 0.0 }
 0x110   : > { %v617_v0 = vadd.f32 %v616_v60, %v615_v59  ;;  %v518_v61 = vadd.f32 %v517_v9, %v516_v57  ;;  %v638_v53 = vsel %vm447_vm1, %v578_v47, 0.0  ;;  %v640_v57 = vsel %vm447_vm1, %v579_v50, 0.0 }
 0x112   : > { %v520_v7 = vadd.f32 %v519_v63, %v518_v61  ;;  %v619_v8 = vadd.f32 %v618_v1, %v617_v0 }
 0x114   : > { %v621_v11 = vadd.f32 %v620_v4, %v619_v8  ;;  %v522_v12 = vadd.f32 %v521_v5, %v520_v7 }
 0x116   : > { %v524_v16 = vadd.f32 %v523_v30, %v522_v12  ;;  %v623_v17 = vadd.f32 %v622_v14, %v621_v11 }
 0x118   : > { %v625_v20 = vadd.f32 %v624_v18, %v623_v17  ;;  %v526_v26 = vadd.f32 %v525_v37, %v524_v16 }
 0x11a   : > { %v528_v25 = vadd.f32 %v527_v19, %v526_v26  ;;  %v627_v27 = vadd.f32 %v626_v21, %v625_v20 }
 0x11c   : > { %v629_v31 = vadd.f32 %v628_v23, %v627_v27  ;;  %v530_v32 = vadd.f32 %v529_v33, %v528_v25 }
 0x11e   : > { %v532_v39 = vadd.f32 %v531_v58, %v530_v32  ;;  %v631_v41 = vadd.f32 %v630_v35, %v629_v31 }
 0x120   : > { %v633_v43 = vadd.f32 %v632_v42, %v631_v41  ;;  %v534_v54 = vadd.f32 %v533_v3, %v532_v39 }
 0x122   : > { %v536_v48 = vadd.f32 %v535_v2, %v534_v54  ;;  %v635_v49 = vadd.f32 %v634_v44, %v633_v43 }
 0x124   : > { %v637_v51 = vadd.f32 %v636_v46, %v635_v49  ;;  %v538_v28 = vadd.f32 %v537_v62, %v536_v48 }
 0x126   : > { %v540_v55 = vadd.f32 %v539_v52, %v538_v28  ;;  %v639_v56 = vadd.f32 %v638_v53, %v637_v51 }
 0x128   : > { %v542_v59 = vadd.f32 %v1080_v38, %v540_v55  ;;  %v641_v60 = vadd.f32 %v640_v57, %v639_v56 }
 0x12a   : > { %v543_v9 = vrot.slane %v542_v59, 4  ;;  %v643_v63 = vadd.f32 %v1092_v45, %v641_v60 }
 0x12c   : > { %v544_v40 = vadd.f32 %v543_v9, %v542_v59  ;;  %v644_v0 = vrot.slane %v643_v63, 4 }
 0x12e   : > { %v545_v61 = vrot.slane %v544_v40, 2  ;;  %v645_v1 = vadd.f32 %v644_v0, %v643_v63 }
 0x130   : > { %v546_v4 = vadd.f32 %v545_v61, %v544_v40  ;;  %v646_v22 = vrot.slane %v645_v1, 2 }
 0x132   : > { %v547_v6 = vrot.slane %v546_v4, 1  ;;  %v647_v7 = vadd.f32 %v646_v22, %v645_v1 }
 0x134   : > { %v648_v8 = vrot.slane %v647_v7, 1  ;;  %v548_v38 = vadd.f32 %v547_v6, %v546_v4 }
 0x136   : > { %v649_v10 = vadd.f32 %v648_v8, %v647_v7 }
 0x138   : > { %v651_v45 = vsel %vm650_vm2, %v548_v38, %v649_v10 }
 0x139   : > { %653 = vst.msk [vmem:[%s184_s29] sm:$0x3] %vm652_vm3, %v651_v45 }
 0x13a PF: > { %s14_s12 = sadd.s32 1, %s836_s12  }
 0x13b   : > { %p11_p5 = scmp.ge.s32.totalorder %s14_s12, 4  }
 0x13d   :  { %13 = sbr.rel (!%p11_p5) target bundleno = 1 (0x1), region = 70 }

// kernel: identity_block_nchw.6
= control target key start
LH: loop header
LB: loop body
LE: loop exit
PB: predicated region body
PF: predicated region fallthrough
CT: control target
= control target key end

     0   :  { %s1039_s18 = smov 0   ;;  %s1397_s0 = inlined_call_operand.vmem [shape: f32[512,8], index: 0, kind: input, shape index: {}]   ;;  %s1398_s1 = inlined_call_operand.vmem [shape: f32[1,8], index: 1, kind: input, shape index: {}]   ;;  %s1399_s2 = inlined_call_operand.vmem [shape: f32[1,8], index: 2, kind: input, shape index: {}]   ;;  %s1400_s3 = inlined_call_operand.vmem [shape: f32[8,16], index: 3, kind: input, shape index: {}]   ;;  %s1401_s4 = inlined_call_operand.vmem [shape: f32[512,16], index: 4, kind: output, shape index: {0}]   ;;  %s1402_s5 = inlined_call_operand.vmem [shape: f32[2,2,16], index: 5, kind: output, shape index: {1}]  }
   0x1 LB: > { %s1045_s19 = sadd.s32 4294967295, %s1007_s18   ;;  %p912_p0 = scmp.ge.s32.totalorder %s1007_s18, 1  ;;  %s1007_s18 = sphi %s1039_s18, %s16_s18  }
   0x2   : > { %p191_p1 = scmp.lt.s32.totalorder %s1007_s18, 3 }
   0x4   : > { %p192_p2 = pnand %p912_p0, %p191_p1 }
   0x5   : > { %v398_v0 = vld [vmem:[%s1400_s3] sm:$0xff] (!%p192_p2)  ;;  %vm449_vm0 = vcmask (!%p192_p2), 1043456   ;;  %s913_s22 = sshll.u32 (!%p192_p2), %s1045_s19, 5  ;;  %vm400_vm1 = vcmask (!%p192_p2), 64512   ;;  %vm614_vm2 = vcmask (!%p192_p2), 130048   ;;  %p235_p4 = scmp.lt.s32.totalorder (!%p192_p2), %s1045_s19, 1 }
   0x6   : > { %195 = sbr.rel (%p192_p2) target bundleno = 320 (0x140), region = 36  ;;  %v399_v1 = vpack.c.bf16 (!%p192_p2), %v398_v0, %v398_v0  ;;  %p224_p3 = scmp.lt.s32.totalorder (!%p192_p2), %s913_s22, 63  ;;  %v1059_v3 = vld [vmem:[%s1398_s1] ss:$0 sm:$0xff] (!%p192_p2)  ;;  %vm817_vm3 = vcmask (!%p192_p2), 1040384   ;;  %vm819_vm4 = vcmask (!%p192_p2), 123904  }
   0x7   : > { %v1071_v4 = vld [vmem:[%s1399_s2] ss:$0 sm:$0xff] (!%p192_p2) }
   0x8   : > { %991 = vmatprep.subr.msk.bf16.mxu0 (!%p192_p2), %vm449_vm0, %v399_v1  ;;  %v451_v2 = vsel (!%p192_p2), %vm449_vm0, %v399_v1, 0  ;;  %992 = vmatprep.subr.msk.bf16.mxu1 (!%p192_p2), %vm449_vm0, %v399_v1 }
   0x9   : > { %956 = vmatpush3.bf16.msra.mxu0 (!%p192_p2), %v451_v2  ;;  %990 = vmatpush3.bf16.msra.mxu1 (!%p192_p2), %v451_v2 }
   0xd   : > { %s1404_s22 = smov (!%p224_p3, %s913_s22), 63  ;;  %s1406_s19 = smov (!%p235_p4, %s1045_s19), 1 }
   0xe   : > { %s914_s23 = sshll.u32 %s1404_s22, 3  ;;  %s917_s9 = sshll.u32 %s1406_s19, 1 }
   0xf   : > { %s1066_s28 = scalar_lea.vmem %s1397_s0, %s914_s23  ;;  %s1193_s8 = scalar_lea.vmem %s1401_s4, %s914_s23 }
  0x10   : > { %v240_v5 = vld [vmem:[%s1066_s28] sm:$0xff]  ;;  %v241_v6 = vld [vmem:[%s1066_s28 + $0x8] sm:$0xff]  ;;  %v242_v7 = vld [vmem:[%s1066_s28 + $0x10] sm:$0xff]  ;;  %s238_s12 = scalar_lea.vmem %s1402_s5, %s917_s9 }
  0x11   : > { %v279_v8 = vmul.f32 %v1059_v3, %v240_v5  ;;  %v280_v9 = vmul.f32 %v1059_v3, %v241_v6  ;;  %v243_v10 = vld [vmem:[%s1066_s28 + $0x18] sm:$0xff]  ;;  %v281_v11 = vmul.f32 %v1059_v3, %v242_v7  ;;  %v244_v12 = vld [vmem:[%s1066_s28 + $0x20] sm:$0xff]  ;;  %v245_v13 = vld [vmem:[%s1066_s28 + $0x28] sm:$0xff] }
  0x12   : > { %v282_v14 = vmul.f32 %v1059_v3, %v243_v10  ;;  %v283_v15 = vmul.f32 %v1059_v3, %v244_v12  ;;  %v284_v16 = vmul.f32 %v1059_v3, %v245_v13  ;;  %v246_v17 = vld [vmem:[%s1066_s28 + $0x30] sm:$0xff]  ;;  %v247_v18 = vld [vmem:[%s1066_s28 + $0x38] sm:$0xff]  ;;  %v248_v27 = vld [vmem:[%s1066_s28 + $0x40] sm:$0xff] }
  0x13   : > { %v318_v19 = vadd.f32 %v1071_v4, %v279_v8  ;;  %v319_v20 = vadd.f32 %v1071_v4, %v280_v9  ;;  %v320_v21 = vadd.f32 %v1071_v4, %v281_v11  ;;  %v285_v22 = vmul.f32 %v1059_v3, %v246_v17  ;;  %v249_v28 = vld [vmem:[%s1066_s28 + $0x48] sm:$0xff]  ;;  %v250_v33 = vld [vmem:[%s1066_s28 + $0x50] sm:$0xff]  ;;  %v251_v38 = vld [vmem:[%s1066_s28 + $0x58] sm:$0xff] }
  0x14   : > { %v321_v23 = vadd.f32 %v1071_v4, %v282_v14  ;;  %v322_v24 = vadd.f32 %v1071_v4, %v283_v15  ;;  %v323_v25 = vadd.f32 %v1071_v4, %v284_v16  ;;  %v286_v26 = vmul.f32 %v1059_v3, %v247_v18  ;;  %v252_v39 = vld [vmem:[%s1066_s28 + $0x60] sm:$0xff]  ;;  %v253_v44 = vld [vmem:[%s1066_s28 + $0x68] sm:$0xff]  ;;  %v254_v45 = vld [vmem:[%s1066_s28 + $0x70] sm:$0xff] }
  0x15   : > { %v350_v29 = vmax.f32 %v318_v19, 0.0  ;;  %v351_v30 = vmax.f32 %v319_v20, 0.0  ;;  %v352_v31 = vmax.f32 %v320_v21, 0.0  ;;  %v324_v32 = vadd.f32 %v1071_v4, %v285_v22  ;;  %v255_v54 = vld [vmem:[%s1066_s28 + $0x78] sm:$0xff]  ;;  %v256_v58 = vld [vmem:[%s1066_s28 + $0x80] sm:$0xff]  ;;  %v257_v63 = vld [vmem:[%s1066_s28 + $0x88] sm:$0xff] }
  0x16   : > { %v353_v34 = vmax.f32 %v321_v23, 0.0  ;;  %v354_v35 = vmax.f32 %v322_v24, 0.0  ;;  %v355_v36 = vmax.f32 %v323_v25, 0.0  ;;  %v325_v37 = vadd.f32 %v1071_v4, %v286_v26  ;;  %v258_v2 = vld [vmem:[%s1066_s28 + $0x90] sm:$0xff]  ;;  %v259_v5 = vld [vmem:[%s1066_s28 + $0x98] sm:$0xff]  ;;  %v260_v9 = vld [vmem:[%s1066_s28 + $0xa0] sm:$0xff] }
  0x17   : > { %v382_v40 = vpack.c.bf16 %v351_v30, %v350_v29  ;;  %v356_v41 = vmax.f32 %v324_v32, 0.0  ;;  %v287_v42 = vmul.f32 %v1059_v3, %v248_v27  ;;  %v288_v43 = vmul.f32 %v1059_v3, %v249_v28  ;;  %v261_v14 = vld [vmem:[%s1066_s28 + $0xa8] sm:$0xff]  ;;  %v262_v19 = vld [vmem:[%s1066_s28 + $0xb0] sm:$0xff]  ;;  %v263_v24 = vld [vmem:[%s1066_s28 + $0xb8] sm:$0xff] }
  0x18   : > { %v383_v46 = vpack.c.bf16 %v353_v34, %v352_v31  ;;  %v384_v47 = vpack.c.bf16 %v355_v36, %v354_v35  ;;  %v357_v48 = vmax.f32 %v325_v37, 0.0  ;;  %v289_v49 = vmul.f32 %v1059_v3, %v250_v33  ;;  %v264_v29 = vld [vmem:[%s1066_s28 + $0xc0] sm:$0xff]  ;;  %v265_v34 = vld [vmem:[%s1066_s28 + $0xc8] sm:$0xff] }
  0x19   : > { %957 = vmatprep.mubr.msk.bf16.mxu0 %vm400_vm1, %v382_v40  ;;  %v326_v50 = vadd.f32 %v1071_v4, %v287_v42  ;;  %v327_v51 = vadd.f32 %v1071_v4, %v288_v43  ;;  %v290_v52 = vmul.f32 %v1059_v3, %v251_v38  ;;  %v291_v53 = vmul.f32 %v1059_v3, %v252_v39  ;;  %v266_v39 = vld [vmem:[%s1066_s28 + $0xd0] sm:$0xff] }
  0x1a   : > { %958 = vmatmul.mubr.msk.bf16.vlgmr.msra.gmra.mrb[0].mxu0 %vm400_vm1, %v383_v46  ;;  %v328_v55 = vadd.f32 %v1071_v4, %v289_v49  ;;  %v292_v56 = vmul.f32 %v1059_v3, %v253_v44  ;;  %v293_v57 = vmul.f32 %v1059_v3, %v254_v45  ;;  %v294_v1 = vmul.f32 %v1059_v3, %v255_v54  ;;  %v267_v44 = vld [vmem:[%s1066_s28 + $0xd8] sm:$0xff]  ;;  %v268_v49 = vld [vmem:[%s1066_s28 + $0xe0] sm:$0xff] }
  0x1b   : > { %961 = vmatprep.mubr.msk.bf16.mxu0 %vm400_vm1, %v384_v47  ;;  %v358_v59 = vmax.f32 %v326_v50, 0.0  ;;  %v359_v60 = vmax.f32 %v327_v51, 0.0  ;;  %v329_v61 = vadd.f32 %v1071_v4, %v290_v52  ;;  %v330_v62 = vadd.f32 %v1071_v4, %v291_v53  ;;  %v269_v50 = vld [vmem:[%s1066_s28 + $0xe8] sm:$0xff] }
  0x1c   : > { %v331_v0 = vadd.f32 %v1071_v4, %v292_v56  ;;  %v385_v6 = vpack.c.bf16 %v357_v48, %v356_v41  ;;  %v360_v7 = vmax.f32 %v328_v55, 0.0  ;;  %v295_v8 = vmul.f32 %v1059_v3, %v256_v58 }
  0x1d   : > { %v386_v10 = vpack.c.bf16 %v359_v60, %v358_v59  ;;  %v361_v11 = vmax.f32 %v329_v61, 0.0  ;;  %v1129_v12 = vadd.f32 %v1071_v4, %v293_v57  ;;  %v296_v13 = vmul.f32 %v1059_v3, %v257_v63 }
  0x1e   : > { %v362_v15 = vmax.f32 %v330_v62, 0.0  ;;  %v334_v16 = vadd.f32 %v1071_v4, %v295_v8  ;;  %v297_v17 = vmul.f32 %v1059_v3, %v258_v2  ;;  %v298_v18 = vmul.f32 %v1059_v3, %v259_v5 }
  0x1f   : > { %v363_v20 = vmax.f32 %v331_v0, 0.0  ;;  %v333_v21 = vadd.f32 %v1071_v4, %v294_v1  ;;  %v335_v22 = vadd.f32 %v1071_v4, %v296_v13  ;;  %v299_v23 = vmul.f32 %v1059_v3, %v260_v9  ;;  %v270_v9 = vld [vmem:[%s1066_s28 + $0xf0] sm:$0xff] }
  0x20   : > { %v366_v25 = vmax.f32 %v334_v16, 0.0  ;;  %v336_v26 = vadd.f32 %v1071_v4, %v297_v17  ;;  %v337_v27 = vadd.f32 %v1071_v4, %v298_v18  ;;  %v300_v28 = vmul.f32 %v1059_v3, %v261_v14 }
  0x21   : > { %v387_v30 = vpack.c.bf16 %v361_v11, %v360_v7  ;;  %v367_v31 = vmax.f32 %v335_v22, 0.0  ;;  %v338_v32 = vadd.f32 %v1071_v4, %v299_v23  ;;  %v301_v33 = vmul.f32 %v1059_v3, %v262_v19 }
  0x22   : > { %962 = vmatmul.mubr.msk.bf16.gmra.mrb[4].mxu0 %vm400_vm1, %v385_v6  ;;  %v368_v35 = vmax.f32 %v336_v26, 0.0  ;;  %v369_v36 = vmax.f32 %v337_v27, 0.0  ;;  %v339_v37 = vadd.f32 %v1071_v4, %v300_v28  ;;  %v302_v38 = vmul.f32 %v1059_v3, %v263_v24 }
  0x23   : > { %965 = vmatprep.mubr.msk.bf16.mxu0 %vm400_vm1, %v386_v10  ;;  %v390_v40 = vpack.c.bf16 %v367_v31, %v366_v25  ;;  %v370_v41 = vmax.f32 %v338_v32, 0.0  ;;  %v340_v42 = vadd.f32 %v1071_v4, %v301_v33  ;;  %v303_v43 = vmul.f32 %v1059_v3, %v264_v29  ;;  %v271_v10 = vld [vmem:[%s1066_s28 + $0xf8] sm:$0xff] }
  0x24   : > { %v391_v45 = vpack.c.bf16 %v369_v36, %v368_v35  ;;  %v371_v46 = vmax.f32 %v339_v37, 0.0  ;;  %v341_v47 = vadd.f32 %v1071_v4, %v302_v38  ;;  %v304_v48 = vmul.f32 %v1059_v3, %v265_v34 }
  0x25   : > { %v388_v51 = vpack.c.bf16 %v363_v20, %v362_v15  ;;  %973 = vmatprep.mubr.msk.bf16.mxu1 %vm400_vm1, %v390_v40  ;;  %v372_v52 = vmax.f32 %v340_v42, 0.0  ;;  %v342_v53 = vadd.f32 %v1071_v4, %v303_v43  ;;  %v305_v54 = vmul.f32 %v1059_v3, %v266_v39 }
  0x26   : > { %974 = vmatmul.mubr.msk.bf16.vlgmr.msra.gmra.mrb[0].mxu1 %vm400_vm1, %v391_v45  ;;  %v392_v55 = vpack.c.bf16 %v371_v46, %v370_v41  ;;  %v373_v56 = vmax.f32 %v341_v47, 0.0  ;;  %v343_v57 = vadd.f32 %v1071_v4, %v304_v48  ;;  %v306_v58 = vmul.f32 %v1059_v3, %v267_v44 }
  0x27   : > { %v374_v59 = vmax.f32 %v342_v53, 0.0  ;;  %v307_v60 = vmul.f32 %v1059_v3, %v268_v49  ;;  %v308_v61 = vmul.f32 %v1059_v3, %v269_v50  ;;  %v364_v63 = vmax.f32 %v1129_v12, 0.0 }
  0x28   : > { %977 = vmatprep.mubr.msk.bf16.mxu1 %vm400_vm1, %v392_v55  ;;  %v375_v62 = vmax.f32 %v343_v57, 0.0  ;;  %v365_v0 = vmax.f32 %v333_v21, 0.0  ;;  %v393_v1 = vpack.c.bf16 %v373_v56, %v372_v52  ;;  %v344_v2 = vadd.f32 %v1071_v4, %v305_v54 }
  0x29   : > { %v345_v5 = vadd.f32 %v1071_v4, %v306_v58  ;;  %v346_v7 = vadd.f32 %v1071_v4, %v307_v60  ;;  %v347_v8 = vadd.f32 %v1071_v4, %v308_v61  ;;  %v309_v14 = vmul.f32 %v1059_v3, %v270_v9 }
  0x2a   : > { %966 = vmatmul.mubr.msk.bf16.gmra.mrb[8].mxu0 %vm400_vm1, %v387_v30  ;;  %v394_v6 = vpack.c.bf16 %v375_v62, %v374_v59  ;;  %v389_v11 = vpack.c.bf16 %v365_v0, %v364_v63  ;;  %v376_v13 = vmax.f32 %v344_v2, 0.0  ;;  %v310_v15 = vmul.f32 %v1059_v3, %v271_v10 }
  0x2b   : > { %969 = vmatprep.mubr.msk.bf16.mxu0 %vm400_vm1, %v388_v51  ;;  %v377_v12 = vmax.f32 %v345_v5, 0.0  ;;  %v378_v16 = vmax.f32 %v346_v7, 0.0  ;;  %v379_v17 = vmax.f32 %v347_v8, 0.0  ;;  %v348_v19 = vadd.f32 %v1071_v4, %v309_v14 }
  0x2c   : > { %v349_v20 = vadd.f32 %v1071_v4, %v310_v15 }
  0x2d   : > { %v395_v18 = vpack.c.bf16 %v377_v12, %v376_v13  ;;  %v396_v21 = vpack.c.bf16 %v379_v17, %v378_v16  ;;  %v380_v22 = vmax.f32 %v348_v19, 0.0 }
  0x2e   : > { %978 = vmatmul.mubr.msk.bf16.gmra.mrb[4].mxu1 %vm400_vm1, %v393_v1  ;;  %v381_v23 = vmax.f32 %v349_v20, 0.0 }
  0x2f   : > { %981 = vmatprep.mubr.msk.bf16.mxu1 %vm400_vm1, %v394_v6 }
  0x30   : > { %v397_v24 = vpack.c.bf16 %v381_v23, %v380_v22 }
  0x32   : > { %970 = vmatmul.mubr.msk.bf16.gmra.mrb[12].mxu0 %vm400_vm1, %v389_v11 }
  0x36   : > { %982 = vmatmul.mubr.msk.bf16.gmra.mrb[8].mxu1 %vm400_vm1, %v395_v18 }
  0x37   : > { %985 = vmatprep.mubr.msk.bf16.mxu1 %vm400_vm1, %v396_v21 }
  0x3e   : > { %986 = vmatmul.mubr.msk.bf16.gmra.mrb[12].mxu1 %vm400_vm1, %v397_v24 }
  0xed   : > { %v959_v3 = vpop.f32.mrb[0].mxu0 }
  0xee   : > { %617 = vst.msk [vmem:[%s1193_s8 + $0x10] sm:$0xff] %vm614_vm2, %v959_v3  ;;  %v487_v4 = vpop.f32.mrb[1].mxu0  ;;  %v718_v28 = vmul.f32 %v959_v3, %v959_v3  ;;  %v650_v33 = vsel %vm614_vm2, %v959_v3, 0.0 }
  0xef   : > { %615 = vst.msk [vmem:[%s1193_s8] sm:$0xff] %vm614_vm2, %v487_v4  ;;  %v716_v25 = vmul.f32 %v487_v4, %v487_v4  ;;  %v960_v26 = vpop.f32.mrb[2].mxu0  ;;  %v647_v29 = vsel %vm614_vm2, %v487_v4, 0.0 }
  0xf0   : > { %618 = vst.msk [vmem:[%s1193_s8 + $0x18] sm:$0xff] %vm614_vm2, %v960_v26  ;;  %v490_v27 = vpop.f32.mrb[3].mxu0  ;;  %v719_v35 = vmul.f32 %v960_v26, %v960_v26  ;;  %v751_v39 = vsel %vm614_vm2, %v718_v28, 0.0  ;;  %v652_v40 = vsel %vm614_vm2, %v960_v26, 0.0 }
  0xf1   : > { %616 = vst.msk [vmem:[%s1193_s8 + $0x8] sm:$0xff] %vm614_vm2, %v490_v27  ;;  %v648_v30 = vsel %vm614_vm2, %v490_v27, 0.0  ;;  %v717_v31 = vmul.f32 %v490_v27, %v490_v27  ;;  %v748_v34 = vsel %vm614_vm2, %v716_v25, 0.0 }
  0xf2   : > { %v649_v32 = vadd.f32 %v648_v30, %v647_v29  ;;  %v753_v45 = vsel %vm614_vm2, %v719_v35, 0.0 }
  0xf3   : > { %v749_v36 = vsel %vm614_vm2, %v717_v31, 0.0 }
  0xf4   : > { %v651_v37 = vadd.f32 %v650_v33, %v649_v32  ;;  %v750_v38 = vadd.f32 %v749_v36, %v748_v34 }
  0xf5   : > { %v963_v41 = vpop.f32.mrb[4].mxu0 }
  0xf6   : > { %v752_v42 = vadd.f32 %v751_v39, %v750_v38  ;;  %621 = vst.msk [vmem:[%s1193_s8 + $0x30] sm:$0xff] %vm614_vm2, %v963_v41  ;;  %v503_v43 = vpop.f32.mrb[5].mxu0  ;;  %v653_v44 = vadd.f32 %v652_v40, %v651_v37  ;;  %v722_v52 = vmul.f32 %v963_v41, %v963_v41  ;;  %v658_v59 = vsel %vm614_vm2, %v963_v41, 0.0 }
  0xf7   : > { %619 = vst.msk [vmem:[%s1193_s8 + $0x20] sm:$0xff] %vm614_vm2, %v503_v43  ;;  %v654_v46 = vsel %vm614_vm2, %v503_v43, 0.0  ;;  %v720_v47 = vmul.f32 %v503_v43, %v503_v43  ;;  %v964_v48 = vpop.f32.mrb[6].mxu0 }
  0xf8   : > { %v655_v49 = vadd.f32 %v654_v46, %v653_v44  ;;  %v754_v50 = vadd.f32 %v753_v45, %v752_v42  ;;  %622 = vst.msk [vmem:[%s1193_s8 + $0x38] sm:$0xff] %vm614_vm2, %v964_v48  ;;  %v506_v51 = vpop.f32.mrb[7].mxu0  ;;  %v723_v60 = vmul.f32 %v964_v48, %v964_v48  ;;  %v759_v2 = vsel %vm614_vm2, %v722_v52, 0.0 }
  0xf9   : > { %v755_v53 = vsel %vm614_vm2, %v720_v47, 0.0  ;;  %620 = vst.msk [vmem:[%s1193_s8 + $0x28] sm:$0xff] %vm614_vm2, %v506_v51  ;;  %v656_v54 = vsel %vm614_vm2, %v506_v51, 0.0  ;;  %v721_v55 = vmul.f32 %v506_v51, %v506_v51  ;;  %v1222_v58 = vpop.f32.mrb[0].mxu1  ;;  %v660_v5 = vsel %vm614_vm2, %v964_v48, 0.0 }
  0xfa   : > { %v756_v56 = vadd.f32 %v755_v53, %v754_v50  ;;  %v657_v57 = vadd.f32 %v656_v54, %v655_v49  ;;  %633 = vst.msk [vmem:[%s1193_s8 + $0x90] sm:$0xff] %vm614_vm2, %v1222_v58  ;;  %v1229_v62 = vpop.f32.mrb[1].mxu1  ;;  %v761_v11 = vsel %vm614_vm2, %v723_v60, 0.0 }
  0xfb   : > { %v757_v61 = vsel %vm614_vm2, %v721_v55, 0.0  ;;  %631 = vst.msk [vmem:[%s1193_s8 + $0x80] sm:$0xff] %vm614_vm2, %v1229_v62  ;;  %v1234_v1 = vpop.f32.mrb[2].mxu1  ;;  %v732_v54 = vmul.f32 %v1229_v62, %v1229_v62 }
  0xfc   : > { %v659_v63 = vadd.f32 %v658_v59, %v657_v57  ;;  %v758_v0 = vadd.f32 %v757_v61, %v756_v56  ;;  %634 = vst.msk [vmem:[%s1193_s8 + $0x98] sm:$0xff] %vm614_vm2, %v1234_v1  ;;  %v1241_v7 = vpop.f32.mrb[3].mxu1 }
  0xfd   : > { %v967_v6 = vpop.f32.mrb[8].mxu0  ;;  %632 = vst.msk [vmem:[%s1193_s8 + $0x88] sm:$0xff] %vm614_vm2, %v1241_v7 }
  0xfe   : > { %v760_v8 = vadd.f32 %v759_v2, %v758_v0  ;;  %625 = vst.msk [vmem:[%s1193_s8 + $0x50] sm:$0xff] %vm614_vm2, %v967_v6  ;;  %v519_v9 = vpop.f32.mrb[9].mxu0  ;;  %v661_v10 = vadd.f32 %v660_v5, %v659_v63  ;;  %v726_v18 = vmul.f32 %v967_v6, %v967_v6  ;;  %v666_v3 = vsel %vm614_vm2, %v967_v6, 0.0 }
  0xff   : > { %623 = vst.msk [vmem:[%s1193_s8 + $0x40] sm:$0xff] %vm614_vm2, %v519_v9  ;;  %v662_v13 = vsel %vm614_vm2, %v519_v9, 0.0  ;;  %v724_v12 = vmul.f32 %v519_v9, %v519_v9  ;;  %v968_v14 = vpop.f32.mrb[10].mxu0  ;;  %v678_v63 = vsel %vm614_vm2, %v1229_v62, 0.0  ;;  %v733_v9 = vmul.f32 %v1241_v7, %v1241_v7 }
 0x100   : > { %v663_v15 = vadd.f32 %v662_v13, %v661_v10  ;;  %v762_v16 = vadd.f32 %v761_v11, %v760_v8  ;;  %626 = vst.msk [vmem:[%s1193_s8 + $0x58] sm:$0xff] %vm614_vm2, %v968_v14  ;;  %v522_v17 = vpop.f32.mrb[11].mxu0  ;;  %v727_v4 = vmul.f32 %v968_v14, %v968_v14  ;;  %v767_v30 = vsel %vm614_vm2, %v726_v18, 0.0 }
 0x101   : > { %v763_v19 = vsel %vm614_vm2, %v724_v12, 0.0  ;;  %624 = vst.msk [vmem:[%s1193_s8 + $0x48] sm:$0xff] %vm614_vm2, %v522_v17  ;;  %v664_v20 = vsel %vm614_vm2, %v522_v17, 0.0  ;;  %v725_v21 = vmul.f32 %v522_v17, %v522_v17  ;;  %v1258_v24 = vpop.f32.mrb[4].mxu1  ;;  %v668_v31 = vsel %vm614_vm2, %v968_v14, 0.0 }
 0x102   : > { %v764_v22 = vadd.f32 %v763_v19, %v762_v16  ;;  %v665_v23 = vadd.f32 %v664_v20, %v663_v15  ;;  %637 = vst.msk [vmem:[%s1193_s8 + $0xb0] sm:$0xff] %vm614_vm2, %v1258_v24  ;;  %v1265_v26 = vpop.f32.mrb[5].mxu1  ;;  %v769_v37 = vsel %vm614_vm2, %v727_v4, 0.0  ;;  %v779_v8 = vsel %vm614_vm2, %v732_v54, 0.0 }
 0x103   : > { %v765_v25 = vsel %vm614_vm2, %v725_v21, 0.0  ;;  %635 = vst.msk [vmem:[%s1193_s8 + $0xa0] sm:$0xff] %vm614_vm2, %v1265_v26  ;;  %v1270_v29 = vpop.f32.mrb[6].mxu1  ;;  %v734_v10 = vmul.f32 %v1222_v58, %v1222_v58  ;;  %v680_v13 = vsel %vm614_vm2, %v1241_v7, 0.0  ;;  %v682_v16 = vsel %vm614_vm2, %v1222_v58, 0.0 }
 0x104   : > { %v667_v27 = vadd.f32 %v666_v3, %v665_v23  ;;  %v766_v28 = vadd.f32 %v765_v25, %v764_v22  ;;  %638 = vst.msk [vmem:[%s1193_s8 + $0xb8] sm:$0xff] %vm614_vm2, %v1270_v29  ;;  %v1277_v33 = vpop.f32.mrb[7].mxu1  ;;  %v735_v17 = vmul.f32 %v1234_v1, %v1234_v1  ;;  %v781_v18 = vsel %vm614_vm2, %v733_v9, 0.0 }
 0x105   : > { %v971_v32 = vpop.f32.mrb[12].mxu0  ;;  %636 = vst.msk [vmem:[%s1193_s8 + $0xa8] sm:$0xff] %vm614_vm2, %v1277_v33  ;;  %v736_v19 = vmul.f32 %v1265_v26, %v1265_v26  ;;  %v783_v20 = vsel %vm614_vm2, %v734_v10, 0.0  ;;  %v684_v23 = vsel %vm614_vm2, %v1234_v1, 0.0  ;;  %v686_v3 = vsel %vm614_vm2, %v1265_v26, 0.0 }
 0x106   : > { %v768_v34 = vadd.f32 %v767_v30, %v766_v28  ;;  %629 = vst.msk [vmem:[%s1193_s8 + $0x70] sm:$0xff] %vm614_vm2, %v971_v32  ;;  %v535_v35 = vpop.f32.mrb[13].mxu0  ;;  %v669_v36 = vadd.f32 %v668_v31, %v667_v27  ;;  %v730_v44 = vmul.f32 %v971_v32, %v971_v32  ;;  %v674_v51 = vsel %vm614_vm2, %v971_v32, 0.0 }
 0x107   : > { %627 = vst.msk [vmem:[%s1193_s8 + $0x60] sm:$0xff] %vm614_vm2, %v535_v35  ;;  %v670_v38 = vsel %vm614_vm2, %v535_v35, 0.0  ;;  %v728_v39 = vmul.f32 %v535_v35, %v535_v35  ;;  %v972_v40 = vpop.f32.mrb[14].mxu0  ;;  %v785_v31 = vsel %vm614_vm2, %v735_v17, 0.0  ;;  %v787_v32 = vsel %vm614_vm2, %v736_v19, 0.0 }
 0x108   : > { %v671_v41 = vadd.f32 %v670_v38, %v669_v36  ;;  %v770_v42 = vadd.f32 %v769_v37, %v768_v34  ;;  %630 = vst.msk [vmem:[%s1193_s8 + $0x78] sm:$0xff] %vm614_vm2, %v972_v40  ;;  %v538_v43 = vpop.f32.mrb[15].mxu0  ;;  %v731_v52 = vmul.f32 %v972_v40, %v972_v40  ;;  %v775_v60 = vsel %vm614_vm2, %v730_v44, 0.0 }
 0x109   : > { %v771_v45 = vsel %vm614_vm2, %v728_v39, 0.0  ;;  %628 = vst.msk [vmem:[%s1193_s8 + $0x68] sm:$0xff] %vm614_vm2, %v538_v43  ;;  %v672_v46 = vsel %vm614_vm2, %v538_v43, 0.0  ;;  %v729_v47 = vmul.f32 %v538_v43, %v538_v43  ;;  %v1294_v50 = vpop.f32.mrb[8].mxu1  ;;  %v676_v61 = vsel %vm614_vm2, %v972_v40, 0.0 }
 0x10a   : > { %v772_v48 = vadd.f32 %v771_v45, %v770_v42  ;;  %v673_v49 = vadd.f32 %v672_v46, %v671_v41  ;;  %641 = vst.msk [vmem:[%s1193_s8 + $0xd0] sm:$0xff] %vm614_vm2, %v1294_v50  ;;  %v583_v55 = vpop.f32.mrb[9].mxu1  ;;  %v777_v6 = vsel %vm614_vm2, %v731_v52, 0.0  ;;  %v737_v1 = vmul.f32 %v1277_v33, %v1277_v33 }
 0x10b   : > { %v773_v53 = vsel %vm614_vm2, %v729_v47, 0.0  ;;  %639 = vst.msk [vmem:[%s1193_s8 + $0xc0] sm:$0xff] %vm614_vm2, %v583_v55  ;;  %v1305_v59 = vpop.f32.mrb[10].mxu1  ;;  %v738_v36 = vmul.f32 %v1258_v24, %v1258_v24  ;;  %v688_v37 = vsel %vm614_vm2, %v1277_v33, 0.0  ;;  %v690_v40 = vsel %vm614_vm2, %v1258_v24, 0.0 }
 0x10c   : > { %v675_v56 = vadd.f32 %v674_v51, %v673_v49  ;;  %v774_v57 = vadd.f32 %v773_v53, %v772_v48  ;;  %642 = vst.msk [vmem:[%s1193_s8 + $0xd8] sm:$0xff] %vm614_vm2, %v1305_v59  ;;  %v586_v0 = vpop.f32.mrb[11].mxu1  ;;  %v739_v41 = vmul.f32 %v1270_v29, %v1270_v29  ;;  %v789_v42 = vsel %vm614_vm2, %v737_v1, 0.0 }
 0x10d   : > { %640 = vst.msk [vmem:[%s1193_s8 + $0xc8] sm:$0xff] %vm614_vm2, %v586_v0  ;;  %v740_v43 = vmul.f32 %v583_v55, %v583_v55  ;;  %v791_v46 = vsel %vm614_vm2, %v738_v36, 0.0  ;;  %v692_v47 = vsel %vm614_vm2, %v1270_v29, 0.0  ;;  %v694_v33 = vsel %vm614_vm2, %v583_v55, 0.0 }
 0x10e   : > { %v776_v2 = vadd.f32 %v775_v60, %v774_v57  ;;  %v677_v5 = vadd.f32 %v676_v61, %v675_v56  ;;  %v793_v51 = vsel %vm614_vm2, %v739_v41, 0.0  ;;  %v741_v52 = vmul.f32 %v586_v0, %v586_v0 }
 0x10f   : > { %v795_v24 = vsel %vm614_vm2, %v740_v43, 0.0  ;;  %v742_v56 = vmul.f32 %v1294_v50, %v1294_v50  ;;  %v696_v57 = vsel %vm614_vm2, %v586_v0, 0.0  ;;  %v698_v29 = vsel %vm614_vm2, %v1294_v50, 0.0 }
 0x110   : > { %v679_v62 = vadd.f32 %v678_v63, %v677_v5  ;;  %v778_v11 = vadd.f32 %v777_v6, %v776_v2  ;;  %v743_v55 = vmul.f32 %v1305_v59, %v1305_v59  ;;  %v797_v63 = vsel %vm614_vm2, %v741_v52, 0.0 }
 0x111   : > { %v1324_v15 = vpop.f32.mrb[12].mxu1  ;;  %v700_v9 = vsel %vm614_vm2, %v1305_v59, 0.0 }
 0x112   : > { %v780_v12 = vadd.f32 %v779_v8, %v778_v11  ;;  %v681_v14 = vadd.f32 %v680_v13, %v679_v62  ;;  %645 = vst.msk [vmem:[%s1193_s8 + $0xf0] sm:$0xff] %vm614_vm2, %v1324_v15  ;;  %v599_v7 = vpop.f32.mrb[13].mxu1  ;;  %v799_v8 = vsel %vm614_vm2, %v742_v56, 0.0  ;;  %v801_v11 = vsel %vm614_vm2, %v743_v55, 0.0 }
 0x113   : > { %643 = vst.msk [vmem:[%s1193_s8 + $0xe0] sm:$0xff] %vm614_vm2, %v599_v7  ;;  %v988_v58 = vpop.f32.mrb[14].mxu1  ;;  %v744_v2 = vmul.f32 %v599_v7, %v599_v7  ;;  %v702_v0 = vsel %vm614_vm2, %v599_v7, 0.0  ;;  %v706_v19 = vsel %vm614_vm2, %v1324_v15, 0.0 }
 0x114   : > { %v683_v21 = vadd.f32 %v682_v16, %v681_v14  ;;  %v782_v22 = vadd.f32 %v781_v18, %v780_v12  ;;  %646 = vst.msk [vmem:[%s1193_s8 + $0xf8] sm:$0xff] %vm614_vm2, %v988_v58  ;;  %v708_v4 = vsel %vm614_vm2, %v988_v58, 0.0  ;;  %v747_v25 = vmul.f32 %v988_v58, %v988_v58  ;;  %v602_v27 = vpop.f32.mrb[15].mxu1 }
 0x115   : > { %644 = vst.msk [vmem:[%s1193_s8 + $0xe8] sm:$0xff] %vm614_vm2, %v602_v27  ;;  %v803_v50 = vsel %vm614_vm2, %v744_v2, 0.0  ;;  %v745_v13 = vmul.f32 %v602_v27, %v602_v27  ;;  %v746_v16 = vmul.f32 %v1324_v15, %v1324_v15  ;;  %v704_v17 = vsel %vm614_vm2, %v602_v27, 0.0 }
 0x116   : > { %v784_v28 = vadd.f32 %v783_v20, %v782_v22  ;;  %v685_v30 = vadd.f32 %v684_v23, %v683_v21  ;;  %v809_v34 = vsel %vm614_vm2, %v747_v25, 0.0 }
 0x117   : > { %v805_v7 = vsel %vm614_vm2, %v745_v13, 0.0  ;;  %v807_v22 = vsel %vm614_vm2, %v746_v16, 0.0 }
 0x118   : > { %v687_v26 = vadd.f32 %v686_v3, %v685_v30  ;;  %v786_v35 = vadd.f32 %v785_v31, %v784_v28 }
 0x11a   : > { %v788_v38 = vadd.f32 %v787_v32, %v786_v35  ;;  %v689_v39 = vadd.f32 %v688_v37, %v687_v26 }
 0x11c   : > { %v691_v44 = vadd.f32 %v690_v40, %v689_v39  ;;  %v790_v45 = vadd.f32 %v789_v42, %v788_v38 }
 0x11e   : > { %v792_v48 = vadd.f32 %v791_v46, %v790_v45  ;;  %v693_v49 = vadd.f32 %v692_v47, %v691_v44 }
 0x120   : > { %v695_v53 = vadd.f32 %v694_v33, %v693_v49  ;;  %v794_v54 = vadd.f32 %v793_v51, %v792_v48 }
 0x122   : > { %v796_v60 = vadd.f32 %v795_v24, %v794_v54  ;;  %v697_v61 = vadd.f32 %v696_v57, %v695_v53 }
 0x124   : > { %v699_v5 = vadd.f32 %v698_v29, %v697_v61  ;;  %v798_v6 = vadd.f32 %v797_v63, %v796_v60 }
 0x126   : > { %v800_v10 = vadd.f32 %v799_v8, %v798_v6  ;;  %v701_v62 = vadd.f32 %v700_v9, %v699_v5 }
 0x128   : > { %v703_v12 = vadd.f32 %v702_v0, %v701_v62  ;;  %v802_v14 = vadd.f32 %v801_v11, %v800_v10 }
 0x12a   : > { %v804_v18 = vadd.f32 %v803_v50, %v802_v14  ;;  %v705_v59 = vadd.f32 %v704_v17, %v703_v12 }
 0x12c   : > { %v707_v20 = vadd.f32 %v706_v19, %v705_v59  ;;  %v806_v21 = vadd.f32 %v805_v7, %v804_v18 }
 0x12e   : > { %v709_v58 = vadd.f32 %v708_v4, %v707_v20  ;;  %v808_v23 = vadd.f32 %v807_v22, %v806_v21 }
 0x130   : > { %v710_v3 = vrot.slane %v709_v58, 4  ;;  %v810_v25 = vadd.f32 %v809_v34, %v808_v23 }
 0x132   : > { %v711_v28 = vadd.f32 %v710_v3, %v709_v58  ;;  %v811_v30 = vrot.slane %v810_v25, 4 }
 0x134   : > { %v712_v27 = vrot.slane %v711_v28, 2  ;;  %v812_v31 = vadd.f32 %v811_v30, %v810_v25 }
 0x136   : > { %v713_v32 = vadd.f32 %v712_v27, %v711_v28  ;;  %v813_v1 = vrot.slane %v812_v31, 2 }
 0x138   : > { %v714_v26 = vrot.slane %v713_v32, 1  ;;  %v814_v15 = vadd.f32 %v813_v1, %v812_v31 }
 0x13a   : > { %v815_v35 = vrot.slane %v814_v15, 1  ;;  %v715_v4 = vadd.f32 %v714_v26, %v713_v32 }
 0x13c   : > { %v816_v36 = vadd.f32 %v815_v35, %v814_v15 }
 0x13e   : > { %v818_v34 = vsel %vm817_vm3, %v715_v4, %v816_v36 }
 0x13f   : > { %820 = vst.msk [vmem:[%s238_s12] sm:$0x3] %vm819_vm4, %v818_v34 }
 0x140 PF: > { %s16_s18 = sadd.s32 1, %s1007_s18  }
 0x141   : > { %p13_p5 = scmp.ge.s32.totalorder %s16_s18, 4  }
 0x143   :  { %15 = sbr.rel (!%p13_p5) target bundleno = 1 (0x1), region = 78 }

// kernel: identity_block_nchw.7
= control target key start
LH: loop header
LB: loop body
LE: loop exit
PB: predicated region body
PF: predicated region fallthrough
CT: control target
= control target key end

     0   :  { %s586_s15 = smov 0   ;;  %s819_s0 = inlined_call_operand.vmem [shape: f32[512,16], index: 0, kind: input, shape index: {}]   ;;  %s820_s1 = inlined_call_operand.vmem [shape: f32[512,16], index: 1, kind: input, shape index: {}]   ;;  %s821_s2 = inlined_call_operand.vmem [shape: f32[1,16], index: 2, kind: input, shape index: {}]   ;;  %s822_s3 = inlined_call_operand.vmem [shape: f32[1,16], index: 3, kind: input, shape index: {}]   ;;  %s823_s4 = inlined_call_operand.vmem [shape: f32[512,16], index: 4, kind: output, shape index: {}]  }
   0x1 LB: > { %s530_s16 = sadd.s32 4294967295, %s559_s15   ;;  %p534_p0 = scmp.ge.s32.totalorder %s559_s15, 1  ;;  %s559_s15 = sphi %s586_s15, %s14_s15  }
   0x2   : > { %p174_p1 = scmp.lt.s32.totalorder %s559_s15, 3 }
   0x4   : > { %p175_p2 = pnand %p534_p0, %p174_p1 }
   0x5   : > { %s535_s17 = sshll.u32 (!%p175_p2), %s530_s16, 5  ;;  %v599_v0 = vld [vmem:[%s821_s2] ss:$0 sm:$0xff] (!%p175_p2)  ;;  %vm429_vm0 = vcmask (!%p175_p2), 130048  }
   0x6   : > { %178 = sbr.rel (%p175_p2) target bundleno = 55 (0x37), region = 36  ;;  %p206_p3 = scmp.lt.s32.totalorder (!%p175_p2), %s535_s17, 63  ;;  %v617_v2 = vld [vmem:[%s822_s3] ss:$0 sm:$0xff] (!%p175_p2) }
   0xd   : > { %s825_s17 = smov (!%p206_p3, %s535_s17), 63 }
   0xe   : > { %s594_s18 = sshll.u32 %s825_s17, 3 }
   0xf   : > { %s605_s23 = scalar_lea.vmem %s819_s0, %s594_s18  ;;  %s611_s26 = scalar_lea.vmem %s820_s1, %s594_s18 }
  0x10   : > { %v223_v1 = vld [vmem:[%s605_s23] sm:$0xff]  ;;  %v224_v3 = vld [vmem:[%s605_s23 + $0x8] sm:$0xff]  ;;  %v225_v7 = vld [vmem:[%s605_s23 + $0x10] sm:$0xff]  ;;  %s647_s5 = scalar_lea.vmem %s823_s4, %s594_s18 }
  0x11   : > { %v262_v4 = vmul.f32 %v599_v0, %v223_v1  ;;  %v333_v5 = vld [vmem:[%s611_s26] sm:$0xff]  ;;  %v263_v6 = vmul.f32 %v599_v0, %v224_v3  ;;  %v334_v8 = vld [vmem:[%s611_s26 + $0x8] sm:$0xff]  ;;  %v264_v9 = vmul.f32 %v599_v0, %v225_v7  ;;  %v226_v10 = vld [vmem:[%s605_s23 + $0x18] sm:$0xff] }
  0x12   : > { %v227_v11 = vld [vmem:[%s605_s23 + $0x20] sm:$0xff]  ;;  %v335_v14 = vld [vmem:[%s611_s26 + $0x10] sm:$0xff]  ;;  %v265_v15 = vmul.f32 %v599_v0, %v226_v10  ;;  %v336_v16 = vld [vmem:[%s611_s26 + $0x18] sm:$0xff] }
  0x13   : > { %v301_v12 = vadd.f32 %v617_v2, %v262_v4  ;;  %v302_v13 = vadd.f32 %v617_v2, %v263_v6  ;;  %v266_v17 = vmul.f32 %v599_v0, %v227_v11  ;;  %v228_v18 = vld [vmem:[%s605_s23 + $0x28] sm:$0xff]  ;;  %v303_v19 = vadd.f32 %v617_v2, %v264_v9  ;;  %v337_v20 = vld [vmem:[%s611_s26 + $0x20] sm:$0xff]  ;;  %v229_v22 = vld [vmem:[%s605_s23 + $0x30] sm:$0xff] }
  0x14   : > { %v267_v21 = vmul.f32 %v599_v0, %v228_v18  ;;  %v230_v23 = vld [vmem:[%s605_s23 + $0x38] sm:$0xff]  ;;  %v304_v26 = vadd.f32 %v617_v2, %v265_v15  ;;  %v338_v28 = vld [vmem:[%s611_s26 + $0x28] sm:$0xff]  ;;  %v268_v31 = vmul.f32 %v599_v0, %v229_v22  ;;  %v231_v33 = vld [vmem:[%s605_s23 + $0x40] sm:$0xff] }
  0x15   : > { %v365_v24 = vadd.f32 %v333_v5, %v301_v12  ;;  %v366_v25 = vadd.f32 %v334_v8, %v302_v13  ;;  %v305_v27 = vadd.f32 %v617_v2, %v266_v17  ;;  %v367_v29 = vadd.f32 %v335_v14, %v303_v19  ;;  %v232_v34 = vld [vmem:[%s605_s23 + $0x48] sm:$0xff]  ;;  %v339_v39 = vld [vmem:[%s611_s26 + $0x30] sm:$0xff]  ;;  %v340_v40 = vld [vmem:[%s611_s26 + $0x38] sm:$0xff] }
  0x16   : > { %v306_v30 = vadd.f32 %v617_v2, %v267_v21  ;;  %v269_v32 = vmul.f32 %v599_v0, %v230_v23  ;;  %v368_v37 = vadd.f32 %v336_v16, %v304_v26  ;;  %v233_v41 = vld [vmem:[%s605_s23 + $0x50] sm:$0xff]  ;;  %v307_v44 = vadd.f32 %v617_v2, %v268_v31  ;;  %v234_v46 = vld [vmem:[%s605_s23 + $0x58] sm:$0xff]  ;;  %v235_v47 = vld [vmem:[%s605_s23 + $0x60] sm:$0xff] }
  0x17   : > { %v397_v35 = vmax.f32 %v365_v24, 0.0  ;;  %v398_v36 = vmax.f32 %v366_v25, 0.0  ;;  %v369_v38 = vadd.f32 %v337_v20, %v305_v27  ;;  %v399_v42 = vmax.f32 %v367_v29, 0.0  ;;  %v236_v52 = vld [vmem:[%s605_s23 + $0x68] sm:$0xff]  ;;  %v341_v56 = vld [vmem:[%s611_s26 + $0x40] sm:$0xff]  ;;  %v343_v61 = vld [vmem:[%s611_s26 + $0x50] sm:$0xff] }
  0x18   : > { %v370_v43 = vadd.f32 %v338_v28, %v306_v30  ;;  %v308_v45 = vadd.f32 %v617_v2, %v269_v32  ;;  %v400_v48 = vmax.f32 %v368_v37, 0.0  ;;  %v270_v50 = vmul.f32 %v599_v0, %v231_v33  ;;  %v342_v57 = vld [vmem:[%s611_s26 + $0x48] sm:$0xff]  ;;  %v237_v1 = vld [vmem:[%s605_s23 + $0x70] sm:$0xff]  ;;  %v238_v3 = vld [vmem:[%s605_s23 + $0x78] sm:$0xff] }
  0x19   : > { %430 = vst.msk [vmem:[%s647_s5] sm:$0xff] %vm429_vm0, %v397_v35  ;;  %431 = vst.msk [vmem:[%s647_s5 + $0x8] sm:$0xff] %vm429_vm0, %v398_v36  ;;  %v401_v49 = vmax.f32 %v369_v38, 0.0  ;;  %v271_v51 = vmul.f32 %v599_v0, %v232_v34  ;;  %v371_v54 = vadd.f32 %v339_v39, %v307_v44  ;;  %v272_v58 = vmul.f32 %v599_v0, %v233_v41  ;;  %v344_v7 = vld [vmem:[%s611_s26 + $0x58] sm:$0xff]  ;;  %v345_v8 = vld [vmem:[%s611_s26 + $0x60] sm:$0xff] }
  0x1a   : > { %432 = vst.msk [vmem:[%s647_s5 + $0x10] sm:$0xff] %vm429_vm0, %v399_v42  ;;  %v402_v53 = vmax.f32 %v370_v43, 0.0  ;;  %v372_v55 = vadd.f32 %v340_v40, %v308_v45  ;;  %433 = vst.msk [vmem:[%s647_s5 + $0x18] sm:$0xff] %vm429_vm0, %v400_v48  ;;  %v309_v59 = vadd.f32 %v617_v2, %v270_v50  ;;  %v273_v62 = vmul.f32 %v599_v0, %v234_v46  ;;  %v346_v14 = vld [vmem:[%s611_s26 + $0x68] sm:$0xff]  ;;  %v239_v19 = vld [vmem:[%s605_s23 + $0x80] sm:$0xff] }
  0x1b   : > { %434 = vst.msk [vmem:[%s647_s5 + $0x20] sm:$0xff] %vm429_vm0, %v401_v49  ;;  %v310_v60 = vadd.f32 %v617_v2, %v271_v51  ;;  %v274_v63 = vmul.f32 %v599_v0, %v235_v47  ;;  %v403_v4 = vmax.f32 %v371_v54, 0.0  ;;  %v311_v6 = vadd.f32 %v617_v2, %v272_v58  ;;  %v240_v20 = vld [vmem:[%s605_s23 + $0x88] sm:$0xff]  ;;  %v347_v25 = vld [vmem:[%s611_s26 + $0x70] sm:$0xff]  ;;  %v348_v26 = vld [vmem:[%s611_s26 + $0x78] sm:$0xff] }
  0x1c   : > { %435 = vst.msk [vmem:[%s647_s5 + $0x28] sm:$0xff] %vm429_vm0, %v402_v53  ;;  %v404_v5 = vmax.f32 %v372_v55, 0.0  ;;  %v275_v9 = vmul.f32 %v599_v0, %v236_v52  ;;  %v373_v10 = vadd.f32 %v341_v56, %v309_v59  ;;  %v312_v12 = vadd.f32 %v617_v2, %v273_v62  ;;  %v241_v27 = vld [vmem:[%s605_s23 + $0x90] sm:$0xff]  ;;  %v242_v32 = vld [vmem:[%s605_s23 + $0x98] sm:$0xff]  ;;  %v243_v33 = vld [vmem:[%s605_s23 + $0xa0] sm:$0xff] }
  0x1d   : > { %v374_v11 = vadd.f32 %v342_v57, %v310_v60  ;;  %v313_v13 = vadd.f32 %v617_v2, %v274_v63  ;;  %436 = vst.msk [vmem:[%s647_s5 + $0x30] sm:$0xff] %vm429_vm0, %v403_v4  ;;  %v375_v15 = vadd.f32 %v343_v61, %v311_v6  ;;  %v276_v17 = vmul.f32 %v599_v0, %v237_v1  ;;  %v244_v38 = vld [vmem:[%s605_s23 + $0xa8] sm:$0xff]  ;;  %v349_v42 = vld [vmem:[%s611_s26 + $0x80] sm:$0xff]  ;;  %v351_v47 = vld [vmem:[%s611_s26 + $0x90] sm:$0xff] }
  0x1e   : > { %437 = vst.msk [vmem:[%s647_s5 + $0x38] sm:$0xff] %vm429_vm0, %v404_v5  ;;  %v314_v16 = vadd.f32 %v617_v2, %v275_v9  ;;  %v277_v18 = vmul.f32 %v599_v0, %v238_v3  ;;  %v405_v21 = vmax.f32 %v373_v10, 0.0  ;;  %v376_v23 = vadd.f32 %v344_v7, %v312_v12  ;;  %v350_v43 = vld [vmem:[%s611_s26 + $0x88] sm:$0xff]  ;;  %v245_v50 = vld [vmem:[%s605_s23 + $0xb0] sm:$0xff]  ;;  %v246_v51 = vld [vmem:[%s605_s23 + $0xb8] sm:$0xff] }
  0x1f   : > { %v406_v22 = vmax.f32 %v374_v11, 0.0  ;;  %v377_v24 = vadd.f32 %v345_v8, %v313_v13  ;;  %v407_v28 = vmax.f32 %v375_v15, 0.0  ;;  %v315_v30 = vadd.f32 %v617_v2, %v276_v17  ;;  %v352_v55 = vld [vmem:[%s611_s26 + $0x98] sm:$0xff]  ;;  %v353_v56 = vld [vmem:[%s611_s26 + $0xa0] sm:$0xff]  ;;  %v354_v62 = vld [vmem:[%s611_s26 + $0xa8] sm:$0xff] }
  0x20   : > { %v378_v29 = vadd.f32 %v346_v14, %v314_v16  ;;  %v316_v31 = vadd.f32 %v617_v2, %v277_v18  ;;  %438 = vst.msk [vmem:[%s647_s5 + $0x40] sm:$0xff] %vm429_vm0, %v405_v21  ;;  %v408_v34 = vmax.f32 %v376_v23, 0.0  ;;  %v278_v36 = vmul.f32 %v599_v0, %v239_v19  ;;  %v247_v5 = vld [vmem:[%s605_s23 + $0xc0] sm:$0xff]  ;;  %v248_v6 = vld [vmem:[%s605_s23 + $0xc8] sm:$0xff]  ;;  %v355_v11 = vld [vmem:[%s611_s26 + $0xb0] sm:$0xff] }
  0x21   : > { %439 = vst.msk [vmem:[%s647_s5 + $0x48] sm:$0xff] %vm429_vm0, %v406_v22  ;;  %v409_v35 = vmax.f32 %v377_v24, 0.0  ;;  %v279_v37 = vmul.f32 %v599_v0, %v240_v20  ;;  %440 = vst.msk [vmem:[%s647_s5 + $0x50] sm:$0xff] %vm429_vm0, %v407_v28  ;;  %v379_v40 = vadd.f32 %v347_v25, %v315_v30  ;;  %v280_v44 = vmul.f32 %v599_v0, %v241_v27  ;;  %v356_v12 = vld [vmem:[%s611_s26 + $0xb8] sm:$0xff]  ;;  %v249_v13 = vld [vmem:[%s605_s23 + $0xd0] sm:$0xff] }
  0x22   : > { %v410_v39 = vmax.f32 %v378_v29, 0.0  ;;  %v380_v41 = vadd.f32 %v348_v26, %v316_v31  ;;  %441 = vst.msk [vmem:[%s647_s5 + $0x58] sm:$0xff] %vm429_vm0, %v408_v34  ;;  %v317_v45 = vadd.f32 %v617_v2, %v278_v36  ;;  %v281_v48 = vmul.f32 %v599_v0, %v242_v32  ;;  %v250_v18 = vld [vmem:[%s605_s23 + $0xd8] sm:$0xff]  ;;  %v251_v19 = vld [vmem:[%s605_s23 + $0xe0] sm:$0xff]  ;;  %v252_v24 = vld [vmem:[%s605_s23 + $0xe8] sm:$0xff] }
  0x23   : > { %442 = vst.msk [vmem:[%s647_s5 + $0x60] sm:$0xff] %vm429_vm0, %v409_v35  ;;  %v318_v46 = vadd.f32 %v617_v2, %v279_v37  ;;  %v282_v49 = vmul.f32 %v599_v0, %v243_v33  ;;  %v411_v52 = vmax.f32 %v379_v40, 0.0  ;;  %v319_v54 = vadd.f32 %v617_v2, %v280_v44  ;;  %v357_v28 = vld [vmem:[%s611_s26 + $0xc0] sm:$0xff]  ;;  %v358_v29 = vld [vmem:[%s611_s26 + $0xc8] sm:$0xff]  ;;  %v359_v33 = vld [vmem:[%s611_s26 + $0xd0] sm:$0xff] }
  0x24   : > { %443 = vst.msk [vmem:[%s647_s5 + $0x68] sm:$0xff] %vm429_vm0, %v410_v39  ;;  %v412_v53 = vmax.f32 %v380_v41, 0.0  ;;  %v283_v57 = vmul.f32 %v599_v0, %v244_v38  ;;  %v381_v58 = vadd.f32 %v349_v42, %v317_v45  ;;  %v320_v60 = vadd.f32 %v617_v2, %v281_v48  ;;  %v253_v36 = vld [vmem:[%s605_s23 + $0xf0] sm:$0xff]  ;;  %v254_v37 = vld [vmem:[%s605_s23 + $0xf8] sm:$0xff]  ;;  %v361_v42 = vld [vmem:[%s611_s26 + $0xe0] sm:$0xff] }
  0x25   : > { %v382_v59 = vadd.f32 %v350_v43, %v318_v46  ;;  %v321_v61 = vadd.f32 %v617_v2, %v282_v49  ;;  %444 = vst.msk [vmem:[%s647_s5 + $0x70] sm:$0xff] %vm429_vm0, %v411_v52  ;;  %v383_v63 = vadd.f32 %v351_v47, %v319_v54  ;;  %v284_v3 = vmul.f32 %v599_v0, %v245_v50  ;;  %v360_v41 = vld [vmem:[%s611_s26 + $0xd8] sm:$0xff]  ;;  %v362_v48 = vld [vmem:[%s611_s26 + $0xe8] sm:$0xff] }
  0x26   : > { %445 = vst.msk [vmem:[%s647_s5 + $0x78] sm:$0xff] %vm429_vm0, %v412_v53  ;;  %v322_v1 = vadd.f32 %v617_v2, %v283_v57  ;;  %v285_v4 = vmul.f32 %v599_v0, %v246_v51  ;;  %v413_v7 = vmax.f32 %v381_v58, 0.0  ;;  %v384_v9 = vadd.f32 %v352_v55, %v320_v60  ;;  %v363_v57 = vld [vmem:[%s611_s26 + $0xf0] sm:$0xff]  ;;  %v364_v58 = vld [vmem:[%s611_s26 + $0xf8] sm:$0xff] }
  0x27   : > { %v414_v8 = vmax.f32 %v382_v59, 0.0  ;;  %v385_v10 = vadd.f32 %v353_v56, %v321_v61  ;;  %v415_v14 = vmax.f32 %v383_v63, 0.0  ;;  %v323_v16 = vadd.f32 %v617_v2, %v284_v3 }
  0x28   : > { %v386_v15 = vadd.f32 %v354_v62, %v322_v1  ;;  %v324_v17 = vadd.f32 %v617_v2, %v285_v4  ;;  %446 = vst.msk [vmem:[%s647_s5 + $0x80] sm:$0xff] %vm429_vm0, %v413_v7  ;;  %v416_v20 = vmax.f32 %v384_v9, 0.0  ;;  %v286_v22 = vmul.f32 %v599_v0, %v247_v5 }
  0x29   : > { %447 = vst.msk [vmem:[%s647_s5 + $0x88] sm:$0xff] %vm429_vm0, %v414_v8  ;;  %v417_v21 = vmax.f32 %v385_v10, 0.0  ;;  %v287_v23 = vmul.f32 %v599_v0, %v248_v6  ;;  %448 = vst.msk [vmem:[%s647_s5 + $0x90] sm:$0xff] %vm429_vm0, %v415_v14  ;;  %v387_v26 = vadd.f32 %v355_v11, %v323_v16  ;;  %v288_v30 = vmul.f32 %v599_v0, %v249_v13 }
  0x2a   : > { %v418_v25 = vmax.f32 %v386_v15, 0.0  ;;  %v388_v27 = vadd.f32 %v356_v12, %v324_v17  ;;  %449 = vst.msk [vmem:[%s647_s5 + $0x98] sm:$0xff] %vm429_vm0, %v416_v20  ;;  %v325_v31 = vadd.f32 %v617_v2, %v286_v22  ;;  %v289_v34 = vmul.f32 %v599_v0, %v250_v18 }
  0x2b   : > { %450 = vst.msk [vmem:[%s647_s5 + $0xa0] sm:$0xff] %vm429_vm0, %v417_v21  ;;  %v326_v32 = vadd.f32 %v617_v2, %v287_v23  ;;  %v290_v35 = vmul.f32 %v599_v0, %v251_v19  ;;  %v419_v38 = vmax.f32 %v387_v26, 0.0  ;;  %v327_v40 = vadd.f32 %v617_v2, %v288_v30 }
  0x2c   : > { %451 = vst.msk [vmem:[%s647_s5 + $0xa8] sm:$0xff] %vm429_vm0, %v418_v25  ;;  %v420_v39 = vmax.f32 %v388_v27, 0.0  ;;  %v291_v43 = vmul.f32 %v599_v0, %v252_v24  ;;  %v389_v44 = vadd.f32 %v357_v28, %v325_v31  ;;  %v328_v46 = vadd.f32 %v617_v2, %v289_v34 }
  0x2d   : > { %v390_v45 = vadd.f32 %v358_v29, %v326_v32  ;;  %v329_v47 = vadd.f32 %v617_v2, %v290_v35  ;;  %452 = vst.msk [vmem:[%s647_s5 + $0xb0] sm:$0xff] %vm429_vm0, %v419_v38  ;;  %v391_v49 = vadd.f32 %v359_v33, %v327_v40  ;;  %v292_v51 = vmul.f32 %v599_v0, %v253_v36 }
  0x2e   : > { %453 = vst.msk [vmem:[%s647_s5 + $0xb8] sm:$0xff] %vm429_vm0, %v420_v39  ;;  %v330_v50 = vadd.f32 %v617_v2, %v291_v43  ;;  %v293_v52 = vmul.f32 %v599_v0, %v254_v37  ;;  %v421_v53 = vmax.f32 %v389_v44, 0.0  ;;  %v392_v55 = vadd.f32 %v360_v41, %v328_v46 }
  0x2f   : > { %v422_v54 = vmax.f32 %v390_v45, 0.0  ;;  %v393_v56 = vadd.f32 %v361_v42, %v329_v47  ;;  %v423_v59 = vmax.f32 %v391_v49, 0.0  ;;  %v331_v61 = vadd.f32 %v617_v2, %v292_v51 }
  0x30   : > { %v394_v60 = vadd.f32 %v362_v48, %v330_v50  ;;  %v332_v62 = vadd.f32 %v617_v2, %v293_v52  ;;  %454 = vst.msk [vmem:[%s647_s5 + $0xc0] sm:$0xff] %vm429_vm0, %v421_v53  ;;  %v424_v0 = vmax.f32 %v392_v55, 0.0 }
  0x31   : > { %455 = vst.msk [vmem:[%s647_s5 + $0xc8] sm:$0xff] %vm429_vm0, %v422_v54  ;;  %v425_v63 = vmax.f32 %v393_v56, 0.0  ;;  %456 = vst.msk [vmem:[%s647_s5 + $0xd0] sm:$0xff] %vm429_vm0, %v423_v59  ;;  %v395_v3 = vadd.f32 %v363_v57, %v331_v61 }
  0x32   : > { %v426_v1 = vmax.f32 %v394_v60, 0.0  ;;  %v396_v4 = vadd.f32 %v364_v58, %v332_v62  ;;  %457 = vst.msk [vmem:[%s647_s5 + $0xd8] sm:$0xff] %vm429_vm0, %v424_v0 }
  0x33   : > { %458 = vst.msk [vmem:[%s647_s5 + $0xe0] sm:$0xff] %vm429_vm0, %v425_v63  ;;  %v427_v5 = vmax.f32 %v395_v3, 0.0 }
  0x34   : > { %459 = vst.msk [vmem:[%s647_s5 + $0xe8] sm:$0xff] %vm429_vm0, %v426_v1  ;;  %v428_v6 = vmax.f32 %v396_v4, 0.0 }
  0x35   : > { %460 = vst.msk [vmem:[%s647_s5 + $0xf0] sm:$0xff] %vm429_vm0, %v427_v5 }
  0x36   : > { %461 = vst.msk [vmem:[%s647_s5 + $0xf8] sm:$0xff] %vm429_vm0, %v428_v6 }
  0x37 PF: > { %s14_s15 = sadd.s32 1, %s559_s15  }
  0x38   : > { %p11_p4 = scmp.ge.s32.totalorder %s14_s15, 4  }
  0x3a   :  { %13 = sbr.rel (!%p11_p4) target bundleno = 1 (0x1), region = 69 }

// kernel: identity_block_nchw.5
= control target key start
LH: loop header
LB: loop body
LE: loop exit
PB: predicated region body
PF: predicated region fallthrough
CT: control target
= control target key end

     0   :  { %s5891_s18 = smov 0   ;;  %s7217_s0 = inlined_call_operand.vmem [shape: f32[2,16,16,8], index: 0, kind: input, shape index: {}]   ;;  %s7218_s1 = inlined_call_operand.vmem [shape: f32[1,8], index: 1, kind: input, shape index: {}]   ;;  %s7219_s2 = inlined_call_operand.vmem [shape: f32[1,8], index: 2, kind: input, shape index: {}]   ;;  %s7220_s3 = inlined_call_operand.vmem [shape: f32[9,8,8], index: 3, kind: input, shape index: {}]   ;;  %s7221_s4 = inlined_call_operand.vmem [shape: f32[2,16,16,8], index: 4, kind: output, shape index: {0}]   ;;  %s7222_s5 = inlined_call_operand.vmem [shape: f32[2,2,8], index: 5, kind: output, shape index: {1}]  }
   0x1 LB: > { %s4491_s19 = sadd.s32 4294967295, %s5858_s18   ;;  %p4495_p0 = scmp.ge.s32.totalorder %s5858_s18, 1  ;;  %s5858_s18 = sphi %s5891_s18, %s16_s18  }
   0x2   : > { %p190_p1 = scmp.lt.s32.totalorder %s5858_s18, 3 }
   0x4   : > { %p191_p2 = pnand %p4495_p0, %p190_p1 }
   0x6   : > { %194 = sbr.rel (%p191_p2) target bundleno = 700 (0x2bc), region = 36 }
   0xd   : > { %v441_v0 = vld [vmem:[%s7220_s3 + $0x8] sm:$0xff]  ;;  %vm566_vm0 = vcmask 1043456   ;;  %vm379_vm1 = vcmask 64512   ;;  %p5904_p3 = scmp.lt.s32.totalorder %s4491_s19, 1  ;;  %v440_v1 = vld [vmem:[%s7220_s3] sm:$0xff]  ;;  %v5860_v3 = vmov 0.0  }
   0xe   : > { %v450_v2 = vpack.c.bf16 %v441_v0, %v441_v0  ;;  %383 = vst.msk [vmem:[#allocation2 + $0x18] sm:$0xff] %vm379_vm1, %v5860_v3  ;;  %384 = vst.msk [vmem:[#allocation2 + $0x20] sm:$0xff] %vm379_vm1, %v5860_v3  ;;  %v449_v4 = vpack.c.bf16 %v440_v1, %v440_v1  ;;  %v5948_v6 = vld [vmem:[%s7218_s1] ss:$0 sm:$0xff]  ;;  %v442_v7 = vld [vmem:[%s7220_s3 + $0x10] sm:$0xff]  ;;  %vm4401_vm2 = vcmask 1040384  }
   0xf   : > { %382 = vst.msk [vmem:[#allocation2 + $0x10] sm:$0xff] %vm379_vm1, %v5860_v3  ;;  %385 = vst.msk [vmem:[#allocation2 + $0x28] sm:$0xff] %vm379_vm1, %v5860_v3  ;;  %s7500_s19 = smov (!%p5904_p3, %s4491_s19), 1  ;;  %v5963_v8 = vld [vmem:[%s7219_s2] ss:$0 sm:$0xff]  ;;  %v5976_v18 = vpack.c.bf16 %v442_v7, %v442_v7  ;;  %vm4403_vm3 = vcmask 58368  }
  0x10   : > { %388 = vst.msk [vmem:[#allocation2 + $0x40] sm:$0xff] %vm379_vm1, %v5860_v3  ;;  %391 = vst.msk [vmem:[#allocation2 + $0x58] sm:$0xff] %vm379_vm1, %v5860_v3  ;;  %5825 = vmatprep.subr.msk.bf16.mxu0 %vm566_vm0, %v450_v2  ;;  %5834 = vmatprep.subr.msk.bf16.mxu1 %vm566_vm0, %v450_v2  ;;  %v568_v5 = vsel %vm566_vm0, %v450_v2, 0  ;;  %s4737_s25 = sshll.u32 %s7500_s19, 8  ;;  %v5979_v21 = vsel %vm566_vm0, %v449_v4, 0 }
  0x11   : > { %394 = vst.msk [vmem:[#allocation2 + $0x70] sm:$0xff] %vm379_vm1, %v5860_v3  ;;  %397 = vst.msk [vmem:[#allocation2 + $0x88] sm:$0xff] %vm379_vm1, %v5860_v3  ;;  %4974 = vmatpush3.bf16.msra.mxu0 %v568_v5  ;;  %5208 = vmatpush3.bf16.msra.mxu1 %v568_v5  ;;  %s5958_s7 = scalar_lea.vmem %s7217_s0, %s4737_s25  ;;  %s7080_s27 = scalar_lea.vmem %s7221_s4, %s4737_s25 }
  0x12   : > { %400 = vst.msk [vmem:[#allocation2 + $0xa0] sm:$0xff] %vm379_vm1, %v5860_v3  ;;  %403 = vst.msk [vmem:[#allocation2 + $0xb8] sm:$0xff] %vm379_vm1, %v5860_v3  ;;  %5826 = vmatprep.subr.msk.bf16.mxu0 %vm566_vm0, %v449_v4  ;;  %5835 = vmatprep.subr.msk.bf16.mxu1 %vm566_vm0, %v449_v4  ;;  %v239_v9 = vld [vmem:[%s5958_s7] sm:$0xff]  ;;  %v253_v10 = vld [vmem:[%s5958_s7 + $0x70] sm:$0xff]  ;;  %s4500_s25 = sshll.u32 %s7500_s19, 1 }
  0x13   : > { %406 = vst.msk [vmem:[#allocation2 + $0xd0] sm:$0xff] %vm379_vm1, %v5860_v3  ;;  %409 = vst.msk [vmem:[#allocation2 + $0xe8] sm:$0xff] %vm379_vm1, %v5860_v3  ;;  %v254_v11 = vld [vmem:[%s5958_s7 + $0x78] sm:$0xff]  ;;  %v277_v12 = vmul.f32 %v5948_v6, %v239_v9  ;;  %v291_v13 = vmul.f32 %v5948_v6, %v253_v10  ;;  %v255_v15 = vld [vmem:[%s5958_s7 + $0x80] sm:$0xff]  ;;  %s235_s30 = scalar_lea.vmem %s7222_s5, %s4500_s25 }
  0x14   : > { %412 = vst.msk [vmem:[#allocation2 + $0x100] sm:$0xff] %vm379_vm1, %v5860_v3  ;;  %415 = vst.msk [vmem:[#allocation2 + $0x118] sm:$0xff] %vm379_vm1, %v5860_v3  ;;  %v292_v14 = vmul.f32 %v5948_v6, %v254_v11  ;;  %v240_v16 = vld [vmem:[%s5958_s7 + $0x8] sm:$0xff]  ;;  %v241_v17 = vld [vmem:[%s5958_s7 + $0x10] sm:$0xff]  ;;  %v293_v22 = vmul.f32 %v5948_v6, %v255_v15 }
  0x15   : > { %418 = vst.msk [vmem:[#allocation2 + $0x130] sm:$0xff] %vm379_vm1, %v5860_v3  ;;  %421 = vst.msk [vmem:[#allocation2 + $0x148] sm:$0xff] %vm379_vm1, %v5860_v3  ;;  %v494_v19 = vld [vmem:[#allocation2 + $0x18] sm:$0xff]  ;;  %v495_v20 = vld [vmem:[#allocation2 + $0x20] sm:$0xff]  ;;  %v278_v23 = vmul.f32 %v5948_v6, %v240_v16  ;;  %v279_v24 = vmul.f32 %v5948_v6, %v241_v17  ;;  %v315_v26 = vadd.f32 %v5963_v8, %v277_v12 }
  0x16   : > { %424 = vst.msk [vmem:[#allocation2 + $0x160] sm:$0xff] %vm379_vm1, %v5860_v3  ;;  %427 = vst.msk [vmem:[#allocation2 + $0x178] sm:$0xff] %vm379_vm1, %v5860_v3  ;;  %v518_v25 = vpack.c.bf16 %v495_v20, %v494_v19  ;;  %v329_v27 = vadd.f32 %v5963_v8, %v291_v13  ;;  %v330_v28 = vadd.f32 %v5963_v8, %v292_v14  ;;  %v242_v29 = vld [vmem:[%s5958_s7 + $0x18] sm:$0xff]  ;;  %v256_v34 = vld [vmem:[%s5958_s7 + $0x88] sm:$0xff] }
  0x17   : > { %430 = vst.msk [vmem:[#allocation2 + $0x190] sm:$0xff] %vm379_vm1, %v5860_v3  ;;  %433 = vst.msk [vmem:[#allocation2 + $0x1a8] sm:$0xff] %vm379_vm1, %v5860_v3  ;;  %v331_v30 = vadd.f32 %v5963_v8, %v293_v22  ;;  %v316_v31 = vadd.f32 %v5963_v8, %v278_v23  ;;  %v280_v32 = vmul.f32 %v5948_v6, %v242_v29  ;;  %v257_v35 = vld [vmem:[%s5958_s7 + $0x90] sm:$0xff]  ;;  %v347_v36 = vmax.f32 %v315_v26, 0.0  ;;  %v258_v40 = vld [vmem:[%s5958_s7 + $0x98] sm:$0xff] }
  0x18   : > { %434 = vst.msk [vmem:[#allocation2 + $0x1b0] sm:$0xff] %vm379_vm1, %v5860_v3  ;;  %435 = vst.msk [vmem:[#allocation2 + $0x1b8] sm:$0xff] %vm379_vm1, %v5860_v3  ;;  %v317_v33 = vadd.f32 %v5963_v8, %v279_v24  ;;  %4975 = vmatprep.mubr.msk.bf16.mxu0 %vm379_vm1, %v518_v25  ;;  %v361_v37 = vmax.f32 %v329_v27, 0.0  ;;  %v362_v38 = vmax.f32 %v330_v28, 0.0  ;;  %v294_v39 = vmul.f32 %v5948_v6, %v256_v34  ;;  %v243_v41 = vld [vmem:[%s5958_s7 + $0x20] sm:$0xff]  ;;  %v244_v46 = vld [vmem:[%s5958_s7 + $0x28] sm:$0xff] }
  0x19   : > { %436 = vst.msk [vmem:[#allocation2 + $0x1c0] sm:$0xff] %vm379_vm1, %v5860_v3  ;;  %437 = vst.msk [vmem:[#allocation2 + $0x1c8] sm:$0xff] %vm379_vm1, %v5860_v3  ;;  %v363_v42 = vmax.f32 %v331_v30, 0.0  ;;  %v348_v43 = vmax.f32 %v316_v31, 0.0  ;;  %v318_v44 = vadd.f32 %v5963_v8, %v280_v32  ;;  %v259_v47 = vld [vmem:[%s5958_s7 + $0xa0] sm:$0xff]  ;;  %v295_v49 = vmul.f32 %v5948_v6, %v257_v35  ;;  %v260_v52 = vld [vmem:[%s5958_s7 + $0xa8] sm:$0xff] }
  0x1a   : > { %v349_v45 = vmax.f32 %v317_v33, 0.0  ;;  %386 = vst.msk [vmem:[#allocation2 + $0x30] sm:$0xff] %vm379_vm1, %v347_v36  ;;  %407 = vst.msk [vmem:[#allocation2 + $0xd8] sm:$0xff] %vm379_vm1, %v361_v37  ;;  %v332_v48 = vadd.f32 %v5963_v8, %v294_v39  ;;  %v296_v50 = vmul.f32 %v5948_v6, %v258_v40  ;;  %v281_v51 = vmul.f32 %v5948_v6, %v243_v41  ;;  %v245_v57 = vld [vmem:[%s5958_s7 + $0x30] sm:$0xff]  ;;  %v246_v58 = vld [vmem:[%s5958_s7 + $0x38] sm:$0xff] }
  0x1b   : > { %408 = vst.msk [vmem:[#allocation2 + $0xe0] sm:$0xff] %vm379_vm1, %v362_v38  ;;  %410 = vst.msk [vmem:[#allocation2 + $0xf0] sm:$0xff] %vm379_vm1, %v363_v42  ;;  %v350_v53 = vmax.f32 %v318_v44, 0.0  ;;  %v282_v54 = vmul.f32 %v5948_v6, %v244_v46  ;;  %v297_v55 = vmul.f32 %v5948_v6, %v259_v47  ;;  %v298_v56 = vmul.f32 %v5948_v6, %v260_v52  ;;  %v247_v3 = vld [vmem:[%s5958_s7 + $0x40] sm:$0xff]  ;;  %v261_v4 = vld [vmem:[%s5958_s7 + $0xb0] sm:$0xff] }
  0x1c   : > { %387 = vst.msk [vmem:[#allocation2 + $0x38] sm:$0xff] %vm379_vm1, %v348_v43  ;;  %389 = vst.msk [vmem:[#allocation2 + $0x48] sm:$0xff] %vm379_vm1, %v349_v45  ;;  %v364_v59 = vmax.f32 %v332_v48, 0.0  ;;  %v333_v60 = vadd.f32 %v5963_v8, %v295_v49  ;;  %v334_v61 = vadd.f32 %v5963_v8, %v296_v50  ;;  %v319_v62 = vadd.f32 %v5963_v8, %v281_v51  ;;  %v262_v5 = vld [vmem:[%s5958_s7 + $0xb8] sm:$0xff]  ;;  %v263_v12 = vld [vmem:[%s5958_s7 + $0xc0] sm:$0xff] }
  0x1d   : > { %390 = vst.msk [vmem:[#allocation2 + $0x50] sm:$0xff] %vm379_vm1, %v350_v53  ;;  %v320_v63 = vadd.f32 %v5963_v8, %v282_v54  ;;  %v335_v0 = vadd.f32 %v5963_v8, %v297_v55  ;;  %v336_v1 = vadd.f32 %v5963_v8, %v298_v56  ;;  %v283_v2 = vmul.f32 %v5948_v6, %v245_v57  ;;  %v248_v13 = vld [vmem:[%s5958_s7 + $0x48] sm:$0xff]  ;;  %v249_v14 = vld [vmem:[%s5958_s7 + $0x50] sm:$0xff]  ;;  %v499_v23 = vld [vmem:[#allocation2 + $0x40] sm:$0xff] }
  0x1e   : > { %411 = vst.msk [vmem:[#allocation2 + $0xf8] sm:$0xff] %vm379_vm1, %v364_v59  ;;  %v365_v7 = vmax.f32 %v333_v60, 0.0  ;;  %v366_v9 = vmax.f32 %v334_v61, 0.0  ;;  %v351_v10 = vmax.f32 %v319_v62, 0.0  ;;  %v284_v11 = vmul.f32 %v5948_v6, %v246_v58  ;;  %v496_v15 = vld [vmem:[#allocation2 + $0x28] sm:$0xff]  ;;  %v250_v28 = vld [vmem:[%s5958_s7 + $0x58] sm:$0xff] }
  0x1f   : > { %v352_v16 = vmax.f32 %v320_v63, 0.0  ;;  %v367_v17 = vmax.f32 %v335_v0, 0.0  ;;  %v368_v19 = vmax.f32 %v336_v1, 0.0  ;;  %v321_v20 = vadd.f32 %v5963_v8, %v283_v2  ;;  %v2481_v22 = vld [vmem:[#allocation2 + $0xe8] sm:$0xff]  ;;  %v2484_v44 = vld [vmem:[#allocation2 + $0x100] sm:$0xff]  ;;  %v265_v52 = vld [vmem:[%s5958_s7 + $0xd0] sm:$0xff] }
  0x20   : > { %413 = vst.msk [vmem:[#allocation2 + $0x108] sm:$0xff] %vm379_vm1, %v365_v7  ;;  %414 = vst.msk [vmem:[#allocation2 + $0x110] sm:$0xff] %vm379_vm1, %v366_v9  ;;  %v322_v24 = vadd.f32 %v5963_v8, %v284_v11  ;;  %v285_v25 = vmul.f32 %v5948_v6, %v247_v3  ;;  %v299_v26 = vmul.f32 %v5948_v6, %v261_v4  ;;  %v264_v47 = vld [vmem:[%s5958_s7 + $0xc8] sm:$0xff]  ;;  %v266_v53 = vld [vmem:[%s5958_s7 + $0xd8] sm:$0xff] }
  0x21   : > { %392 = vst.msk [vmem:[#allocation2 + $0x60] sm:$0xff] %vm379_vm1, %v351_v10  ;;  %v300_v27 = vmul.f32 %v5948_v6, %v262_v5  ;;  %v497_v29 = vld [vmem:[#allocation2 + $0x30] sm:$0xff]  ;;  %v2479_v30 = vld [vmem:[#allocation2 + $0xd8] sm:$0xff]  ;;  %393 = vst.msk [vmem:[#allocation2 + $0x68] sm:$0xff] %vm379_vm1, %v352_v16  ;;  %v353_v32 = vmax.f32 %v321_v20, 0.0  ;;  %v301_v33 = vmul.f32 %v5948_v6, %v263_v12  ;;  %v286_v34 = vmul.f32 %v5948_v6, %v248_v13 }
  0x22   : > { %v2480_v31 = vld [vmem:[#allocation2 + $0xe0] sm:$0xff]  ;;  %416 = vst.msk [vmem:[#allocation2 + $0x120] sm:$0xff] %vm379_vm1, %v367_v17  ;;  %417 = vst.msk [vmem:[#allocation2 + $0x128] sm:$0xff] %vm379_vm1, %v368_v19  ;;  %v287_v35 = vmul.f32 %v5948_v6, %v249_v14  ;;  %v519_v36 = vpack.c.bf16 %v497_v29, %v496_v15  ;;  %v2482_v38 = vld [vmem:[#allocation2 + $0xf0] sm:$0xff]  ;;  %v354_v40 = vmax.f32 %v322_v24, 0.0  ;;  %v323_v41 = vadd.f32 %v5963_v8, %v285_v25 }
  0x23   : > { %v2503_v37 = vpack.c.bf16 %v2480_v31, %v2479_v30  ;;  %v498_v39 = vld [vmem:[#allocation2 + $0x38] sm:$0xff]  ;;  %v2504_v42 = vpack.c.bf16 %v2482_v38, %v2481_v22  ;;  %395 = vst.msk [vmem:[#allocation2 + $0x78] sm:$0xff] %vm379_vm1, %v353_v32  ;;  %v337_v45 = vadd.f32 %v5963_v8, %v299_v26  ;;  %v338_v46 = vadd.f32 %v5963_v8, %v300_v27  ;;  %v251_v54 = vld [vmem:[%s5958_s7 + $0x60] sm:$0xff]  ;;  %v500_v55 = vld [vmem:[#allocation2 + $0x48] sm:$0xff] }
  0x24   : > { %v520_v43 = vpack.c.bf16 %v499_v23, %v498_v39  ;;  %4976 = vmatmul.mubr.msk.bf16.vlgmr.msra.gmra.mrb[0].mxu0 %vm379_vm1, %v519_v36  ;;  %396 = vst.msk [vmem:[#allocation2 + $0x80] sm:$0xff] %vm379_vm1, %v354_v40  ;;  %v355_v48 = vmax.f32 %v323_v41, 0.0  ;;  %v339_v49 = vadd.f32 %v5963_v8, %v301_v33  ;;  %v324_v50 = vadd.f32 %v5963_v8, %v286_v34  ;;  %v501_v56 = vld [vmem:[#allocation2 + $0x50] sm:$0xff]  ;;  %v6067_v62 = vld [vmem:[#allocation2 + $0x58] sm:$0xff]  ;;  %v252_v3 = vld [vmem:[%s5958_s7 + $0x68] sm:$0xff] }
  0x25   : > { %5209 = vmatprep.mubr.msk.bf16.mxu1 %vm379_vm1, %v2503_v37  ;;  %v288_v51 = vmul.f32 %v5948_v6, %v250_v28  ;;  %5000 = vmatpush3.bf16.msra.mxu0 %v5979_v21  ;;  %v2483_v57 = vld [vmem:[#allocation2 + $0xf8] sm:$0xff]  ;;  %v369_v58 = vmax.f32 %v337_v45, 0.0  ;;  %v370_v59 = vmax.f32 %v338_v46, 0.0  ;;  %v325_v60 = vadd.f32 %v5963_v8, %v287_v35  ;;  %v267_v16 = vld [vmem:[%s5958_s7 + $0xe0] sm:$0xff]  ;;  %v268_v17 = vld [vmem:[%s5958_s7 + $0xe8] sm:$0xff] }
  0x26   : > { %5210 = vmatmul.mubr.msk.bf16.vlgmr.msra.gmra.mrb[0].mxu1 %vm379_vm1, %v2504_v42  ;;  %4979 = vmatprep.mubr.msk.bf16.mxu0 %vm379_vm1, %v520_v43  ;;  %v2505_v61 = vpack.c.bf16 %v2484_v44, %v2483_v57  ;;  %v6069_v63 = vld [vmem:[#allocation2 + $0x118] sm:$0xff]  ;;  %398 = vst.msk [vmem:[#allocation2 + $0x90] sm:$0xff] %vm379_vm1, %v355_v48  ;;  %v371_v0 = vmax.f32 %v339_v49, 0.0  ;;  %v356_v1 = vmax.f32 %v324_v50, 0.0  ;;  %v302_v9 = vmul.f32 %v5948_v6, %v264_v47  ;;  %v6114_v35 = vld [vmem:[#allocation2 + $0x70] sm:$0xff] }
  0x27   : > { %5234 = vmatpush3.bf16.msra.mxu1 %v5979_v21  ;;  %v326_v2 = vadd.f32 %v5963_v8, %v288_v51  ;;  %v6074_v4 = vld [vmem:[#allocation2 + $0x108] sm:$0xff]  ;;  %v2486_v5 = vld [vmem:[#allocation2 + $0x110] sm:$0xff]  ;;  %419 = vst.msk [vmem:[#allocation2 + $0x138] sm:$0xff] %vm379_vm1, %v369_v58  ;;  %420 = vst.msk [vmem:[#allocation2 + $0x140] sm:$0xff] %vm379_vm1, %v370_v59  ;;  %v357_v21 = vmax.f32 %v325_v60, 0.0  ;;  %v303_v10 = vmul.f32 %v5948_v6, %v265_v52  ;;  %5827 = vmatprep.subr.msk.bf16.mxu0 %vm566_vm0, %v5976_v18 }
  0x28   : > { %v6076_v7 = vld [vmem:[#allocation2 + $0x60] sm:$0xff]  ;;  %v304_v11 = vmul.f32 %v5948_v6, %v266_v53  ;;  %5836 = vmatprep.subr.msk.bf16.mxu1 %vm566_vm0, %v5976_v18  ;;  %v521_v12 = vpack.c.bf16 %v501_v56, %v500_v55  ;;  %5213 = vmatprep.mubr.msk.bf16.mxu1 %vm379_vm1, %v2505_v61  ;;  %422 = vst.msk [vmem:[#allocation2 + $0x150] sm:$0xff] %vm379_vm1, %v371_v0  ;;  %399 = vst.msk [vmem:[#allocation2 + $0x98] sm:$0xff] %vm379_vm1, %v356_v1  ;;  %v6112_v34 = vld [vmem:[#allocation2 + $0x68] sm:$0xff] }
  0x29   : > { %7308 = vst [vmem:[#allocation3_spill] sm:$0xff] %v6076_v7  ;;  %v6088_v13 = vld [vmem:[#allocation2 + $0x120] sm:$0xff]  ;;  %v358_v14 = vmax.f32 %v326_v2, 0.0  ;;  %v289_v15 = vmul.f32 %v5948_v6, %v251_v54  ;;  %v2506_v19 = vpack.c.bf16 %v2486_v5, %v6074_v4  ;;  %v522_v20 = vpack.c.bf16 %v6076_v7, %v6067_v62  ;;  %401 = vst.msk [vmem:[#allocation2 + $0xa8] sm:$0xff] %vm379_vm1, %v357_v21  ;;  %v6116_v36 = vld [vmem:[#allocation2 + $0x130] sm:$0xff] }
  0x2a   : > { %7309 = vst [vmem:[#allocation4_spill] sm:$0xff] %v6088_v13  ;;  %v2507_v22 = vpack.c.bf16 %v6088_v13, %v6069_v63  ;;  %v340_v23 = vadd.f32 %v5963_v8, %v302_v9  ;;  %v341_v24 = vadd.f32 %v5963_v8, %v303_v10  ;;  %v342_v25 = vadd.f32 %v5963_v8, %v304_v11  ;;  %v6123_v40 = vld [vmem:[#allocation2 + $0x128] sm:$0xff]  ;;  %v6125_v41 = vld [vmem:[#allocation2 + $0x78] sm:$0xff]  ;;  %v6273_v61 = vld [vmem:[#allocation2 + $0xd0] sm:$0xff] }
  0x2b   : > { %402 = vst.msk [vmem:[#allocation2 + $0xb0] sm:$0xff] %vm379_vm1, %v358_v14  ;;  %v327_v26 = vadd.f32 %v5963_v8, %v289_v15  ;;  %v290_v27 = vmul.f32 %v5948_v6, %v252_v3  ;;  %v305_v29 = vmul.f32 %v5948_v6, %v267_v16  ;;  %v306_v30 = vmul.f32 %v5948_v6, %v268_v17  ;;  %v6127_v42 = vld [vmem:[#allocation2 + $0x80] sm:$0xff]  ;;  %v6138_v49 = vld [vmem:[#allocation2 + $0x2f] sm:$0xff]  ;;  %v6149_v53 = vld [vmem:[#allocation2 + $0x37] sm:$0xff] }
  0x2c   : > { %v372_v28 = vmax.f32 %v340_v23, 0.0  ;;  %4980 = vmatmul.mubr.msk.bf16.gmra.mrb[4].mxu0 %vm379_vm1, %v521_v12  ;;  %v373_v31 = vmax.f32 %v341_v24, 0.0  ;;  %v374_v32 = vmax.f32 %v342_v25, 0.0  ;;  %7310 = vst [vmem:[#allocation5_spill] sm:$0xff] %v6112_v34  ;;  %7311 = vst [vmem:[#allocation6_spill] sm:$0xff] %v6114_v35  ;;  %v523_v48 = vpack.c.bf16 %v6114_v35, %v6112_v34  ;;  %v6140_v50 = vld [vmem:[#allocation2 + $0xef] sm:$0xff] }
  0x2d   : > { %v359_v33 = vmax.f32 %v327_v26, 0.0  ;;  %4983 = vmatprep.mubr.msk.bf16.mxu0 %vm379_vm1, %v522_v20  ;;  %7312 = vst [vmem:[#allocation7_spill] sm:$0xff] %v6116_v36  ;;  %v328_v37 = vadd.f32 %v5963_v8, %v290_v27  ;;  %v343_v38 = vadd.f32 %v5963_v8, %v305_v29  ;;  %v344_v39 = vadd.f32 %v5963_v8, %v306_v30  ;;  %v6151_v54 = vld [vmem:[#allocation2 + $0x3f] sm:$0xff]  ;;  %v6153_v55 = vld [vmem:[#allocation2 + $0x47] sm:$0xff]  ;;  %v6157_v57 = vld [vmem:[#allocation2 + $0xf7] sm:$0xff] }
  0x2e   : > { %5214 = vmatmul.mubr.msk.bf16.gmra.mrb[4].mxu1 %vm379_vm1, %v2506_v19  ;;  %423 = vst.msk [vmem:[#allocation2 + $0x158] sm:$0xff] %vm379_vm1, %v372_v28  ;;  %7313 = vst [vmem:[#allocation8_spill] sm:$0xff] %v6123_v40  ;;  %v6132_v43 = vld [vmem:[#allocation2 + $0x138] sm:$0xff]  ;;  %v6134_v44 = vld [vmem:[#allocation2 + $0x140] sm:$0xff]  ;;  %v2508_v51 = vpack.c.bf16 %v6116_v36, %v6123_v40  ;;  %v524_v52 = vpack.c.bf16 %v6127_v42, %v6125_v41 }
  0x2f   : > { %5217 = vmatprep.mubr.msk.bf16.mxu1 %vm379_vm1, %v2507_v22  ;;  %7314 = vst [vmem:[#allocation9_spill] sm:$0xff] %v6125_v41  ;;  %7315 = vst [vmem:[#allocation10_spill] sm:$0xff] %v6127_v42  ;;  %v360_v45 = vmax.f32 %v328_v37, 0.0  ;;  %v375_v46 = vmax.f32 %v343_v38, 0.0  ;;  %v376_v47 = vmax.f32 %v344_v39, 0.0  ;;  %v2509_v56 = vpack.c.bf16 %v6134_v44, %v6132_v43  ;;  %v6159_v58 = vld [vmem:[#allocation2 + $0xff] sm:$0xff] }
  0x30   : > { %425 = vst.msk [vmem:[#allocation2 + $0x168] sm:$0xff] %vm379_vm1, %v373_v31  ;;  %426 = vst.msk [vmem:[#allocation2 + $0x170] sm:$0xff] %vm379_vm1, %v374_v32  ;;  %v6161_v59 = vld [vmem:[#allocation2 + $0x107] sm:$0xff]  ;;  %v6174_v3 = vld [vmem:[#allocation2 + $0x90] sm:$0xff]  ;;  %v2469_v36 = vpack.c.bf16 %v6159_v58, %v6157_v57 }
  0x31   : > { %404 = vst.msk [vmem:[#allocation2 + $0xc0] sm:$0xff] %vm379_vm1, %v359_v33  ;;  %7316 = vst [vmem:[#allocation11_spill] sm:$0xff] %v6132_v43  ;;  %v6167_v0 = vld [vmem:[#allocation2 + $0x88] sm:$0xff]  ;;  %v6182_v9 = vld [vmem:[#allocation2 + $0x57] sm:$0xff] }
  0x32   : > { %7317 = vst [vmem:[#allocation12_spill] sm:$0xff] %v6134_v44  ;;  %405 = vst.msk [vmem:[#allocation2 + $0xc8] sm:$0xff] %vm379_vm1, %v360_v45  ;;  %v6176_v5 = vld [vmem:[#allocation2 + $0x148] sm:$0xff]  ;;  %v6184_v10 = vld [vmem:[#allocation2 + $0x5f] sm:$0xff]  ;;  %v525_v22 = vpack.c.bf16 %v6174_v3, %v6167_v0 }
  0x33   : > { %428 = vst.msk [vmem:[#allocation2 + $0x180] sm:$0xff] %vm379_vm1, %v375_v46  ;;  %429 = vst.msk [vmem:[#allocation2 + $0x188] sm:$0xff] %vm379_vm1, %v376_v47  ;;  %v6178_v21 = vld [vmem:[#allocation2 + $0x4f] sm:$0xff]  ;;  %v6186_v11 = vld [vmem:[#allocation2 + $0x67] sm:$0xff] }
  0x34   : > { %7318 = vst [vmem:[#allocation13_spill] sm:$0xff] %v6167_v0  ;;  %4984 = vmatmul.mubr.msk.bf16.gmra.mrb[8].mxu0 %vm379_vm1, %v523_v48  ;;  %7319 = vst [vmem:[#allocation14_spill] sm:$0xff] %v6174_v3  ;;  %v6189_v12 = vld [vmem:[#allocation2 + $0x150] sm:$0xff]  ;;  %v6191_v14 = vld [vmem:[#allocation2 + $0x98] sm:$0xff] }
  0x35   : > { %7320 = vst [vmem:[#allocation15_spill] sm:$0xff] %v6176_v5  ;;  %4987 = vmatprep.mubr.msk.bf16.mxu0 %vm379_vm1, %v524_v52  ;;  %7321 = vst [vmem:[#allocation16_spill] sm:$0xff] %v6189_v12  ;;  %v6193_v15 = vld [vmem:[#allocation2 + $0xa0] sm:$0xff]  ;;  %v6199_v19 = vld [vmem:[#allocation2 + $0x158] sm:$0xff]  ;;  %v2510_v23 = vpack.c.bf16 %v6189_v12, %v6176_v5 }
  0x36   : > { %5218 = vmatmul.mubr.msk.bf16.gmra.mrb[8].mxu1 %vm379_vm1, %v2508_v51  ;;  %7322 = vst [vmem:[#allocation17_spill] sm:$0xff] %v6191_v14  ;;  %7323 = vst [vmem:[#allocation18_spill] sm:$0xff] %v6193_v15  ;;  %v6201_v20 = vld [vmem:[#allocation2 + $0x160] sm:$0xff]  ;;  %v526_v24 = vpack.c.bf16 %v6193_v15, %v6191_v14  ;;  %v6209_v25 = vld [vmem:[#allocation2 + $0x10f] sm:$0xff] }
  0x37   : > { %5221 = vmatprep.mubr.msk.bf16.mxu1 %vm379_vm1, %v2509_v56  ;;  %7324 = vst [vmem:[#allocation19_spill] sm:$0xff] %v6199_v19  ;;  %7325 = vst [vmem:[#allocation20_spill] sm:$0xff] %v6201_v20  ;;  %v6211_v26 = vld [vmem:[#allocation2 + $0x117] sm:$0xff]  ;;  %v2511_v27 = vpack.c.bf16 %v6201_v20, %v6199_v19  ;;  %v6215_v28 = vld [vmem:[#allocation2 + $0x11f] sm:$0xff] }
  0x38   : > { %v6217_v29 = vld [vmem:[#allocation2 + $0x127] sm:$0xff]  ;;  %v6226_v33 = vld [vmem:[#allocation2 + $0xb8] sm:$0xff]  ;;  %v6228_v37 = vld [vmem:[#allocation2 + $0x6f] sm:$0xff]  ;;  %7334 = vst [vmem:[#allocation29_spill] sm:$0xff] %v6273_v61 }
  0x39   : > { %v6224_v32 = vld [vmem:[#allocation2 + $0xa8] sm:$0xff]  ;;  %7327 = vst [vmem:[#allocation22_spill] sm:$0xff] %v6226_v33  ;;  %v6230_v38 = vld [vmem:[#allocation2 + $0x77] sm:$0xff]  ;;  %v6236_v45 = vld [vmem:[#allocation2 + $0x7f] sm:$0xff] }
  0x3a   : > { %7326 = vst [vmem:[#allocation21_spill] sm:$0xff] %v6224_v32  ;;  %v6234_v39 = vld [vmem:[#allocation2 + $0xb0] sm:$0xff]  ;;  %v6238_v46 = vld [vmem:[#allocation2 + $0x87] sm:$0xff]  ;;  %v6267_v30 = vld [vmem:[#allocation2 + $0x13f] sm:$0xff] }
  0x3b   : > { %7328 = vst [vmem:[#allocation23_spill] sm:$0xff] %v6234_v39  ;;  %v6243_v48 = vld [vmem:[#allocation2 + $0x168] sm:$0xff]  ;;  %v6245_v51 = vld [vmem:[#allocation2 + $0x170] sm:$0xff]  ;;  %v6247_v52 = vld [vmem:[#allocation2 + $0xc0] sm:$0xff] }
  0x3c   : > { %4988 = vmatmul.mubr.msk.bf16.gmra.mrb[12].mxu0 %vm379_vm1, %v525_v22  ;;  %7329 = vst [vmem:[#allocation24_spill] sm:$0xff] %v6243_v48  ;;  %7330 = vst [vmem:[#allocation25_spill] sm:$0xff] %v6245_v51  ;;  %v6251_v22 = vld [vmem:[#allocation2 + $0x178] sm:$0xff]  ;;  %v2512_v47 = vpack.c.bf16 %v6245_v51, %v6243_v48  ;;  %v6261_v31 = vld [vmem:[#allocation2 + $0x12f] sm:$0xff] }
  0x3d   : > { %4991 = vmatprep.mubr.msk.bf16.mxu0 %vm379_vm1, %v526_v24  ;;  %7331 = vst [vmem:[#allocation26_spill] sm:$0xff] %v6247_v52  ;;  %7332 = vst [vmem:[#allocation27_spill] sm:$0xff] %v6251_v22  ;;  %v527_v24 = vpack.c.bf16 %v6234_v39, %v6224_v32  ;;  %v6263_v17 = vld [vmem:[#allocation2 + $0x137] sm:$0xff]  ;;  %v6269_v16 = vld [vmem:[#allocation2 + $0x147] sm:$0xff] }
  0x3e   : > { %5222 = vmatmul.mubr.msk.bf16.gmra.mrb[12].mxu1 %vm379_vm1, %v2510_v23  ;;  %v6253_v23 = vld [vmem:[#allocation2 + $0x180] sm:$0xff]  ;;  %v6278_v60 = vld [vmem:[#allocation2 + $0x190] sm:$0xff]  ;;  %v270_v5 = vld [vmem:[%s5958_s7 + $0xf8] sm:$0xff] }
  0x3f   : > { %5225 = vmatprep.mubr.msk.bf16.mxu1 %vm379_vm1, %v2511_v27  ;;  %7333 = vst [vmem:[#allocation28_spill] sm:$0xff] %v6253_v23  ;;  %v528_v27 = vpack.c.bf16 %v6247_v52, %v6226_v33  ;;  %v2513_v56 = vpack.c.bf16 %v6253_v23, %v6251_v22  ;;  %7335 = vst [vmem:[#allocation30_spill] sm:$0xff] %v6278_v60  ;;  %v6280_v52 = vld [vmem:[#allocation2 + $0x8f] sm:$0xff]  ;;  %v6282_v51 = vld [vmem:[#allocation2 + $0x97] sm:$0xff] }
  0x40   : > { %v6286_v23 = vld [vmem:[#allocation2 + $0xc8] sm:$0xff]  ;;  %v6288_v2 = vld [vmem:[#allocation2 + $0x9f] sm:$0xff]  ;;  %v458_v33 = vld [vmem:[#allocation2 + $0x17] sm:$0xff] }
  0x41   : > { %7336 = vst [vmem:[#allocation31_spill] sm:$0xff] %v6286_v23  ;;  %v6290_v22 = vld [vmem:[#allocation2 + $0xa7] sm:$0xff]  ;;  %v459_v39 = vld [vmem:[#allocation2 + $0x1f] sm:$0xff]  ;;  %v6299_v48 = vld [vmem:[#allocation2 + $0xd7] sm:$0xff]  ;;  %v529_v20 = vpack.c.bf16 %v6273_v61, %v6286_v23 }
  0x42   : > { %v482_v32 = vpack.c.bf16 %v459_v39, %v458_v33  ;;  %v6309_v15 = vld [vmem:[#allocation2 + $0x157] sm:$0xff]  ;;  %v6315_v12 = vld [vmem:[#allocation2 + $0x167] sm:$0xff]  ;;  %v6322_v33 = vld [vmem:[#allocation2 + $0xaf] sm:$0xff] }
  0x43   : > { %v460_v61 = vld [vmem:[#allocation2 + $0x27] sm:$0xff]  ;;  %v6324_v39 = vld [vmem:[#allocation2 + $0xb7] sm:$0xff]  ;;  %v6329_v23 = vld [vmem:[#allocation2 + $0xbf] sm:$0xff] }
  0x44   : > { %4992 = vmatmul.mubr.msk.bf16.gmra.mrb[16].mxu0 %vm379_vm1, %v527_v24  ;;  %v6295_v24 = vld [vmem:[#allocation2 + $0x188] sm:$0xff]  ;;  %v483_v0 = vpack.c.bf16 %v6138_v49, %v460_v61  ;;  %v6353_v43 = vld [vmem:[#allocation2 + $0x177] sm:$0xff]  ;;  %v484_v61 = vpack.c.bf16 %v6151_v54, %v6149_v53 }
  0x45   : > { %4995 = vmatprep.mubr.msk.bf16.mxu0 %vm379_vm1, %v528_v27  ;;  %7337 = vst [vmem:[#allocation32_spill] sm:$0xff] %v6295_v24  ;;  %v6301_v27 = vld [vmem:[#allocation2 + $0xdf] sm:$0xff]  ;;  %v2514_v1 = vpack.c.bf16 %v6278_v60, %v6295_v24  ;;  %v269_v24 = vld [vmem:[%s5958_s7 + $0xf0] sm:$0xff]  ;;  %v6331_v3 = vld [vmem:[#allocation2 + $0xc7] sm:$0xff] }
  0x46   : > { %5226 = vmatmul.mubr.msk.bf16.gmra.mrb[16].mxu1 %vm379_vm1, %v2512_v47  ;;  %v2467_v19 = vpack.c.bf16 %v6301_v27, %v6299_v48  ;;  %v6313_v47 = vld [vmem:[#allocation2 + $0x15f] sm:$0xff]  ;;  %v307_v14 = vmul.f32 %v5948_v6, %v269_v24  ;;  %v6351_v42 = vld [vmem:[#allocation2 + $0x16f] sm:$0xff] }
  0x47   : > { %5229 = vmatprep.mubr.msk.bf16.mxu1 %vm379_vm1, %v2513_v56  ;;  %v6307_v56 = vld [vmem:[#allocation2 + $0x14f] sm:$0xff]  ;;  %v443_v24 = vld [vmem:[%s7220_s3 + $0x18] sm:$0xff] }
  0x48   : > { %v6367_v41 = vpack.c.bf16 %v443_v24, %v443_v24  ;;  %v6425_v24 = vpack.c.bf16 %v6267_v30, %v6263_v17  ;;  %v6509_v7 = vld [vmem:[#allocation2 + $0xe9] sm:$0xff]  ;;  %v6511_v34 = vld [vmem:[#allocation2 + $0xf1] sm:$0xff] }
  0x49   : > { %7359 = vst [vmem:[#allocation54_spill] sm:$0xff] %v6509_v7  ;;  %7360 = vst [vmem:[#allocation55_spill] sm:$0xff] %v6511_v34  ;;  %v6537_v40 = vld [vmem:[#allocation2 + $0x49] sm:$0xff]  ;;  %v6539_v13 = vld [vmem:[#allocation2 + $0x51] sm:$0xff] }
  0x4a   : > { %7345 = vst [vmem:[#allocation40_spill] sm:$0xff] %v6425_v24  ;;  %7364 = vst [vmem:[#allocation59_spill] sm:$0xff] %v6537_v40 }
  0x4b   : > { %7365 = vst [vmem:[#allocation60_spill] sm:$0xff] %v6539_v13 }
  0x4c   : > { %4996 = vmatmul.mubr.msk.bf16.gmra.mrb[20].mxu0 %vm379_vm1, %v529_v20  ;;  %v6338_v20 = vld [vmem:[#allocation2 + $0xe7] sm:$0xff] }
  0x4d   : > { %5001 = vmatprep.mubr.msk.bf16.mxu0 %vm379_vm1, %v482_v32  ;;  %v345_v32 = vadd.f32 %v5963_v8, %v307_v14  ;;  %v6361_v14 = vld [vmem:[#allocation2 + $0x187] sm:$0xff] }
  0x4e   : > { %5230 = vmatmul.mubr.msk.bf16.gmra.mrb[20].mxu1 %vm379_vm1, %v2514_v1  ;;  %v308_v1 = vmul.f32 %v5948_v6, %v270_v5  ;;  %v924_v6 = vsel %vm566_vm0, %v5976_v18, 0  ;;  %v6359_v5 = vld [vmem:[#allocation2 + $0x17f] sm:$0xff]  ;;  %v6439_v18 = vpack.c.bf16 %v6280_v52, %v6238_v46 }
  0x4f   : > { %5235 = vmatprep.mubr.msk.bf16.mxu1 %vm379_vm1, %v2467_v19  ;;  %v2468_v19 = vpack.c.bf16 %v6140_v50, %v6338_v20  ;;  %v377_v44 = vmax.f32 %v345_v32, 0.0  ;;  %v6373_v32 = vld [vmem:[#allocation2 + $0xcf] sm:$0xff] }
  0x50   : > { %v346_v60 = vadd.f32 %v5963_v8, %v308_v1  ;;  %7346 = vst [vmem:[#allocation41_spill] sm:$0xff] %v6439_v18  ;;  %v6443_v8 = vpack.c.bf16 %v6307_v56, %v6269_v16 }
  0x51   : > { %431 = vst.msk [vmem:[#allocation2 + $0x198] sm:$0xff] %vm379_vm1, %v377_v44  ;;  %v6387_v44 = vpack.c.bf16 %v6178_v21, %v6153_v55 }
  0x52   : > { %v378_v1 = vmax.f32 %v346_v60, 0.0  ;;  %7347 = vst [vmem:[#allocation42_spill] sm:$0xff] %v6443_v8  ;;  %v6463_v60 = vpack.c.bf16 %v6322_v33, %v6290_v22 }
  0x53   : > { %7338 = vst [vmem:[#allocation33_spill] sm:$0xff] %v6387_v44 }
  0x54   : > { %5002 = vmatmul.mubr.msk.bf16.vlgmr.msra.gmra.mrb[0].mxu0 %vm379_vm1, %v483_v0  ;;  %432 = vst.msk [vmem:[#allocation2 + $0x1a0] sm:$0xff] %vm379_vm1, %v378_v1  ;;  %v6393_v0 = vpack.c.bf16 %v6209_v25, %v6161_v59  ;;  %v6421_v1 = vpack.c.bf16 %v6236_v45, %v6230_v38  ;;  %7350 = vst [vmem:[#allocation45_spill] sm:$0xff] %v6463_v60 }
  0x55   : > { %5026 = vmatpush3.bf16.msra.mxu0 %v924_v6  ;;  %5005 = vmatprep.mubr.msk.bf16.mxu0 %vm379_vm1, %v484_v61  ;;  %v6417_v61 = vpack.c.bf16 %v6261_v31, %v6217_v29 }
  0x56   : > { %5236 = vmatmul.mubr.msk.bf16.vlgmr.msra.gmra.mrb[0].mxu1 %vm379_vm1, %v2468_v19  ;;  %5828 = vmatprep.subr.msk.bf16.mxu0 %vm566_vm0, %v6367_v41  ;;  %7339 = vst [vmem:[#allocation34_spill] sm:$0xff] %v6393_v0  ;;  %v6397_v19 = vpack.c.bf16 %v6184_v10, %v6182_v9  ;;  %7344 = vst [vmem:[#allocation39_spill] sm:$0xff] %v6421_v1 }
  0x57   : > { %5260 = vmatpush3.bf16.msra.mxu1 %v924_v6  ;;  %5239 = vmatprep.mubr.msk.bf16.mxu1 %vm379_vm1, %v2469_v36  ;;  %v6401_v36 = vpack.c.bf16 %v6215_v28, %v6211_v26  ;;  %v6413_v6 = vpack.c.bf16 %v6228_v37, %v6186_v11  ;;  %7343 = vst [vmem:[#allocation38_spill] sm:$0xff] %v6417_v61 }
  0x58   : > { %5837 = vmatprep.subr.msk.bf16.mxu1 %vm566_vm0, %v6367_v41  ;;  %7340 = vst [vmem:[#allocation35_spill] sm:$0xff] %v6397_v19 }
  0x59   : > { %7341 = vst [vmem:[#allocation36_spill] sm:$0xff] %v6401_v36  ;;  %7342 = vst [vmem:[#allocation37_spill] sm:$0xff] %v6413_v6 }
  0x5c   : > { %5006 = vmatmul.mubr.msk.bf16.gmra.mrb[4].mxu0 %vm379_vm1, %v6387_v44  ;;  %v6506_v44 = vld [vmem:[#allocation2 + $0x31] sm:$0xff] }
  0x5d   : > { %5009 = vmatprep.mubr.msk.bf16.mxu0 %vm379_vm1, %v6397_v19  ;;  %v6489_v19 = vld [vmem:[#allocation2 + $0xe1] sm:$0xff]  ;;  %7358 = vst [vmem:[#allocation53_spill] sm:$0xff] %v6506_v44 }
  0x5e   : > { %5240 = vmatmul.mubr.msk.bf16.gmra.mrb[4].mxu1 %vm379_vm1, %v6393_v0  ;;  %7355 = vst [vmem:[#allocation50_spill] sm:$0xff] %v6489_v19  ;;  %v853_v0 = vld [vmem:[#allocation2 + $0x29] sm:$0xff] }
  0x5f   : > { %5243 = vmatprep.mubr.msk.bf16.mxu1 %vm379_vm1, %v6401_v36  ;;  %v6487_v36 = vld [vmem:[#allocation2 + $0xd9] sm:$0xff] }
  0x60   : > { %7354 = vst [vmem:[#allocation49_spill] sm:$0xff] %v6487_v36 }
  0x64   : > { %5010 = vmatmul.mubr.msk.bf16.gmra.mrb[8].mxu0 %vm379_vm1, %v6413_v6  ;;  %v852_v6 = vld [vmem:[#allocation2 + $0x21] sm:$0xff] }
  0x65   : > { %5013 = vmatprep.mubr.msk.bf16.mxu0 %vm379_vm1, %v6421_v1  ;;  %v6451_v1 = vpack.c.bf16 %v6313_v47, %v6309_v15 }
  0x66   : > { %5244 = vmatmul.mubr.msk.bf16.gmra.mrb[8].mxu1 %vm379_vm1, %v6417_v61  ;;  %v6447_v61 = vpack.c.bf16 %v6288_v2, %v6282_v51 }
  0x67   : > { %5247 = vmatprep.mubr.msk.bf16.mxu1 %vm379_vm1, %v6425_v24  ;;  %7349 = vst [vmem:[#allocation44_spill] sm:$0xff] %v6451_v1  ;;  %v6467_v24 = vpack.c.bf16 %v6351_v42, %v6315_v12 }
  0x68   : > { %7348 = vst [vmem:[#allocation43_spill] sm:$0xff] %v6447_v61 }
  0x69   : > { %7351 = vst [vmem:[#allocation46_spill] sm:$0xff] %v6467_v24 }
  0x6c   : > { %5014 = vmatmul.mubr.msk.bf16.gmra.mrb[12].mxu0 %vm379_vm1, %v6439_v18  ;;  %v6471_v18 = vpack.c.bf16 %v6329_v23, %v6324_v39 }
  0x6d   : > { %5017 = vmatprep.mubr.msk.bf16.mxu0 %vm379_vm1, %v6447_v61  ;;  %v851_v61 = vld [vmem:[#allocation2 + $0x19] sm:$0xff] }
  0x6e   : > { %5248 = vmatmul.mubr.msk.bf16.gmra.mrb[12].mxu1 %vm379_vm1, %v6443_v8  ;;  %7352 = vst [vmem:[#allocation47_spill] sm:$0xff] %v6471_v18  ;;  %v6475_v8 = vpack.c.bf16 %v6359_v5, %v6353_v43 }
  0x6f   : > { %5251 = vmatprep.mubr.msk.bf16.mxu1 %vm379_vm1, %v6451_v1  ;;  %v6485_v1 = vld [vmem:[#allocation2 + $0x18f] sm:$0xff] }
  0x70   : > { %7353 = vst [vmem:[#allocation48_spill] sm:$0xff] %v6475_v8 }
  0x74   : > { %5018 = vmatmul.mubr.msk.bf16.gmra.mrb[16].mxu0 %vm379_vm1, %v6463_v60  ;;  %v6493_v60 = vpack.c.bf16 %v6373_v32, %v6331_v3 }
  0x75   : > { %5021 = vmatprep.mubr.msk.bf16.mxu0 %vm379_vm1, %v6471_v18  ;;  %v875_v18 = vpack.c.bf16 %v852_v6, %v851_v61  ;;  %v6513_v6 = vld [vmem:[#allocation2 + $0x39] sm:$0xff]  ;;  %v6515_v61 = vld [vmem:[#allocation2 + $0x41] sm:$0xff] }
  0x76   : > { %5252 = vmatmul.mubr.msk.bf16.gmra.mrb[16].mxu1 %vm379_vm1, %v6467_v24  ;;  %7356 = vst [vmem:[#allocation51_spill] sm:$0xff] %v6493_v60  ;;  %v6497_v24 = vpack.c.bf16 %v6485_v1, %v6361_v14  ;;  %7361 = vst [vmem:[#allocation56_spill] sm:$0xff] %v6515_v61  ;;  %v877_v35 = vpack.c.bf16 %v6515_v61, %v6513_v6  ;;  %v6546_v61 = vld [vmem:[#allocation2 + $0x59] sm:$0xff] }
  0x77   : > { %5255 = vmatprep.mubr.msk.bf16.mxu1 %vm379_vm1, %v6475_v8  ;;  %v2853_v8 = vpack.c.bf16 %v6489_v19, %v6487_v36  ;;  %v6518_v19 = vld [vmem:[#allocation2 + $0xf9] sm:$0xff]  ;;  %v1136_v36 = vsel %vm566_vm0, %v6367_v41, 0  ;;  %v6544_v41 = vld [vmem:[#allocation2 + $0x111] sm:$0xff]  ;;  %7368 = vst [vmem:[#allocation63_spill] sm:$0xff] %v6546_v61 }
  0x78   : > { %7357 = vst [vmem:[#allocation52_spill] sm:$0xff] %v6497_v24  ;;  %7362 = vst [vmem:[#allocation57_spill] sm:$0xff] %v6518_v19 }
  0x79   : > { %7367 = vst [vmem:[#allocation62_spill] sm:$0xff] %v6544_v41 }
  0x7c   : > { %5022 = vmatmul.mubr.msk.bf16.gmra.mrb[20].mxu0 %vm379_vm1, %v6493_v60  ;;  %v876_v60 = vpack.c.bf16 %v6506_v44, %v853_v0 }
  0x7d   : > { %5027 = vmatprep.mubr.msk.bf16.mxu0 %vm379_vm1, %v875_v18  ;;  %v444_v18 = vld [vmem:[%s7220_s3 + $0x20] sm:$0xff] }
  0x7e   : > { %5256 = vmatmul.mubr.msk.bf16.gmra.mrb[20].mxu1 %vm379_vm1, %v6497_v24  ;;  %v6520_v24 = vld [vmem:[#allocation2 + $0x101] sm:$0xff]  ;;  %v6533_v44 = vpack.c.bf16 %v444_v18, %v444_v18 }
  0x7f   : > { %5261 = vmatprep.mubr.msk.bf16.mxu1 %vm379_vm1, %v2853_v8  ;;  %7363 = vst [vmem:[#allocation58_spill] sm:$0xff] %v6520_v24  ;;  %v2854_v8 = vpack.c.bf16 %v6511_v34, %v6509_v7  ;;  %v2855_v0 = vpack.c.bf16 %v6520_v24, %v6518_v19  ;;  %v6541_v7 = vld [vmem:[#allocation2 + $0x109] sm:$0xff]  ;;  %v6548_v18 = vld [vmem:[#allocation2 + $0x61] sm:$0xff]  ;;  %v6600_v34 = vld [vmem:[#allocation2 + $0x91] sm:$0xff] }
  0x80   : > { %7366 = vst [vmem:[#allocation61_spill] sm:$0xff] %v6541_v7  ;;  %7369 = vst [vmem:[#allocation64_spill] sm:$0xff] %v6548_v18  ;;  %v879_v24 = vpack.c.bf16 %v6548_v18, %v6546_v61  ;;  %v6570_v19 = vld [vmem:[#allocation2 + $0x69] sm:$0xff]  ;;  %v6579_v18 = vld [vmem:[#allocation2 + $0x79] sm:$0xff] }
  0x81   : > { %7372 = vst [vmem:[#allocation67_spill] sm:$0xff] %v6570_v19  ;;  %7376 = vst [vmem:[#allocation71_spill] sm:$0xff] %v6579_v18  ;;  %v6581_v61 = vld [vmem:[#allocation2 + $0x81] sm:$0xff] }
  0x82   : > { %7377 = vst [vmem:[#allocation72_spill] sm:$0xff] %v6581_v61  ;;  %7381 = vst [vmem:[#allocation76_spill] sm:$0xff] %v6600_v34 }
  0x84   : > { %5028 = vmatmul.mubr.msk.bf16.vlgmr.msra.gmra.mrb[0].mxu0 %vm379_vm1, %v876_v60  ;;  %v6551_v60 = vld [vmem:[#allocation2 + $0x119] sm:$0xff] }
  0x85   : > { %5052 = vmatpush3.bf16.msra.mxu0 %v1136_v36  ;;  %5031 = vmatprep.mubr.msk.bf16.mxu0 %vm379_vm1, %v877_v35  ;;  %7370 = vst [vmem:[#allocation65_spill] sm:$0xff] %v6551_v60  ;;  %v2856_v35 = vpack.c.bf16 %v6544_v41, %v6541_v7  ;;  %v6577_v41 = vld [vmem:[#allocation2 + $0x131] sm:$0xff]  ;;  %v6598_v7 = vld [vmem:[#allocation2 + $0x89] sm:$0xff] }
  0x86   : > { %5262 = vmatmul.mubr.msk.bf16.vlgmr.msra.gmra.mrb[0].mxu1 %vm379_vm1, %v2854_v8  ;;  %v6553_v8 = vld [vmem:[#allocation2 + $0x121] sm:$0xff]  ;;  %5829 = vmatprep.subr.msk.bf16.mxu0 %vm566_vm0, %v6533_v44  ;;  %7375 = vst [vmem:[#allocation70_spill] sm:$0xff] %v6577_v41  ;;  %7380 = vst [vmem:[#allocation75_spill] sm:$0xff] %v6598_v7 }
  0x87   : > { %5286 = vmatpush3.bf16.msra.mxu1 %v1136_v36  ;;  %5265 = vmatprep.mubr.msk.bf16.mxu1 %vm379_vm1, %v2855_v0  ;;  %7371 = vst [vmem:[#allocation66_spill] sm:$0xff] %v6553_v8  ;;  %v878_v36 = vpack.c.bf16 %v6539_v13, %v6537_v40  ;;  %v2857_v0 = vpack.c.bf16 %v6553_v8, %v6551_v60  ;;  %v6572_v13 = vld [vmem:[#allocation2 + $0x71] sm:$0xff]  ;;  %v6574_v40 = vld [vmem:[#allocation2 + $0x129] sm:$0xff]  ;;  %v6583_v8 = vld [vmem:[#allocation2 + $0x139] sm:$0xff] }
  0x88   : > { %5838 = vmatprep.subr.msk.bf16.mxu1 %vm566_vm0, %v6533_v44  ;;  %7373 = vst [vmem:[#allocation68_spill] sm:$0xff] %v6572_v13  ;;  %7374 = vst [vmem:[#allocation69_spill] sm:$0xff] %v6574_v40  ;;  %v881_v60 = vpack.c.bf16 %v6581_v61, %v6579_v18  ;;  %v6607_v61 = vld [vmem:[#allocation2 + $0x99] sm:$0xff]  ;;  %v6609_v18 = vld [vmem:[#allocation2 + $0xa1] sm:$0xff] }
  0x89   : > { %7378 = vst [vmem:[#allocation73_spill] sm:$0xff] %v6583_v8  ;;  %7384 = vst [vmem:[#allocation79_spill] sm:$0xff] %v6607_v61 }
  0x8a   : > { %7385 = vst [vmem:[#allocation80_spill] sm:$0xff] %v6609_v18 }
  0x8c   : > { %5032 = vmatmul.mubr.msk.bf16.gmra.mrb[4].mxu0 %vm379_vm1, %v878_v36  ;;  %v6585_v36 = vld [vmem:[#allocation2 + $0x141] sm:$0xff] }
  0x8d   : > { %5035 = vmatprep.mubr.msk.bf16.mxu0 %vm379_vm1, %v879_v24  ;;  %7379 = vst [vmem:[#allocation74_spill] sm:$0xff] %v6585_v36  ;;  %v880_v24 = vpack.c.bf16 %v6572_v13, %v6570_v19  ;;  %v6602_v13 = vld [vmem:[#allocation2 + $0x149] sm:$0xff]  ;;  %v6628_v19 = vld [vmem:[#allocation2 + $0xb1] sm:$0xff] }
  0x8e   : > { %5266 = vmatmul.mubr.msk.bf16.gmra.mrb[4].mxu1 %vm379_vm1, %v2856_v35  ;;  %v2858_v35 = vpack.c.bf16 %v6577_v41, %v6574_v40  ;;  %7382 = vst [vmem:[#allocation77_spill] sm:$0xff] %v6602_v13  ;;  %v6605_v41 = vld [vmem:[#allocation2 + $0x151] sm:$0xff]  ;;  %v6626_v40 = vld [vmem:[#allocation2 + $0xa9] sm:$0xff]  ;;  %7388 = vst [vmem:[#allocation83_spill] sm:$0xff] %v6628_v19 }
  0x8f   : > { %5269 = vmatprep.mubr.msk.bf16.mxu1 %vm379_vm1, %v2857_v0  ;;  %v2859_v0 = vpack.c.bf16 %v6585_v36, %v6583_v8  ;;  %7383 = vst [vmem:[#allocation78_spill] sm:$0xff] %v6605_v41  ;;  %v6611_v36 = vld [vmem:[#allocation2 + $0x159] sm:$0xff]  ;;  %v883_v8 = vpack.c.bf16 %v6609_v18, %v6607_v61  ;;  %v6637_v61 = vld [vmem:[#allocation2 + $0xc1] sm:$0xff] }
  0x90   : > { %7386 = vst [vmem:[#allocation81_spill] sm:$0xff] %v6611_v36  ;;  %v6635_v18 = vld [vmem:[#allocation2 + $0xb9] sm:$0xff]  ;;  %7390 = vst [vmem:[#allocation85_spill] sm:$0xff] %v6637_v61 }
  0x94   : > { %5036 = vmatmul.mubr.msk.bf16.gmra.mrb[8].mxu0 %vm379_vm1, %v880_v24  ;;  %v6613_v24 = vld [vmem:[#allocation2 + $0x161] sm:$0xff] }
  0x95   : > { %5039 = vmatprep.mubr.msk.bf16.mxu0 %vm379_vm1, %v881_v60  ;;  %7387 = vst [vmem:[#allocation82_spill] sm:$0xff] %v6613_v24  ;;  %v882_v60 = vpack.c.bf16 %v6600_v34, %v6598_v7  ;;  %v6630_v34 = vld [vmem:[#allocation2 + $0x169] sm:$0xff]  ;;  %v6656_v7 = vld [vmem:[#allocation2 + $0xd1] sm:$0xff] }
  0x96   : > { %5270 = vmatmul.mubr.msk.bf16.gmra.mrb[8].mxu1 %vm379_vm1, %v2858_v35  ;;  %v2860_v35 = vpack.c.bf16 %v6605_v41, %v6602_v13  ;;  %v6633_v41 = vld [vmem:[#allocation2 + $0x171] sm:$0xff]  ;;  %v6654_v13 = vld [vmem:[#allocation2 + $0xc9] sm:$0xff] }
  0x97   : > { %5273 = vmatprep.mubr.msk.bf16.mxu1 %vm379_vm1, %v2859_v0  ;;  %v2861_v0 = vpack.c.bf16 %v6613_v24, %v6611_v36  ;;  %7389 = vst [vmem:[#allocation84_spill] sm:$0xff] %v6633_v41  ;;  %v6639_v24 = vld [vmem:[#allocation2 + $0x179] sm:$0xff]  ;;  %v885_v36 = vpack.c.bf16 %v6637_v61, %v6635_v18  ;;  %v886_v61 = vpack.c.bf16 %v6656_v7, %v6654_v13 }
  0x9c   : > { %5040 = vmatmul.mubr.msk.bf16.gmra.mrb[12].mxu0 %vm379_vm1, %v882_v60  ;;  %v6641_v60 = vld [vmem:[#allocation2 + $0x181] sm:$0xff] }
  0x9d   : > { %5043 = vmatprep.mubr.msk.bf16.mxu0 %vm379_vm1, %v883_v8  ;;  %v884_v8 = vpack.c.bf16 %v6628_v19, %v6626_v40  ;;  %v6659_v19 = vld [vmem:[#allocation2 + $0x189] sm:$0xff] }
  0x9e   : > { %5274 = vmatmul.mubr.msk.bf16.gmra.mrb[12].mxu1 %vm379_vm1, %v2860_v35  ;;  %v2862_v35 = vpack.c.bf16 %v6633_v41, %v6630_v34  ;;  %v6661_v41 = vld [vmem:[#allocation2 + $0x191] sm:$0xff] }
  0x9f   : > { %5277 = vmatprep.mubr.msk.bf16.mxu1 %vm379_vm1, %v2861_v0  ;;  %v2863_v0 = vpack.c.bf16 %v6641_v60, %v6639_v24  ;;  %7391 = vst [vmem:[#allocation86_spill] sm:$0xff] %v6661_v41 }
  0xa4   : > { %5044 = vmatmul.mubr.msk.bf16.gmra.mrb[16].mxu0 %vm379_vm1, %v884_v8  ;;  %v2864_v8 = vpack.c.bf16 %v6661_v41, %v6659_v19  ;;  %v1348_v41 = vsel %vm566_vm0, %v6533_v44, 0 }
  0xa5   : > { %5047 = vmatprep.mubr.msk.bf16.mxu0 %vm379_vm1, %v885_v36  ;;  %v7392_v36 = vpack.c.bf16 %v6149_v53, %v6138_v49  ;;  %v7395_v49 = vpack.c.bf16 %v6161_v59, %v6159_v58  ;;  %v7397_v53 = vpack.c.bf16 %v6211_v26, %v6209_v25  ;;  %v7401_v58 = vpack.c.bf16 %v6263_v17, %v6261_v31  ;;  %v6748_v25 = vld [vmem:[#allocation2 + $0x197] sm:$0xff] }
  0xa6   : > { %5278 = vmatmul.mubr.msk.bf16.gmra.mrb[16].mxu1 %vm379_vm1, %v2862_v35  ;;  %v7393_v35 = vpack.c.bf16 %v6157_v57, %v6140_v50  ;;  %v7396_v50 = vpack.c.bf16 %v6182_v9, %v6178_v21  ;;  %v7400_v57 = vpack.c.bf16 %v6230_v38, %v6228_v37  ;;  %v7402_v59 = vpack.c.bf16 %v6238_v46, %v6236_v45  ;;  %v6771_v31 = vld [vmem:[#allocation2 + $0xf8] sm:$0xff] }
  0xa7   : > { %5281 = vmatprep.mubr.msk.bf16.mxu1 %vm379_vm1, %v2863_v0  ;;  %v445_v0 = vld [vmem:[%s7220_s3 + $0x28] sm:$0xff]  ;;  %v7403_v21 = vpack.c.bf16 %v6269_v16, %v6267_v30  ;;  %v7404_v9 = vpack.c.bf16 %v6282_v51, %v6280_v52  ;;  %v7407_v16 = vpack.c.bf16 %v6315_v12, %v6313_v47  ;;  %v7408_v17 = vpack.c.bf16 %v6324_v39, %v6322_v33  ;;  %v6769_v30 = vld [vmem:[#allocation2 + $0xf0] sm:$0xff]  ;;  %v6786_v52 = vld [vmem:[#allocation2 + $0x100] sm:$0xff] }
  0xa8   : > { %v7410_v12 = vpack.c.bf16 %v6331_v3, %v6329_v23  ;;  %v7411_v26 = vpack.c.bf16 %v6361_v14, %v6359_v5  ;;  %v1276_v3 = vld [vmem:[#allocation2 + $0x38] sm:$0xff]  ;;  %v3271_v45 = vpack.c.bf16 %v6771_v31, %v6769_v30  ;;  %v7413_v46 = vpack.c.bf16 %v6338_v20, %v6301_v27  ;;  %v6783_v51 = vld [vmem:[#allocation2 + $0x48] sm:$0xff]  ;;  %v6791_v47 = vld [vmem:[#allocation2 + $0x110] sm:$0xff] }
  0xa9   : > { %v446_v27 = vld [vmem:[%s7220_s3 + $0x30] sm:$0xff]  ;;  %v3273_v20 = vpack.c.bf16 %v6069_v63, %v6791_v47 }
  0xaa   : > { %v455_v5 = vpack.c.bf16 %v446_v27, %v446_v27  ;;  %v7417_v63 = vld [vmem:[#allocation9_spill] sm:$0xff] }
  0xac   : > { %5048 = vmatmul.mubr.msk.bf16.gmra.mrb[20].mxu0 %vm379_vm1, %v886_v61  ;;  %v454_v61 = vpack.c.bf16 %v445_v0, %v445_v0  ;;  %v7421_v0 = vld [vmem:[#allocation3_spill] sm:$0xff] }
  0xad   : > { %5053 = vmatprep.mubr.msk.bf16.mxu0 %vm379_vm1, %v7392_v36 }
  0xae   : > { %5282 = vmatmul.mubr.msk.bf16.gmra.mrb[20].mxu1 %vm379_vm1, %v2864_v8  ;;  %v7394_v8 = vpack.c.bf16 %v6153_v55, %v6151_v54  ;;  %v7398_v54 = vpack.c.bf16 %v6186_v11, %v6184_v10  ;;  %v7399_v55 = vpack.c.bf16 %v6217_v29, %v6215_v28  ;;  %v7405_v10 = vpack.c.bf16 %v6309_v15, %v6307_v56  ;;  %v6767_v28 = vld [vmem:[#allocation2 + $0x1a7] sm:$0xff]  ;;  %v1275_v29 = vld [vmem:[#allocation2 + $0x30] sm:$0xff] }
  0xaf   : > { %5287 = vmatprep.mubr.msk.bf16.mxu1 %vm379_vm1, %v7393_v35  ;;  %v7406_v11 = vpack.c.bf16 %v6290_v22, %v6288_v2  ;;  %v7409_v15 = vpack.c.bf16 %v6353_v43, %v6351_v42  ;;  %v3072_v2 = vpack.c.bf16 %v6748_v25, %v6485_v1  ;;  %v7412_v42 = vpack.c.bf16 %v6299_v48, %v6373_v32  ;;  %v6764_v43 = vld [vmem:[#allocation2 + $0x19f] sm:$0xff]  ;;  %v6788_v22 = vld [vmem:[#allocation2 + $0x50] sm:$0xff] }
  0xb0   : > { %v3073_v37 = vpack.c.bf16 %v6767_v28, %v6764_v43  ;;  %v1299_v38 = vpack.c.bf16 %v1276_v3, %v1275_v29  ;;  %v1277_v48 = vld [vmem:[#allocation2 + $0x40] sm:$0xff]  ;;  %v3272_v56 = vpack.c.bf16 %v6074_v4, %v6786_v52  ;;  %v1560_v33 = vsel %vm566_vm0, %v454_v61, 0  ;;  %v7414_v4 = vld [vmem:[#allocation4_spill] sm:$0xff]  ;;  %v7416_v32 = vld [vmem:[#allocation6_spill] sm:$0xff] }
  0xb1   : > { %v1300_v23 = vpack.c.bf16 %v6783_v51, %v1277_v48  ;;  %v1301_v39 = vpack.c.bf16 %v6067_v62, %v6788_v22  ;;  %v7415_v62 = vld [vmem:[#allocation8_spill] sm:$0xff]  ;;  %v1303_v44 = vpack.c.bf16 %v7417_v63, %v7416_v32  ;;  %v7418_v1 = vld [vmem:[#allocation7_spill] sm:$0xff]  ;;  %v7420_v35 = vld [vmem:[#allocation5_spill] sm:$0xff] }
  0xb2   : > { %v3274_v14 = vpack.c.bf16 %v7415_v62, %v7414_v4  ;;  %v7437_v3 = vld [vmem:[#allocation25_spill] sm:$0xff]  ;;  %v7439_v48 = vld [vmem:[#allocation26_spill] sm:$0xff]  ;;  %v6861_v32 = vld [vmem:[#allocation2 + $0xe0] sm:$0xff] }
  0xb3   : > { %v7444_v62 = vld [vmem:[#allocation30_spill] sm:$0xff]  ;;  %v6863_v63 = vld [vmem:[#allocation2 + $0xe8] sm:$0xff] }
  0xb4   : > { %5054 = vmatmul.mubr.msk.bf16.vlgmr.msra.gmra.mrb[0].mxu0 %vm379_vm1, %v7394_v8  ;;  %v7423_v8 = vld [vmem:[#allocation10_spill] sm:$0xff] }
  0xb5   : > { %5078 = vmatpush3.bf16.msra.mxu0 %v1348_v41  ;;  %5057 = vmatprep.mubr.msk.bf16.mxu0 %vm379_vm1, %v7396_v50 }
  0xb6   : > { %5288 = vmatmul.mubr.msk.bf16.vlgmr.msra.gmra.mrb[0].mxu1 %vm379_vm1, %v7395_v49  ;;  %5830 = vmatprep.subr.msk.bf16.mxu0 %vm566_vm0, %v454_v61  ;;  %v7424_v49 = vld [vmem:[#allocation13_spill] sm:$0xff] }
  0xb7   : > { %5312 = vmatpush3.bf16.msra.mxu1 %v1348_v41  ;;  %5291 = vmatprep.mubr.msk.bf16.mxu1 %vm379_vm1, %v7397_v53  ;;  %v7419_v41 = vld [vmem:[#allocation11_spill] sm:$0xff]  ;;  %v1304_v50 = vpack.c.bf16 %v7424_v49, %v7423_v8  ;;  %v7425_v53 = vld [vmem:[#allocation12_spill] sm:$0xff]  ;;  %v7447_v8 = vld [vmem:[#allocation57_spill] sm:$0xff] }
  0xb8   : > { %5839 = vmatprep.subr.msk.bf16.mxu1 %vm566_vm0, %v454_v61  ;;  %v3275_v36 = vpack.c.bf16 %v7419_v41, %v7418_v1  ;;  %v7422_v61 = vpack.c.bf16 %v7420_v35, %v7421_v0  ;;  %v6868_v1 = vld [vmem:[#allocation2 + $0x1a8] sm:$0xff]  ;;  %v1310_v41 = vpack.c.bf16 %v6863_v63, %v6861_v32  ;;  %v7445_v35 = vld [vmem:[#allocation53_spill] sm:$0xff] }
  0xb9   : > { %v1511_v0 = vpack.c.bf16 %v6513_v6, %v7445_v35  ;;  %v7451_v6 = vld [vmem:[#allocation61_spill] sm:$0xff]  ;;  %v7470_v35 = vld [vmem:[#allocation78_spill] sm:$0xff] }
  0xbc   : > { %5058 = vmatmul.mubr.msk.bf16.gmra.mrb[4].mxu0 %vm379_vm1, %v7398_v54  ;;  %v7426_v54 = vld [vmem:[#allocation15_spill] sm:$0xff] }
  0xbd   : > { %5061 = vmatprep.mubr.msk.bf16.mxu0 %vm379_vm1, %v7400_v57  ;;  %v7427_v57 = vld [vmem:[#allocation14_spill] sm:$0xff] }
  0xbe   : > { %5292 = vmatmul.mubr.msk.bf16.gmra.mrb[4].mxu1 %vm379_vm1, %v7399_v55  ;;  %v3276_v55 = vpack.c.bf16 %v7426_v54, %v7425_v53  ;;  %v7449_v53 = vld [vmem:[#allocation59_spill] sm:$0xff] }
  0xbf   : > { %5295 = vmatprep.mubr.msk.bf16.mxu1 %vm379_vm1, %v7401_v58  ;;  %v7428_v58 = vld [vmem:[#allocation17_spill] sm:$0xff] }
  0xc4   : > { %5062 = vmatmul.mubr.msk.bf16.gmra.mrb[8].mxu0 %vm379_vm1, %v7402_v59  ;;  %v1305_v59 = vpack.c.bf16 %v7428_v58, %v7427_v57  ;;  %v7450_v57 = vld [vmem:[#allocation58_spill] sm:$0xff] }
  0xc5   : > { %5065 = vmatprep.mubr.msk.bf16.mxu0 %vm379_vm1, %v7404_v9  ;;  %v7430_v9 = vld [vmem:[#allocation19_spill] sm:$0xff]  ;;  %v3481_v58 = vpack.c.bf16 %v7451_v6, %v7450_v57  ;;  %v7475_v57 = vld [vmem:[#allocation84_spill] sm:$0xff] }
  0xc6   : > { %5296 = vmatmul.mubr.msk.bf16.gmra.mrb[8].mxu1 %vm379_vm1, %v7403_v21  ;;  %v7429_v21 = vld [vmem:[#allocation16_spill] sm:$0xff]  ;;  %v3488_v6 = vpack.c.bf16 %v6639_v24, %v7475_v57  ;;  %v7478_v24 = vld [vmem:[#allocation86_spill] sm:$0xff] }
  0xc7   : > { %5299 = vmatprep.mubr.msk.bf16.mxu1 %vm379_vm1, %v7405_v10  ;;  %v3277_v10 = vpack.c.bf16 %v7430_v9, %v7429_v21  ;;  %v7452_v21 = vld [vmem:[#allocation60_spill] sm:$0xff]  ;;  %v7453_v9 = vld [vmem:[#allocation63_spill] sm:$0xff] }
  0xc8   : > { %v3688_v57 = vld [vmem:[#allocation2 + $0x1bf] sm:$0xff] }
  0xcc   : > { %5066 = vmatmul.mubr.msk.bf16.gmra.mrb[12].mxu0 %vm379_vm1, %v7406_v11  ;;  %v7431_v11 = vld [vmem:[#allocation18_spill] sm:$0xff] }
  0xcd   : > { %5069 = vmatprep.mubr.msk.bf16.mxu0 %vm379_vm1, %v7408_v17 }
  0xce   : > { %5300 = vmatmul.mubr.msk.bf16.gmra.mrb[12].mxu1 %vm379_vm1, %v7407_v16  ;;  %v7432_v16 = vld [vmem:[#allocation21_spill] sm:$0xff] }
  0xcf   : > { %5303 = vmatprep.mubr.msk.bf16.mxu1 %vm379_vm1, %v7409_v15  ;;  %v1306_v17 = vpack.c.bf16 %v7432_v16, %v7431_v11  ;;  %v7433_v15 = vld [vmem:[#allocation20_spill] sm:$0xff]  ;;  %v7454_v11 = vld [vmem:[#allocation62_spill] sm:$0xff]  ;;  %v7455_v16 = vld [vmem:[#allocation65_spill] sm:$0xff] }
  0xd4   : > { %5070 = vmatmul.mubr.msk.bf16.gmra.mrb[16].mxu0 %vm379_vm1, %v7410_v12 }
  0xd5   : > { %5073 = vmatprep.mubr.msk.bf16.mxu0 %vm379_vm1, %v7412_v42  ;;  %v7436_v42 = vld [vmem:[#allocation22_spill] sm:$0xff] }
  0xd6   : > { %5304 = vmatmul.mubr.msk.bf16.gmra.mrb[16].mxu1 %vm379_vm1, %v7411_v26  ;;  %v7435_v26 = vld [vmem:[#allocation23_spill] sm:$0xff] }
  0xd7   : > { %5307 = vmatprep.mubr.msk.bf16.mxu1 %vm379_vm1, %v3072_v2  ;;  %v7434_v2 = vld [vmem:[#allocation24_spill] sm:$0xff]  ;;  %v1307_v29 = vpack.c.bf16 %v7436_v42, %v7435_v26  ;;  %v7458_v26 = vld [vmem:[#allocation66_spill] sm:$0xff]  ;;  %v7459_v42 = vld [vmem:[#allocation69_spill] sm:$0xff] }
  0xd8   : > { %v3278_v12 = vpack.c.bf16 %v7434_v2, %v7433_v15  ;;  %v7457_v2 = vld [vmem:[#allocation67_spill] sm:$0xff] }
  0xdc   : > { %5074 = vmatmul.mubr.msk.bf16.gmra.mrb[20].mxu0 %vm379_vm1, %v7413_v46  ;;  %v6848_v46 = vld [vmem:[#allocation2 + $0x198] sm:$0xff] }
  0xdd   : > { %5079 = vmatprep.mubr.msk.bf16.mxu0 %vm379_vm1, %v1299_v38 }
  0xde   : > { %5308 = vmatmul.mubr.msk.bf16.gmra.mrb[20].mxu1 %vm379_vm1, %v3073_v37  ;;  %v7438_v37 = vld [vmem:[#allocation27_spill] sm:$0xff] }
  0xdf   : > { %5313 = vmatprep.mubr.msk.bf16.mxu1 %vm379_vm1, %v3271_v45  ;;  %v3279_v38 = vpack.c.bf16 %v7438_v37, %v7437_v3  ;;  %v6846_v45 = vld [vmem:[#allocation2 + $0xd8] sm:$0xff]  ;;  %v7460_v3 = vld [vmem:[#allocation68_spill] sm:$0xff]  ;;  %v7461_v37 = vld [vmem:[#allocation71_spill] sm:$0xff] }
  0xe4   : > { %5080 = vmatmul.mubr.msk.bf16.vlgmr.msra.gmra.mrb[0].mxu0 %vm379_vm1, %v1300_v23  ;;  %v7440_v23 = vld [vmem:[#allocation31_spill] sm:$0xff] }
  0xe5   : > { %5104 = vmatpush3.bf16.msra.mxu0 %v1560_v33  ;;  %5083 = vmatprep.mubr.msk.bf16.mxu0 %vm379_vm1, %v1301_v39  ;;  %v1308_v27 = vpack.c.bf16 %v7440_v23, %v7439_v48  ;;  %v7462_v48 = vld [vmem:[#allocation70_spill] sm:$0xff]  ;;  %v7463_v23 = vld [vmem:[#allocation73_spill] sm:$0xff] }
  0xe6   : > { %5314 = vmatmul.mubr.msk.bf16.vlgmr.msra.gmra.mrb[0].mxu1 %vm379_vm1, %v3272_v56  ;;  %5831 = vmatprep.subr.msk.bf16.mxu0 %vm566_vm0, %v455_v5  ;;  %v7441_v56 = vld [vmem:[#allocation28_spill] sm:$0xff] }
  0xe7   : > { %5338 = vmatpush3.bf16.msra.mxu1 %v1560_v33  ;;  %5317 = vmatprep.mubr.msk.bf16.mxu1 %vm379_vm1, %v3273_v20  ;;  %v7442_v33 = vld [vmem:[#allocation32_spill] sm:$0xff]  ;;  %v7443_v20 = vld [vmem:[#allocation29_spill] sm:$0xff] }
  0xe8   : > { %5840 = vmatprep.subr.msk.bf16.mxu1 %vm566_vm0, %v455_v5  ;;  %v3280_v39 = vpack.c.bf16 %v7442_v33, %v7441_v56  ;;  %v1309_v4 = vpack.c.bf16 %v6846_v45, %v7443_v20  ;;  %v7464_v56 = vld [vmem:[#allocation72_spill] sm:$0xff]  ;;  %v7465_v33 = vld [vmem:[#allocation75_spill] sm:$0xff]  ;;  %v7466_v20 = vld [vmem:[#allocation74_spill] sm:$0xff] }
  0xec   : > { %5084 = vmatmul.mubr.msk.bf16.gmra.mrb[4].mxu0 %vm379_vm1, %v7422_v61  ;;  %v7446_v61 = vld [vmem:[#allocation55_spill] sm:$0xff] }
  0xed   : > { %5087 = vmatprep.mubr.msk.bf16.mxu0 %vm379_vm1, %v1303_v44  ;;  %v6866_v44 = vld [vmem:[#allocation2 + $0x1a0] sm:$0xff]  ;;  %v3480_v49 = vpack.c.bf16 %v7447_v8, %v7446_v61  ;;  %v7472_v8 = vld [vmem:[#allocation80_spill] sm:$0xff] }
  0xee   : > { %5318 = vmatmul.mubr.msk.bf16.gmra.mrb[4].mxu1 %vm379_vm1, %v3274_v14  ;;  %v3281_v14 = vpack.c.bf16 %v6848_v46, %v7444_v62 }
  0xef   : > { %5321 = vmatprep.mubr.msk.bf16.mxu1 %vm379_vm1, %v3275_v36  ;;  %v3282_v36 = vpack.c.bf16 %v6868_v1, %v6866_v44 }
  0xf4   : > { %5088 = vmatmul.mubr.msk.bf16.gmra.mrb[8].mxu0 %vm379_vm1, %v1304_v50  ;;  %v7448_v50 = vld [vmem:[#allocation56_spill] sm:$0xff] }
  0xf5   : > { %5091 = vmatprep.mubr.msk.bf16.mxu0 %vm379_vm1, %v1305_v59  ;;  %v1512_v54 = vpack.c.bf16 %v7449_v53, %v7448_v50  ;;  %v1772_v59 = vsel %vm566_vm0, %v455_v5, 0  ;;  %v7456_v5 = vld [vmem:[#allocation64_spill] sm:$0xff]  ;;  %v7473_v50 = vld [vmem:[#allocation82_spill] sm:$0xff] }
  0xf6   : > { %5322 = vmatmul.mubr.msk.bf16.gmra.mrb[8].mxu1 %vm379_vm1, %v3276_v55  ;;  %v447_v55 = vld [vmem:[%s7220_s3 + $0x38] sm:$0xff]  ;;  %v3487_v53 = vpack.c.bf16 %v6630_v34, %v7473_v50  ;;  %v3489_v34 = vpack.c.bf16 %v6659_v19, %v6641_v60 }
  0xf7   : > { %5325 = vmatprep.mubr.msk.bf16.mxu1 %vm379_vm1, %v3277_v10  ;;  %v1513_v10 = vpack.c.bf16 %v7453_v9, %v7452_v21  ;;  %v456_v15 = vpack.c.bf16 %v447_v55, %v447_v55  ;;  %v7480_v19 = vld [vmem:[#allocation54_spill] sm:$0xff] }
  0xfc   : > { %5092 = vmatmul.mubr.msk.bf16.gmra.mrb[12].mxu0 %vm379_vm1, %v1306_v17  ;;  %v3482_v17 = vpack.c.bf16 %v7455_v16, %v7454_v11  ;;  %v7479_v11 = vld [vmem:[#allocation50_spill] sm:$0xff]  ;;  %v7481_v16 = vld [vmem:[#allocation33_spill] sm:$0xff] }
  0xfd   : > { %5095 = vmatprep.mubr.msk.bf16.mxu0 %vm379_vm1, %v1307_v29  ;;  %v3483_v29 = vpack.c.bf16 %v7459_v42, %v7458_v26  ;;  %v1522_v60 = vpack.c.bf16 %v7480_v19, %v7479_v11  ;;  %v7483_v26 = vld [vmem:[#allocation35_spill] sm:$0xff]  ;;  %v7484_v42 = vld [vmem:[#allocation36_spill] sm:$0xff] }
  0xfe   : > { %5326 = vmatmul.mubr.msk.bf16.gmra.mrb[12].mxu1 %vm379_vm1, %v3278_v12  ;;  %v1514_v12 = vpack.c.bf16 %v7457_v2, %v7456_v5  ;;  %v448_v5 = vld [vmem:[%s7220_s3 + $0x40] sm:$0xff]  ;;  %v1984_v2 = vsel %vm566_vm0, %v456_v15, 0  ;;  %v3878_v19 = vld [vmem:[#allocation2 + $0x128] sm:$0xff] }
  0xff   : > { %5329 = vmatprep.mubr.msk.bf16.mxu1 %vm379_vm1, %v3279_v38  ;;  %v1515_v38 = vpack.c.bf16 %v7461_v37, %v7460_v3  ;;  %v7486_v3 = vld [vmem:[#allocation38_spill] sm:$0xff]  ;;  %v7488_v37 = vld [vmem:[#allocation40_spill] sm:$0xff] }
 0x104   : > { %5096 = vmatmul.mubr.msk.bf16.gmra.mrb[16].mxu0 %vm379_vm1, %v1308_v27  ;;  %v3484_v27 = vpack.c.bf16 %v7463_v23, %v7462_v48  ;;  %v7490_v48 = vld [vmem:[#allocation42_spill] sm:$0xff]  ;;  %v7491_v23 = vld [vmem:[#allocation43_spill] sm:$0xff] }
 0x105   : > { %5099 = vmatprep.mubr.msk.bf16.mxu0 %vm379_vm1, %v1309_v4  ;;  %v7467_v4 = vld [vmem:[#allocation77_spill] sm:$0xff] }
 0x106   : > { %5330 = vmatmul.mubr.msk.bf16.gmra.mrb[16].mxu1 %vm379_vm1, %v3280_v39  ;;  %v1516_v39 = vpack.c.bf16 %v7465_v33, %v7464_v56  ;;  %v3485_v62 = vpack.c.bf16 %v7467_v4, %v7466_v20  ;;  %v7493_v56 = vld [vmem:[#allocation45_spill] sm:$0xff]  ;;  %v7494_v33 = vld [vmem:[#allocation46_spill] sm:$0xff]  ;;  %v7496_v20 = vld [vmem:[#allocation48_spill] sm:$0xff] }
 0x107   : > { %5333 = vmatprep.mubr.msk.bf16.mxu1 %vm379_vm1, %v3281_v14  ;;  %v7468_v14 = vld [vmem:[#allocation76_spill] sm:$0xff]  ;;  %v7497_v4 = vld [vmem:[#allocation51_spill] sm:$0xff] }
 0x10c   : > { %5100 = vmatmul.mubr.msk.bf16.gmra.mrb[20].mxu0 %vm379_vm1, %v1310_v41  ;;  %v7469_v41 = vld [vmem:[#allocation79_spill] sm:$0xff] }
 0x10d   : > { %5105 = vmatprep.mubr.msk.bf16.mxu0 %vm379_vm1, %v1511_v0  ;;  %v7471_v0 = vld [vmem:[#allocation81_spill] sm:$0xff] }
 0x10e   : > { %5334 = vmatmul.mubr.msk.bf16.gmra.mrb[20].mxu1 %vm379_vm1, %v3282_v36  ;;  %v1517_v36 = vpack.c.bf16 %v7469_v41, %v7468_v14  ;;  %v3486_v61 = vpack.c.bf16 %v7471_v0, %v7470_v35  ;;  %v1718_v14 = vld [vmem:[#allocation2 + $0xdf] sm:$0xff]  ;;  %v7498_v41 = vld [vmem:[#allocation52_spill] sm:$0xff] }
 0x10f   : > { %5339 = vmatprep.mubr.msk.bf16.mxu1 %vm379_vm1, %v3480_v49  ;;  %v1518_v49 = vpack.c.bf16 %v6626_v40, %v7472_v8  ;;  %v7476_v40 = vld [vmem:[#allocation85_spill] sm:$0xff]  ;;  %v3698_v8 = vpack.c.bf16 %v6764_v43, %v6748_v25  ;;  %v1935_v25 = vpack.c.bf16 %v6788_v22, %v6783_v51 }
 0x110   : > { %v1720_v35 = vld [vmem:[#allocation2 + $0xef] sm:$0xff] }
 0x111   : > { %v3686_v0 = vld [vmem:[#allocation2 + $0x1af] sm:$0xff] }
 0x112   : > { %v3699_v50 = vpack.c.bf16 %v3686_v0, %v6767_v28  ;;  %v1913_v28 = vld [vmem:[#allocation2 + $0x58] sm:$0xff]  ;;  %v1926_v0 = vld [vmem:[#allocation2 + $0xc0] sm:$0xff] }
 0x114   : > { %5106 = vmatmul.mubr.msk.bf16.vlgmr.msra.gmra.mrb[0].mxu0 %vm379_vm1, %v1512_v54  ;;  %v7474_v54 = vld [vmem:[#allocation83_spill] sm:$0xff] }
 0x115   : > { %5130 = vmatpush3.bf16.msra.mxu0 %v1772_v59  ;;  %5109 = vmatprep.mubr.msk.bf16.mxu0 %vm379_vm1, %v1513_v10  ;;  %v1519_v55 = vpack.c.bf16 %v6635_v18, %v7474_v54  ;;  %v7477_v18 = vld [vmem:[#allocation49_spill] sm:$0xff]  ;;  %v6950_v10 = vld [vmem:[#allocation2 + $0x1a1] sm:$0xff] }
 0x116   : > { %5340 = vmatmul.mubr.msk.bf16.vlgmr.msra.gmra.mrb[0].mxu1 %vm379_vm1, %v3481_v58  ;;  %5832 = vmatprep.subr.msk.bf16.mxu0 %vm566_vm0, %v456_v15  ;;  %v6936_v58 = vld [vmem:[#allocation2 + $0x199] sm:$0xff]  ;;  %v1521_v21 = vpack.c.bf16 %v7477_v18, %v6656_v7 }
 0x117   : > { %5364 = vmatpush3.bf16.msra.mxu1 %v1772_v59  ;;  %5343 = vmatprep.mubr.msk.bf16.mxu1 %vm379_vm1, %v3482_v17  ;;  %v1520_v59 = vpack.c.bf16 %v6654_v13, %v7476_v40  ;;  %v3490_v9 = vpack.c.bf16 %v6936_v58, %v7478_v24  ;;  %v6952_v13 = vld [vmem:[#allocation2 + $0x1a9] sm:$0xff]  ;;  %v7482_v17 = vld [vmem:[#allocation34_spill] sm:$0xff] }
 0x118   : > { %5841 = vmatprep.subr.msk.bf16.mxu1 %vm566_vm0, %v456_v15  ;;  %v3491_v7 = vpack.c.bf16 %v6952_v13, %v6950_v10  ;;  %v7487_v15 = vld [vmem:[#allocation39_spill] sm:$0xff]  ;;  %v3876_v18 = vld [vmem:[#allocation2 + $0x118] sm:$0xff]  ;;  %v1915_v24 = vld [vmem:[#allocation2 + $0x68] sm:$0xff] }
 0x119   : > { %v1722_v54 = vld [vmem:[#allocation2 + $0xff] sm:$0xff] }
 0x11c   : > { %5110 = vmatmul.mubr.msk.bf16.gmra.mrb[4].mxu0 %vm379_vm1, %v1514_v12  ;;  %v457_v12 = vpack.c.bf16 %v448_v5, %v448_v5  ;;  %v3880_v5 = vld [vmem:[#allocation2 + $0x138] sm:$0xff] }
 0x11d   : > { %5113 = vmatprep.mubr.msk.bf16.mxu0 %vm379_vm1, %v1515_v38  ;;  %v7489_v38 = vld [vmem:[#allocation41_spill] sm:$0xff] }
 0x11e   : > { %5344 = vmatmul.mubr.msk.bf16.gmra.mrb[4].mxu1 %vm379_vm1, %v3483_v29  ;;  %v7485_v29 = vld [vmem:[#allocation37_spill] sm:$0xff]  ;;  %v2196_v22 = vsel %vm566_vm0, %v457_v12, 0 }
 0x11f   : > { %5347 = vmatprep.mubr.msk.bf16.mxu1 %vm379_vm1, %v3484_v27  ;;  %v7492_v27 = vld [vmem:[#allocation44_spill] sm:$0xff] }
 0x124   : > { %5114 = vmatmul.mubr.msk.bf16.gmra.mrb[8].mxu0 %vm379_vm1, %v1516_v39  ;;  %v7495_v39 = vld [vmem:[#allocation47_spill] sm:$0xff] }
 0x125   : > { %5117 = vmatprep.mubr.msk.bf16.mxu0 %vm379_vm1, %v1517_v36  ;;  %v1719_v36 = vld [vmem:[#allocation2 + $0xe7] sm:$0xff] }
 0x126   : > { %5348 = vmatmul.mubr.msk.bf16.gmra.mrb[8].mxu1 %vm379_vm1, %v3485_v62  ;;  %v1717_v62 = vld [vmem:[#allocation2 + $0xd7] sm:$0xff] }
 0x127   : > { %5351 = vmatprep.mubr.msk.bf16.mxu1 %vm379_vm1, %v3486_v61  ;;  %v1732_v61 = vpack.c.bf16 %v1718_v14, %v1717_v62 }
 0x12c   : > { %5118 = vmatmul.mubr.msk.bf16.gmra.mrb[12].mxu0 %vm379_vm1, %v1518_v49  ;;  %v1733_v49 = vpack.c.bf16 %v1720_v35, %v1719_v36  ;;  %v1925_v35 = vld [vmem:[#allocation2 + $0xb8] sm:$0xff] }
 0x12d   : > { %5121 = vmatprep.mubr.msk.bf16.mxu0 %vm379_vm1, %v1519_v55  ;;  %v3687_v55 = vld [vmem:[#allocation2 + $0x1b7] sm:$0xff] }
 0x12e   : > { %5352 = vmatmul.mubr.msk.bf16.gmra.mrb[12].mxu1 %vm379_vm1, %v3487_v53  ;;  %v1721_v53 = vld [vmem:[#allocation2 + $0xf7] sm:$0xff] }
 0x12f   : > { %5355 = vmatprep.mubr.msk.bf16.mxu1 %vm379_vm1, %v3488_v6  ;;  %v3874_v6 = vld [vmem:[#allocation2 + $0x108] sm:$0xff]  ;;  %v1734_v40 = vpack.c.bf16 %v1722_v54, %v1721_v53  ;;  %v3891_v54 = vld [vmem:[#allocation2 + $0x190] sm:$0xff] }
 0x130   : > { %v3898_v43 = vpack.c.bf16 %v6791_v47, %v3874_v6  ;;  %v3890_v53 = vld [vmem:[#allocation2 + $0x188] sm:$0xff] }
 0x134   : > { %5122 = vmatmul.mubr.msk.bf16.gmra.mrb[16].mxu0 %vm379_vm1, %v1520_v59  ;;  %v3700_v59 = vpack.c.bf16 %v3688_v57, %v3687_v55  ;;  %v1942_v55 = vpack.c.bf16 %v1926_v0, %v1925_v35 }
 0x135   : > { %5125 = vmatprep.mubr.msk.bf16.mxu0 %vm379_vm1, %v1521_v21  ;;  %v3877_v21 = vld [vmem:[#allocation2 + $0x120] sm:$0xff] }
 0x136   : > { %5356 = vmatmul.mubr.msk.bf16.gmra.mrb[16].mxu1 %vm379_vm1, %v3489_v34  ;;  %v1914_v34 = vld [vmem:[#allocation2 + $0x60] sm:$0xff]  ;;  %v3899_v51 = vpack.c.bf16 %v3877_v21, %v3876_v18  ;;  %v3896_v18 = vld [vmem:[#allocation2 + $0x1b8] sm:$0xff] }
 0x137   : > { %5359 = vmatprep.mubr.msk.bf16.mxu1 %vm379_vm1, %v3490_v9  ;;  %v1916_v9 = vld [vmem:[#allocation2 + $0x70] sm:$0xff]  ;;  %v1936_v11 = vpack.c.bf16 %v1914_v34, %v1913_v28  ;;  %v1945_v28 = vpack.c.bf16 %v6769_v30, %v6863_v63  ;;  %v3897_v21 = vld [vmem:[#allocation2 + $0x1c0] sm:$0xff] }
 0x138   : > { %v1937_v47 = vpack.c.bf16 %v1916_v9, %v1915_v24  ;;  %v2123_v24 = vld [vmem:[#allocation2 + $0x49] sm:$0xff]  ;;  %v4084_v9 = vld [vmem:[#allocation2 + $0x111] sm:$0xff]  ;;  %v3909_v30 = vpack.c.bf16 %v3897_v21, %v3896_v18 }
 0x139   : > { %v2144_v18 = vld [vmem:[#allocation2 + $0xf1] sm:$0xff] }
 0x13a   : > { %v4104_v21 = vld [vmem:[#allocation2 + $0x1b1] sm:$0xff] }
 0x13c   : > { %5126 = vmatmul.mubr.msk.bf16.gmra.mrb[20].mxu0 %vm379_vm1, %v1522_v60  ;;  %v3879_v60 = vld [vmem:[#allocation2 + $0x130] sm:$0xff] }
 0x13d   : > { %5131 = vmatprep.mubr.msk.bf16.mxu0 %vm379_vm1, %v7481_v16  ;;  %v1917_v16 = vld [vmem:[#allocation2 + $0x78] sm:$0xff] }
 0x13e   : > { %5360 = vmatmul.mubr.msk.bf16.gmra.mrb[20].mxu1 %vm379_vm1, %v3491_v7  ;;  %v3900_v7 = vpack.c.bf16 %v3879_v60, %v3878_v19  ;;  %v4085_v19 = vld [vmem:[#allocation2 + $0x119] sm:$0xff]  ;;  %v4086_v60 = vld [vmem:[#allocation2 + $0x121] sm:$0xff] }
 0x13f   : > { %5365 = vmatprep.mubr.msk.bf16.mxu1 %vm379_vm1, %v7482_v17  ;;  %v1918_v17 = vld [vmem:[#allocation2 + $0x80] sm:$0xff] }
 0x144   : > { %5132 = vmatmul.mubr.msk.bf16.vlgmr.msra.gmra.mrb[0].mxu0 %vm379_vm1, %v7483_v26  ;;  %v1919_v26 = vld [vmem:[#allocation2 + $0x88] sm:$0xff] }
 0x145   : > { %5156 = vmatpush3.bf16.msra.mxu0 %v1984_v2  ;;  %5135 = vmatprep.mubr.msk.bf16.mxu0 %vm379_vm1, %v7485_v29  ;;  %v3882_v29 = vld [vmem:[#allocation2 + $0x148] sm:$0xff] }
 0x146   : > { %5366 = vmatmul.mubr.msk.bf16.vlgmr.msra.gmra.mrb[0].mxu1 %vm379_vm1, %v7484_v42  ;;  %5833 = vmatprep.subr.msk.bf16.mxu0 %vm566_vm0, %v457_v12  ;;  %v1920_v42 = vld [vmem:[#allocation2 + $0x90] sm:$0xff] }
 0x147   : > { %5390 = vmatpush3.bf16.msra.mxu1 %v1984_v2  ;;  %5369 = vmatprep.mubr.msk.bf16.mxu1 %vm379_vm1, %v7486_v3  ;;  %v3881_v2 = vld [vmem:[#allocation2 + $0x140] sm:$0xff]  ;;  %v1938_v3 = vpack.c.bf16 %v1918_v17, %v1917_v16 }
 0x148   : > { %5842 = vmatprep.subr.msk.bf16.mxu1 %vm566_vm0, %v457_v12  ;;  %v3883_v12 = vld [vmem:[#allocation2 + $0x150] sm:$0xff] }
 0x14c   : > { %5136 = vmatmul.mubr.msk.bf16.gmra.mrb[4].mxu0 %vm379_vm1, %v7487_v15  ;;  %v3901_v15 = vpack.c.bf16 %v3881_v2, %v3880_v5  ;;  %v2129_v5 = vld [vmem:[#allocation2 + $0x79] sm:$0xff]  ;;  %v2130_v2 = vld [vmem:[#allocation2 + $0x81] sm:$0xff] }
 0x14d   : > { %5139 = vmatprep.mubr.msk.bf16.mxu0 %vm379_vm1, %v7489_v38  ;;  %v3902_v38 = vpack.c.bf16 %v3883_v12, %v3882_v29  ;;  %v2131_v29 = vld [vmem:[#allocation2 + $0x89] sm:$0xff]  ;;  %v2132_v12 = vld [vmem:[#allocation2 + $0x91] sm:$0xff] }
 0x14e   : > { %5370 = vmatmul.mubr.msk.bf16.gmra.mrb[4].mxu1 %vm379_vm1, %v7488_v37  ;;  %v1939_v37 = vpack.c.bf16 %v1920_v42, %v1919_v26  ;;  %v4089_v26 = vld [vmem:[#allocation2 + $0x139] sm:$0xff]  ;;  %v4090_v42 = vld [vmem:[#allocation2 + $0x141] sm:$0xff] }
 0x14f   : > { %5373 = vmatprep.mubr.msk.bf16.mxu1 %vm379_vm1, %v7490_v48  ;;  %v1921_v48 = vld [vmem:[#allocation2 + $0x98] sm:$0xff] }
 0x154   : > { %5140 = vmatmul.mubr.msk.bf16.gmra.mrb[8].mxu0 %vm379_vm1, %v7491_v23  ;;  %v1922_v23 = vld [vmem:[#allocation2 + $0xa0] sm:$0xff] }
 0x155   : > { %5143 = vmatprep.mubr.msk.bf16.mxu0 %vm379_vm1, %v7493_v56  ;;  %v3885_v56 = vld [vmem:[#allocation2 + $0x160] sm:$0xff]  ;;  %v1940_v62 = vpack.c.bf16 %v1922_v23, %v1921_v48  ;;  %v2151_v48 = vpack.c.bf16 %v2132_v12, %v2131_v29 }
 0x156   : > { %5374 = vmatmul.mubr.msk.bf16.gmra.mrb[8].mxu1 %vm379_vm1, %v7492_v27  ;;  %v3884_v27 = vld [vmem:[#allocation2 + $0x158] sm:$0xff] }
 0x157   : > { %5377 = vmatprep.mubr.msk.bf16.mxu1 %vm379_vm1, %v7494_v33  ;;  %v1923_v33 = vld [vmem:[#allocation2 + $0xa8] sm:$0xff]  ;;  %v3903_v14 = vpack.c.bf16 %v3885_v56, %v3884_v27  ;;  %v2133_v27 = vld [vmem:[#allocation2 + $0x99] sm:$0xff] }
 0x158   : > { %v2134_v56 = vld [vmem:[#allocation2 + $0xa1] sm:$0xff] }
 0x15c   : > { %5144 = vmatmul.mubr.msk.bf16.gmra.mrb[12].mxu0 %vm379_vm1, %v7495_v39  ;;  %v1924_v39 = vld [vmem:[#allocation2 + $0xb0] sm:$0xff] }
 0x15d   : > { %5147 = vmatprep.mubr.msk.bf16.mxu0 %vm379_vm1, %v7497_v4  ;;  %v3887_v4 = vld [vmem:[#allocation2 + $0x170] sm:$0xff] }
 0x15e   : > { %5378 = vmatmul.mubr.msk.bf16.gmra.mrb[12].mxu1 %vm379_vm1, %v7496_v20  ;;  %v3886_v20 = vld [vmem:[#allocation2 + $0x168] sm:$0xff] }
 0x15f   : > { %5381 = vmatprep.mubr.msk.bf16.mxu1 %vm379_vm1, %v7498_v41  ;;  %v1941_v41 = vpack.c.bf16 %v1924_v39, %v1923_v33  ;;  %v3904_v36 = vpack.c.bf16 %v3887_v4, %v3886_v20  ;;  %v4093_v33 = vld [vmem:[#allocation2 + $0x159] sm:$0xff]  ;;  %v4094_v39 = vld [vmem:[#allocation2 + $0x161] sm:$0xff]  ;;  %v2135_v20 = vld [vmem:[#allocation2 + $0xa9] sm:$0xff] }
 0x160   : > { %v2136_v4 = vld [vmem:[#allocation2 + $0xb1] sm:$0xff] }
 0x161   : > { %v2153_v35 = vpack.c.bf16 %v2136_v4, %v2135_v20 }
 0x164   : > { %5148 = vmatmul.mubr.msk.bf16.gmra.mrb[16].mxu0 %vm379_vm1, %v1732_v61  ;;  %v3888_v61 = vld [vmem:[#allocation2 + $0x178] sm:$0xff] }
 0x165   : > { %5151 = vmatprep.mubr.msk.bf16.mxu0 %vm379_vm1, %v1733_v49  ;;  %v1927_v49 = vld [vmem:[#allocation2 + $0xc8] sm:$0xff] }
 0x166   : > { %5382 = vmatmul.mubr.msk.bf16.gmra.mrb[16].mxu1 %vm379_vm1, %v3698_v8  ;;  %v3889_v8 = vld [vmem:[#allocation2 + $0x180] sm:$0xff] }
 0x167   : > { %5385 = vmatprep.mubr.msk.bf16.mxu1 %vm379_vm1, %v3699_v50  ;;  %v1928_v50 = vld [vmem:[#allocation2 + $0xd0] sm:$0xff]  ;;  %v3905_v57 = vpack.c.bf16 %v3889_v8, %v3888_v61  ;;  %v2137_v61 = vld [vmem:[#allocation2 + $0xb9] sm:$0xff]  ;;  %v2138_v8 = vld [vmem:[#allocation2 + $0xc1] sm:$0xff] }
 0x168   : > { %v1943_v6 = vpack.c.bf16 %v1928_v50, %v1927_v49  ;;  %v4097_v49 = vld [vmem:[#allocation2 + $0x179] sm:$0xff]  ;;  %v4098_v50 = vld [vmem:[#allocation2 + $0x181] sm:$0xff] }
 0x16c   : > { %5152 = vmatmul.mubr.msk.bf16.gmra.mrb[20].mxu0 %vm379_vm1, %v1734_v40  ;;  %v3906_v40 = vpack.c.bf16 %v3891_v54, %v3890_v53  ;;  %v2139_v53 = vld [vmem:[#allocation2 + $0xc9] sm:$0xff]  ;;  %v2140_v54 = vld [vmem:[#allocation2 + $0xd1] sm:$0xff] }
 0x16d   : > { %5157 = vmatprep.mubr.msk.bf16.mxu0 %vm379_vm1, %v1935_v25  ;;  %v1944_v25 = vpack.c.bf16 %v6861_v32, %v6846_v45  ;;  %v2124_v45 = vld [vmem:[#allocation2 + $0x51] sm:$0xff]  ;;  %v4083_v32 = vld [vmem:[#allocation2 + $0x109] sm:$0xff] }
 0x16e   : > { %5386 = vmatmul.mubr.msk.bf16.gmra.mrb[20].mxu1 %vm379_vm1, %v3700_v59  ;;  %v3895_v59 = vld [vmem:[#allocation2 + $0x1b0] sm:$0xff]  ;;  %v2147_v63 = vpack.c.bf16 %v2124_v45, %v2123_v24  ;;  %v4116_v45 = vpack.c.bf16 %v6950_v10, %v6936_v58 }
 0x16f   : > { %5391 = vmatprep.mubr.msk.bf16.mxu1 %vm379_vm1, %v3898_v43  ;;  %v3907_v43 = vpack.c.bf16 %v6866_v44, %v6848_v46  ;;  %v3908_v34 = vpack.c.bf16 %v3895_v59, %v6868_v1  ;;  %v1946_v46 = vpack.c.bf16 %v6786_v52, %v6771_v31  ;;  %v4107_v44 = vpack.c.bf16 %v4084_v9, %v4083_v32  ;;  %v2125_v1 = vld [vmem:[#allocation2 + $0x59] sm:$0xff] }
 0x170   : > { %v4108_v52 = vpack.c.bf16 %v4086_v60, %v4085_v19  ;;  %v2155_v59 = vpack.c.bf16 %v2140_v54, %v2139_v53  ;;  %v4117_v9 = vpack.c.bf16 %v4104_v21, %v6952_v13 }
 0x174   : > { %5158 = vmatmul.mubr.msk.bf16.vlgmr.msra.gmra.mrb[0].mxu0 %vm379_vm1, %v1936_v11  ;;  %v2126_v11 = vld [vmem:[#allocation2 + $0x61] sm:$0xff] }
 0x175   : > { %5182 = vmatpush3.bf16.msra.mxu0 %v2196_v22  ;;  %5161 = vmatprep.mubr.msk.bf16.mxu0 %vm379_vm1, %v1937_v47  ;;  %v4087_v47 = vld [vmem:[#allocation2 + $0x129] sm:$0xff]  ;;  %v2148_v31 = vpack.c.bf16 %v2126_v11, %v2125_v1 }
 0x176   : > { %5392 = vmatmul.mubr.msk.bf16.vlgmr.msra.gmra.mrb[0].mxu1 %vm379_vm1, %v3899_v51  ;;  %v2127_v51 = vld [vmem:[#allocation2 + $0x69] sm:$0xff] }
 0x177   : > { %5416 = vmatpush3.bf16.msra.mxu1 %v2196_v22  ;;  %5395 = vmatprep.mubr.msk.bf16.mxu1 %vm379_vm1, %v3900_v7  ;;  %v2128_v22 = vld [vmem:[#allocation2 + $0x71] sm:$0xff] }
 0x178   : > { %v4088_v7 = vld [vmem:[#allocation2 + $0x131] sm:$0xff]  ;;  %v2149_v16 = vpack.c.bf16 %v2128_v22, %v2127_v51 }
 0x179   : > { %v4109_v17 = vpack.c.bf16 %v4088_v7, %v4087_v47 }
 0x17c   : > { %5162 = vmatmul.mubr.msk.bf16.gmra.mrb[4].mxu0 %vm379_vm1, %v1938_v3  ;;  %v4091_v3 = vld [vmem:[#allocation2 + $0x149] sm:$0xff] }
 0x17d   : > { %5165 = vmatprep.mubr.msk.bf16.mxu0 %vm379_vm1, %v1939_v37  ;;  %v2150_v37 = vpack.c.bf16 %v2130_v2, %v2129_v5 }
 0x17e   : > { %5396 = vmatmul.mubr.msk.bf16.gmra.mrb[4].mxu1 %vm379_vm1, %v3901_v15  ;;  %v4092_v15 = vld [vmem:[#allocation2 + $0x151] sm:$0xff] }
 0x17f   : > { %5399 = vmatprep.mubr.msk.bf16.mxu1 %vm379_vm1, %v3902_v38  ;;  %v4110_v38 = vpack.c.bf16 %v4090_v42, %v4089_v26  ;;  %v4111_v23 = vpack.c.bf16 %v4092_v15, %v4091_v3 }
 0x184   : > { %5166 = vmatmul.mubr.msk.bf16.gmra.mrb[8].mxu0 %vm379_vm1, %v1940_v62  ;;  %v4095_v62 = vld [vmem:[#allocation2 + $0x169] sm:$0xff] }
 0x185   : > { %5169 = vmatprep.mubr.msk.bf16.mxu0 %vm379_vm1, %v1941_v41  ;;  %v2152_v41 = vpack.c.bf16 %v2134_v56, %v2133_v27 }
 0x186   : > { %5400 = vmatmul.mubr.msk.bf16.gmra.mrb[8].mxu1 %vm379_vm1, %v3903_v14  ;;  %v4096_v14 = vld [vmem:[#allocation2 + $0x171] sm:$0xff] }
 0x187   : > { %5403 = vmatprep.mubr.msk.bf16.mxu1 %vm379_vm1, %v3904_v36  ;;  %v4112_v36 = vpack.c.bf16 %v4094_v39, %v4093_v33  ;;  %v4113_v0 = vpack.c.bf16 %v4096_v14, %v4095_v62 }
 0x18c   : > { %5170 = vmatmul.mubr.msk.bf16.gmra.mrb[12].mxu0 %vm379_vm1, %v1942_v55  ;;  %v4099_v55 = vld [vmem:[#allocation2 + $0x189] sm:$0xff] }
 0x18d   : > { %5173 = vmatprep.mubr.msk.bf16.mxu0 %vm379_vm1, %v1943_v6  ;;  %v2154_v6 = vpack.c.bf16 %v2138_v8, %v2137_v61 }
 0x18e   : > { %5404 = vmatmul.mubr.msk.bf16.gmra.mrb[12].mxu1 %vm379_vm1, %v3905_v57  ;;  %v4100_v57 = vld [vmem:[#allocation2 + $0x191] sm:$0xff] }
 0x18f   : > { %5407 = vmatprep.mubr.msk.bf16.mxu1 %vm379_vm1, %v3906_v40  ;;  %v4114_v40 = vpack.c.bf16 %v4098_v50, %v4097_v49 }
 0x194   : > { %5174 = vmatmul.mubr.msk.bf16.gmra.mrb[16].mxu0 %vm379_vm1, %v1944_v25  ;;  %v4115_v25 = vpack.c.bf16 %v4100_v57, %v4099_v55 }
 0x195   : > { %5177 = vmatprep.mubr.msk.bf16.mxu0 %vm379_vm1, %v1945_v28  ;;  %v2142_v28 = vld [vmem:[#allocation2 + $0xe1] sm:$0xff] }
 0x196   : > { %5408 = vmatmul.mubr.msk.bf16.gmra.mrb[16].mxu1 %vm379_vm1, %v3907_v43  ;;  %v2141_v43 = vld [vmem:[#allocation2 + $0xd9] sm:$0xff] }
 0x197   : > { %5411 = vmatprep.mubr.msk.bf16.mxu1 %vm379_vm1, %v3908_v34  ;;  %v2143_v34 = vld [vmem:[#allocation2 + $0xe9] sm:$0xff]  ;;  %v2156_v24 = vpack.c.bf16 %v2142_v28, %v2141_v43 }
 0x198   : > { %v2157_v32 = vpack.c.bf16 %v2144_v18, %v2143_v34 }
 0x19c   : > { %5178 = vmatmul.mubr.msk.bf16.gmra.mrb[20].mxu0 %vm379_vm1, %v1946_v46  ;;  %v2145_v46 = vld [vmem:[#allocation2 + $0xf9] sm:$0xff] }
 0x19d   : > { %5183 = vmatprep.mubr.msk.bf16.mxu0 %vm379_vm1, %v2147_v63  ;;  %v4105_v63 = vld [vmem:[#allocation2 + $0x1b9] sm:$0xff] }
 0x19e   : > { %5412 = vmatmul.mubr.msk.bf16.gmra.mrb[20].mxu1 %vm379_vm1, %v3909_v30  ;;  %v2146_v30 = vld [vmem:[#allocation2 + $0x101] sm:$0xff] }
 0x19f   : > { %5417 = vmatprep.mubr.msk.bf16.mxu1 %vm379_vm1, %v4107_v44  ;;  %v4106_v44 = vld [vmem:[#allocation2 + $0x1c1] sm:$0xff]  ;;  %v2158_v1 = vpack.c.bf16 %v2146_v30, %v2145_v46 }
 0x1a0   : > { %v4118_v11 = vpack.c.bf16 %v4106_v44, %v4105_v63 }
 0x1a4   : > { %5184 = vmatmul.mubr.msk.bf16.vlgmr.msra.gmra.mrb[0].mxu0 %vm379_vm1, %v2148_v31 }
 0x1a5   : > { %5187 = vmatprep.mubr.msk.bf16.mxu0 %vm379_vm1, %v2149_v16 }
 0x1a6   : > { %5418 = vmatmul.mubr.msk.bf16.vlgmr.msra.gmra.mrb[0].mxu1 %vm379_vm1, %v4108_v52 }
 0x1a7   : > { %5421 = vmatprep.mubr.msk.bf16.mxu1 %vm379_vm1, %v4109_v17 }
 0x1ac   : > { %5188 = vmatmul.mubr.msk.bf16.gmra.mrb[4].mxu0 %vm379_vm1, %v2150_v37 }
 0x1ad   : > { %5191 = vmatprep.mubr.msk.bf16.mxu0 %vm379_vm1, %v2151_v48 }
 0x1ae   : > { %5422 = vmatmul.mubr.msk.bf16.gmra.mrb[4].mxu1 %vm379_vm1, %v4110_v38 }
 0x1af   : > { %5425 = vmatprep.mubr.msk.bf16.mxu1 %vm379_vm1, %v4111_v23 }
 0x1b4   : > { %5192 = vmatmul.mubr.msk.bf16.gmra.mrb[8].mxu0 %vm379_vm1, %v2152_v41 }
 0x1b5   : > { %5195 = vmatprep.mubr.msk.bf16.mxu0 %vm379_vm1, %v2153_v35 }
 0x1b6   : > { %5426 = vmatmul.mubr.msk.bf16.gmra.mrb[8].mxu1 %vm379_vm1, %v4112_v36 }
 0x1b7   : > { %5429 = vmatprep.mubr.msk.bf16.mxu1 %vm379_vm1, %v4113_v0 }
 0x1bc   : > { %5196 = vmatmul.mubr.msk.bf16.gmra.mrb[12].mxu0 %vm379_vm1, %v2154_v6 }
 0x1bd   : > { %5199 = vmatprep.mubr.msk.bf16.mxu0 %vm379_vm1, %v2155_v59 }
 0x1be   : > { %5430 = vmatmul.mubr.msk.bf16.gmra.mrb[12].mxu1 %vm379_vm1, %v4114_v40 }
 0x1bf   : > { %5433 = vmatprep.mubr.msk.bf16.mxu1 %vm379_vm1, %v4115_v25 }
 0x1c4   : > { %5200 = vmatmul.mubr.msk.bf16.gmra.mrb[16].mxu0 %vm379_vm1, %v2156_v24 }
 0x1c5   : > { %5203 = vmatprep.mubr.msk.bf16.mxu0 %vm379_vm1, %v2157_v32 }
 0x1c6   : > { %5434 = vmatmul.mubr.msk.bf16.gmra.mrb[16].mxu1 %vm379_vm1, %v4116_v45 }
 0x1c7   : > { %5437 = vmatprep.mubr.msk.bf16.mxu1 %vm379_vm1, %v4117_v9 }
 0x1cc   : > { %5204 = vmatmul.mubr.msk.bf16.gmra.mrb[20].mxu0 %vm379_vm1, %v2158_v1 }
 0x1ce   : > { %5438 = vmatmul.mubr.msk.bf16.gmra.mrb[20].mxu1 %vm379_vm1, %v4118_v11 }
 0x277   : > { %v5185_v58 = vpop.f32.mrb[0].mxu0 }
 0x278   : > { %v2232_v10 = vpop.f32.mrb[1].mxu0 }
 0x279   : > { %v5419_v13 = vpop.f32.mrb[0].mxu1  ;;  %2335 = vst.msk [vmem:[%s7080_s27] sm:$0xff] %vm379_vm1, %v2232_v10  ;;  %v2389_v19 = vmul.f32 %v2232_v10, %v2232_v10  ;;  %v5186_v60 = vpop.f32.mrb[2].mxu0  ;;  %v2351_v22 = vsel %vm379_vm1, %v2232_v10, 0.0 }
 0x27a   : > { %v4189_v51 = vpop.f32.mrb[1].mxu1  ;;  %2337 = vst.msk [vmem:[%s7080_s27 + $0x10] sm:$0xff] %vm379_vm1, %v5186_v60  ;;  %v2235_v47 = vpop.f32.mrb[3].mxu0  ;;  %v2391_v31 = vmul.f32 %v5186_v60, %v5186_v60  ;;  %v2354_v2 = vsel %vm379_vm1, %v5186_v60, 0.0 }
 0x27b   : > { %4719 = vst.msk [vmem:[%s7080_s27 + $0x80] sm:$0xff] %vm379_vm1, %v4189_v51  ;;  %v5420_v7 = vpop.f32.mrb[2].mxu1  ;;  %v4347_v52 = vmul.f32 %v4189_v51, %v4189_v51  ;;  %2336 = vst.msk [vmem:[%s7080_s27 + $0x8] sm:$0xff] %vm379_vm1, %v2235_v47  ;;  %v2352_v16 = vsel %vm379_vm1, %v2235_v47, 0.0  ;;  %v2390_v17 = vmul.f32 %v2235_v47, %v2235_v47  ;;  %v4309_v26 = vsel %vm379_vm1, %v4189_v51, 0.0 }
 0x27c   : > { %4721 = vst.msk [vmem:[%s7080_s27 + $0x90] sm:$0xff] %vm379_vm1, %v5420_v7  ;;  %v4192_v5 = vpop.f32.mrb[3].mxu1  ;;  %v2353_v42 = vadd.f32 %v2352_v16, %v2351_v22  ;;  %v2405_v29 = vsel %vm379_vm1, %v2389_v19, 0.0  ;;  %v4349_v38 = vmul.f32 %v5420_v7, %v5420_v7  ;;  %v2408_v27 = vsel %vm379_vm1, %v2391_v31, 0.0 }
 0x27d   : > { %4720 = vst.msk [vmem:[%s7080_s27 + $0x88] sm:$0xff] %vm379_vm1, %v4192_v5  ;;  %v2406_v12 = vsel %vm379_vm1, %v2390_v17, 0.0  ;;  %v4310_v3 = vsel %vm379_vm1, %v4192_v5, 0.0  ;;  %v4348_v15 = vmul.f32 %v4192_v5, %v4192_v5  ;;  %v4363_v56 = vsel %vm379_vm1, %v4347_v52, 0.0 }
 0x27e   : > { %v2407_v37 = vadd.f32 %v2406_v12, %v2405_v29  ;;  %v4311_v48 = vadd.f32 %v4310_v3, %v4309_v26  ;;  %v2355_v23 = vadd.f32 %v2354_v2, %v2353_v42  ;;  %v4312_v41 = vsel %vm379_vm1, %v5420_v7, 0.0 }
 0x27f   : > { %v4364_v33 = vsel %vm379_vm1, %v4348_v15, 0.0  ;;  %v5189_v39 = vpop.f32.mrb[4].mxu0  ;;  %v4366_v49 = vsel %vm379_vm1, %v4349_v38, 0.0 }
 0x280   : > { %v4365_v20 = vadd.f32 %v4364_v33, %v4363_v56  ;;  %2339 = vst.msk [vmem:[%s7080_s27 + $0x20] sm:$0xff] %vm379_vm1, %v5189_v39  ;;  %v2247_v4 = vpop.f32.mrb[5].mxu0  ;;  %v2409_v62 = vadd.f32 %v2408_v27, %v2407_v37  ;;  %v2393_v36 = vmul.f32 %v5189_v39, %v5189_v39  ;;  %v2358_v50 = vsel %vm379_vm1, %v5189_v39, 0.0 }
 0x281   : > { %v5423_v14 = vpop.f32.mrb[4].mxu1  ;;  %2338 = vst.msk [vmem:[%s7080_s27 + $0x18] sm:$0xff] %vm379_vm1, %v2247_v4  ;;  %v2356_v35 = vsel %vm379_vm1, %v2247_v4, 0.0  ;;  %v2392_v0 = vmul.f32 %v2247_v4, %v2247_v4  ;;  %v5190_v61 = vpop.f32.mrb[6].mxu0  ;;  %v4313_v59 = vadd.f32 %v4312_v41, %v4311_v48 }
 0x282   : > { %4723 = vst.msk [vmem:[%s7080_s27 + $0xa0] sm:$0xff] %vm379_vm1, %v5423_v14  ;;  %v4204_v8 = vpop.f32.mrb[5].mxu1  ;;  %v2357_v53 = vadd.f32 %v2356_v35, %v2355_v23  ;;  %v4316_v54 = vsel %vm379_vm1, %v5423_v14, 0.0  ;;  %2340 = vst.msk [vmem:[%s7080_s27 + $0x28] sm:$0xff] %vm379_vm1, %v5190_v61  ;;  %v2250_v55 = vpop.f32.mrb[7].mxu0  ;;  %v2394_v40 = vmul.f32 %v5190_v61, %v5190_v61  ;;  %v4351_v34 = vmul.f32 %v5423_v14, %v5423_v14 }
 0x283   : > { %4722 = vst.msk [vmem:[%s7080_s27 + $0x98] sm:$0xff] %vm379_vm1, %v4204_v8  ;;  %v5424_v57 = vpop.f32.mrb[6].mxu1  ;;  %v2410_v6 = vsel %vm379_vm1, %v2392_v0, 0.0  ;;  %v4314_v25 = vsel %vm379_vm1, %v4204_v8, 0.0  ;;  %v4350_v21 = vmul.f32 %v4204_v8, %v4204_v8  ;;  %v2412_v24 = vsel %vm379_vm1, %v2393_v36, 0.0 }
 0x284   : > { %4724 = vst.msk [vmem:[%s7080_s27 + $0xa8] sm:$0xff] %vm379_vm1, %v5424_v57  ;;  %v4207_v43 = vpop.f32.mrb[7].mxu1  ;;  %v2411_v28 = vadd.f32 %v2410_v6, %v2409_v62  ;;  %v2359_v18 = vadd.f32 %v2358_v50, %v2357_v53  ;;  %v2360_v45 = vsel %vm379_vm1, %v5190_v61, 0.0  ;;  %v4315_v32 = vadd.f32 %v4314_v25, %v4313_v59 }
 0x285   : > { %v4367_v9 = vadd.f32 %v4366_v49, %v4365_v20  ;;  %v4368_v63 = vsel %vm379_vm1, %v4350_v21, 0.0  ;;  %v4352_v44 = vmul.f32 %v5424_v57, %v5424_v57  ;;  %v2414_v1 = vsel %vm379_vm1, %v2394_v40, 0.0 }
 0x286   : > { %v2361_v46 = vadd.f32 %v2360_v45, %v2359_v18  ;;  %v2413_v30 = vadd.f32 %v2412_v24, %v2411_v28  ;;  %v4317_v58 = vadd.f32 %v4316_v54, %v4315_v32  ;;  %v4370_v13 = vsel %vm379_vm1, %v4351_v34, 0.0 }
 0x287   : > { %v4369_v11 = vadd.f32 %v4368_v63, %v4367_v9  ;;  %v5193_v10 = vpop.f32.mrb[8].mxu0  ;;  %v4318_v60 = vsel %vm379_vm1, %v5424_v57, 0.0  ;;  %v4372_v16 = vsel %vm379_vm1, %v4352_v44, 0.0 }
 0x288   : > { %v2415_v19 = vadd.f32 %v2414_v1, %v2413_v30  ;;  %2342 = vst.msk [vmem:[%s7080_s27 + $0x38] sm:$0xff] %vm379_vm1, %v5193_v10  ;;  %v2262_v51 = vpop.f32.mrb[9].mxu0  ;;  %v4319_v47 = vadd.f32 %v4318_v60, %v4317_v58  ;;  %v2396_v26 = vmul.f32 %v5193_v10, %v5193_v10  ;;  %v2364_v48 = vsel %vm379_vm1, %v5193_v10, 0.0 }
 0x289   : > { %v5427_v22 = vpop.f32.mrb[8].mxu1  ;;  %v4371_v7 = vadd.f32 %v4370_v13, %v4369_v11  ;;  %v5194_v31 = vpop.f32.mrb[10].mxu0 }
 0x28a   : > { %4726 = vst.msk [vmem:[%s7080_s27 + $0xb8] sm:$0xff] %vm379_vm1, %v5427_v22  ;;  %v4219_v52 = vpop.f32.mrb[9].mxu1  ;;  %v2264_v17 = vpop.f32.mrb[11].mxu0  ;;  %v4354_v3 = vmul.f32 %v5427_v22, %v5427_v22  ;;  %v4322_v56 = vsel %vm379_vm1, %v5427_v22, 0.0  ;;  %v2418_v4 = vsel %vm379_vm1, %v2396_v26, 0.0 }
 0x28b   : > { %v5428_v5 = vpop.f32.mrb[10].mxu1  ;;  %v4373_v2 = vadd.f32 %v4372_v16, %v4371_v7  ;;  %2341 = vst.msk [vmem:[%s7080_s27 + $0x30] sm:$0xff] %vm379_vm1, %v2264_v17  ;;  %v2362_v42 = vsel %vm379_vm1, %v2264_v17, 0.0  ;;  %v2395_v29 = vmul.f32 %v2264_v17, %v2264_v17 }
 0x28c   : > { %v4221_v12 = vpop.f32.mrb[11].mxu1  ;;  %v2363_v15 = vadd.f32 %v2362_v42, %v2361_v46  ;;  %v4376_v36 = vsel %vm379_vm1, %v4354_v3, 0.0 }
 0x28d   : > { %4725 = vst.msk [vmem:[%s7080_s27 + $0xb0] sm:$0xff] %vm379_vm1, %v4221_v12  ;;  %v4320_v37 = vsel %vm379_vm1, %v4221_v12, 0.0  ;;  %v4353_v38 = vmul.f32 %v4221_v12, %v4221_v12  ;;  %v2416_v23 = vsel %vm379_vm1, %v2395_v29, 0.0 }
 0x28e   : > { %v4321_v27 = vadd.f32 %v4320_v37, %v4319_v47  ;;  %v2417_v33 = vadd.f32 %v2416_v23, %v2415_v19  ;;  %v2365_v20 = vadd.f32 %v2364_v48, %v2363_v15 }
 0x28f   : > { %v4374_v39 = vsel %vm379_vm1, %v4353_v38, 0.0  ;;  %v5197_v14 = vpop.f32.mrb[12].mxu0 }
 0x290   : > { %v4375_v62 = vadd.f32 %v4374_v39, %v4373_v2  ;;  %v4323_v41 = vadd.f32 %v4322_v56, %v4321_v27  ;;  %v2276_v35 = vpop.f32.mrb[13].mxu0  ;;  %v2419_v0 = vadd.f32 %v2418_v4, %v2417_v33 }
 0x291   : > { %v5431_v61 = vpop.f32.mrb[12].mxu1  ;;  %2343 = vst.msk [vmem:[%s7080_s27 + $0x40] sm:$0xff] %vm379_vm1, %v2276_v35  ;;  %v2366_v8 = vsel %vm379_vm1, %v2276_v35, 0.0  ;;  %v2397_v49 = vmul.f32 %v2276_v35, %v2276_v35  ;;  %v5198_v50 = vpop.f32.mrb[14].mxu0 }
 0x292   : > { %v4233_v53 = vpop.f32.mrb[13].mxu1  ;;  %v4377_v54 = vadd.f32 %v4376_v36, %v4375_v62  ;;  %v2367_v55 = vadd.f32 %v2366_v8, %v2365_v20  ;;  %2345 = vst.msk [vmem:[%s7080_s27 + $0x50] sm:$0xff] %vm379_vm1, %v5198_v50  ;;  %v2279_v6 = vpop.f32.mrb[15].mxu0  ;;  %v2399_v21 = vmul.f32 %v5198_v50, %v5198_v50  ;;  %v2370_v32 = vsel %vm379_vm1, %v5198_v50, 0.0 }
 0x293   : > { %4727 = vst.msk [vmem:[%s7080_s27 + $0xc0] sm:$0xff] %vm379_vm1, %v4233_v53  ;;  %v4324_v57 = vsel %vm379_vm1, %v4233_v53, 0.0  ;;  %v5432_v40 = vpop.f32.mrb[14].mxu1  ;;  %v2420_v59 = vsel %vm379_vm1, %v2397_v49, 0.0  ;;  %v4355_v43 = vmul.f32 %v4233_v53, %v4233_v53  ;;  %2344 = vst.msk [vmem:[%s7080_s27 + $0x48] sm:$0xff] %vm379_vm1, %v2279_v6  ;;  %v2368_v28 = vsel %vm379_vm1, %v2279_v6, 0.0 }
 0x294   : > { %v4325_v25 = vadd.f32 %v4324_v57, %v4323_v41  ;;  %4729 = vst.msk [vmem:[%s7080_s27 + $0xd0] sm:$0xff] %vm379_vm1, %v5432_v40  ;;  %v4236_v34 = vpop.f32.mrb[15].mxu1  ;;  %v2421_v18 = vadd.f32 %v2420_v59, %v2419_v0  ;;  %v2369_v24 = vadd.f32 %v2368_v28, %v2367_v55  ;;  %v2398_v45 = vmul.f32 %v2279_v6, %v2279_v6 }
 0x295   : > { %4728 = vst.msk [vmem:[%s7080_s27 + $0xc8] sm:$0xff] %vm379_vm1, %v4236_v34  ;;  %v4378_v9 = vsel %vm379_vm1, %v4355_v43, 0.0  ;;  %v4357_v46 = vmul.f32 %v5432_v40, %v5432_v40  ;;  %v4326_v30 = vsel %vm379_vm1, %v4236_v34, 0.0  ;;  %v4356_v11 = vmul.f32 %v4236_v34, %v4236_v34 }
 0x296   : > { %v4379_v63 = vadd.f32 %v4378_v9, %v4377_v54  ;;  %v2422_v44 = vsel %vm379_vm1, %v2398_v45, 0.0  ;;  %v4327_v1 = vadd.f32 %v4326_v30, %v4325_v25  ;;  %v4328_v10 = vsel %vm379_vm1, %v5432_v40, 0.0 }
 0x297   : > { %v2423_v58 = vadd.f32 %v2422_v44, %v2421_v18  ;;  %v5201_v13 = vpop.f32.mrb[16].mxu0  ;;  %v2371_v19 = vadd.f32 %v2370_v32, %v2369_v24  ;;  %v2424_v60 = vsel %vm379_vm1, %v2399_v21, 0.0  ;;  %v4380_v51 = vsel %vm379_vm1, %v4356_v11, 0.0 }
 0x298   : > { %2347 = vst.msk [vmem:[%s7080_s27 + $0x60] sm:$0xff] %vm379_vm1, %v5201_v13  ;;  %v2401_v22 = vmul.f32 %v5201_v13, %v5201_v13  ;;  %v2291_v47 = vpop.f32.mrb[17].mxu0  ;;  %v4329_v31 = vadd.f32 %v4328_v10, %v4327_v1  ;;  %v4381_v52 = vadd.f32 %v4380_v51, %v4379_v63  ;;  %v4382_v42 = vsel %vm379_vm1, %v4357_v46, 0.0 }
 0x299   : > { %v5435_v7 = vpop.f32.mrb[16].mxu1  ;;  %2346 = vst.msk [vmem:[%s7080_s27 + $0x58] sm:$0xff] %vm379_vm1, %v2291_v47  ;;  %v2372_v16 = vsel %vm379_vm1, %v2291_v47, 0.0  ;;  %v2400_v17 = vmul.f32 %v2291_v47, %v2291_v47  ;;  %v2425_v5 = vadd.f32 %v2424_v60, %v2423_v58  ;;  %v5202_v2 = vpop.f32.mrb[18].mxu0  ;;  %v2374_v29 = vsel %vm379_vm1, %v5201_v13, 0.0 }
 0x29a   : > { %4731 = vst.msk [vmem:[%s7080_s27 + $0xe0] sm:$0xff] %vm379_vm1, %v5435_v7  ;;  %v4248_v26 = vpop.f32.mrb[17].mxu1  ;;  %v2373_v12 = vadd.f32 %v2372_v16, %v2371_v19  ;;  %2348 = vst.msk [vmem:[%s7080_s27 + $0x68] sm:$0xff] %vm379_vm1, %v5202_v2  ;;  %v2294_v3 = vpop.f32.mrb[19].mxu0  ;;  %v2428_v37 = vsel %vm379_vm1, %v2401_v22, 0.0  ;;  %v2402_v48 = vmul.f32 %v5202_v2, %v5202_v2  ;;  %v4332_v33 = vsel %vm379_vm1, %v5435_v7, 0.0 }
 0x29b   : > { %4730 = vst.msk [vmem:[%s7080_s27 + $0xd8] sm:$0xff] %vm379_vm1, %v4248_v26  ;;  %v5436_v15 = vpop.f32.mrb[18].mxu1  ;;  %v2426_v38 = vsel %vm379_vm1, %v2400_v17, 0.0  ;;  %v4330_v23 = vsel %vm379_vm1, %v4248_v26, 0.0  ;;  %v4359_v4 = vmul.f32 %v5435_v7, %v5435_v7  ;;  %v2376_v62 = vsel %vm379_vm1, %v5202_v2, 0.0 }
 0x29c   : > { %4732 = vst.msk [vmem:[%s7080_s27 + $0xe8] sm:$0xff] %vm379_vm1, %v5436_v15  ;;  %v4251_v27 = vpop.f32.mrb[19].mxu1  ;;  %v2427_v56 = vadd.f32 %v2426_v38, %v2425_v5  ;;  %v2375_v39 = vadd.f32 %v2374_v29, %v2373_v12  ;;  %v4331_v20 = vadd.f32 %v4330_v23, %v4329_v31  ;;  %v4358_v14 = vmul.f32 %v4248_v26, %v4248_v26 }
 0x29d   : > { %v4383_v41 = vadd.f32 %v4382_v42, %v4381_v52  ;;  %v4360_v61 = vmul.f32 %v5436_v15, %v5436_v15  ;;  %v2430_v8 = vsel %vm379_vm1, %v2402_v48, 0.0  ;;  %v4334_v50 = vsel %vm379_vm1, %v5436_v15, 0.0 }
 0x29e   : > { %v2377_v36 = vadd.f32 %v2376_v62, %v2375_v39  ;;  %v2429_v35 = vadd.f32 %v2428_v37, %v2427_v56  ;;  %v4333_v0 = vadd.f32 %v4332_v33, %v4331_v20  ;;  %v4384_v49 = vsel %vm379_vm1, %v4358_v14, 0.0 }
 0x29f   : > { %v5205_v53 = vpop.f32.mrb[20].mxu0  ;;  %v4385_v55 = vadd.f32 %v4384_v49, %v4383_v41  ;;  %v4386_v59 = vsel %vm379_vm1, %v4359_v4, 0.0  ;;  %v4388_v34 = vsel %vm379_vm1, %v4360_v61, 0.0 }
 0x2a0   : > { %v2431_v54 = vadd.f32 %v2430_v8, %v2429_v35  ;;  %v4335_v57 = vadd.f32 %v4334_v50, %v4333_v0  ;;  %2350 = vst.msk [vmem:[%s7080_s27 + $0x78] sm:$0xff] %vm379_vm1, %v5205_v53  ;;  %v2306_v6 = vpop.f32.mrb[21].mxu0  ;;  %v2404_v24 = vmul.f32 %v5205_v53, %v5205_v53  ;;  %v2380_v11 = vsel %vm379_vm1, %v5205_v53, 0.0 }
 0x2a1   : > { %v5439_v40 = vpop.f32.mrb[20].mxu1  ;;  %v5206_v25 = vpop.f32.mrb[22].mxu0  ;;  %v4387_v28 = vadd.f32 %v4386_v59, %v4385_v55 }
 0x2a2   : > { %4734 = vst.msk [vmem:[%s7080_s27 + $0xf8] sm:$0xff] %vm379_vm1, %v5439_v40  ;;  %v4263_v43 = vpop.f32.mrb[21].mxu1  ;;  %v2308_v18 = vpop.f32.mrb[23].mxu0  ;;  %v4362_v45 = vmul.f32 %v5439_v40, %v5439_v40  ;;  %v4338_v13 = vsel %vm379_vm1, %v5439_v40, 0.0  ;;  %v2434_v22 = vsel %vm379_vm1, %v2404_v24, 0.0 }
 0x2a3   : > { %v5440_v21 = vpop.f32.mrb[22].mxu1  ;;  %2349 = vst.msk [vmem:[%s7080_s27 + $0x70] sm:$0xff] %vm379_vm1, %v2308_v18  ;;  %v2378_v32 = vsel %vm379_vm1, %v2308_v18, 0.0  ;;  %v2403_v9 = vmul.f32 %v2308_v18, %v2308_v18  ;;  %v4389_v30 = vadd.f32 %v4388_v34, %v4387_v28 }
 0x2a4   : > { %v4265_v46 = vpop.f32.mrb[23].mxu1  ;;  %v2379_v63 = vadd.f32 %v2378_v32, %v2377_v36  ;;  %v4392_v31 = vsel %vm379_vm1, %v4362_v45, 0.0 }
 0x2a5   : > { %4733 = vst.msk [vmem:[%s7080_s27 + $0xf0] sm:$0xff] %vm379_vm1, %v4265_v46  ;;  %v4336_v44 = vsel %vm379_vm1, %v4265_v46, 0.0  ;;  %v4361_v1 = vmul.f32 %v4265_v46, %v4265_v46  ;;  %v2432_v58 = vsel %vm379_vm1, %v2403_v9, 0.0 }
 0x2a6   : > { %v4337_v10 = vadd.f32 %v4336_v44, %v4335_v57  ;;  %v2381_v19 = vadd.f32 %v2380_v11, %v2379_v63  ;;  %v2433_v60 = vadd.f32 %v2432_v58, %v2431_v54 }
 0x2a7   : > { %v4390_v51 = vsel %vm379_vm1, %v4361_v1, 0.0 }
 0x2a8   : > { %v4339_v47 = vadd.f32 %v4338_v13, %v4337_v10  ;;  %v4391_v7 = vadd.f32 %v4390_v51, %v4389_v30  ;;  %v2382_v52 = vrot.slane %v2381_v19, 4  ;;  %v2435_v16 = vadd.f32 %v2434_v22, %v2433_v60 }
 0x2aa   : > { %v4340_v17 = vrot.slane %v4339_v47, 4  ;;  %v4393_v5 = vadd.f32 %v4392_v31, %v4391_v7  ;;  %v2383_v2 = vadd.f32 %v2382_v52, %v2381_v19  ;;  %v2436_v26 = vrot.slane %v2435_v16, 4 }
 0x2ac   : > { %v4341_v42 = vadd.f32 %v4340_v17, %v4339_v47  ;;  %v4394_v29 = vrot.slane %v4393_v5, 4  ;;  %v2384_v12 = vrot.slane %v2383_v2, 2  ;;  %v2437_v3 = vadd.f32 %v2436_v26, %v2435_v16 }
 0x2ae   : > { %v4342_v15 = vrot.slane %v4341_v42, 2  ;;  %v4395_v37 = vadd.f32 %v4394_v29, %v4393_v5  ;;  %v2385_v38 = vadd.f32 %v2384_v12, %v2383_v2  ;;  %v2438_v48 = vrot.slane %v2437_v3, 2 }
 0x2b0   : > { %v4343_v23 = vadd.f32 %v4342_v15, %v4341_v42  ;;  %v4396_v27 = vrot.slane %v4395_v37, 2  ;;  %v2386_v56 = vrot.slane %v2385_v38, 1  ;;  %v2439_v33 = vadd.f32 %v2438_v48, %v2437_v3 }
 0x2b2   : > { %v4344_v39 = vrot.slane %v4343_v23, 1  ;;  %v4397_v20 = vadd.f32 %v4396_v27, %v4395_v37  ;;  %v2387_v4 = vadd.f32 %v2386_v56, %v2385_v38  ;;  %v2440_v62 = vrot.slane %v2439_v33, 1 }
 0x2b4   : > { %v4345_v14 = vadd.f32 %v4344_v39, %v4343_v23  ;;  %v4398_v41 = vrot.slane %v4397_v20, 1  ;;  %v2441_v36 = vadd.f32 %v2440_v62, %v2439_v33 }
 0x2b6   : > { %v4346_v35 = vadd.f32 %v4345_v14, %v2387_v4  ;;  %v4399_v0 = vadd.f32 %v4398_v41, %v4397_v20 }
 0x2b8   : > { %v4400_v61 = vadd.f32 %v4399_v0, %v2441_v36 }
 0x2ba   : > { %v4402_v8 = vsel %vm4401_vm2, %v4346_v35, %v4400_v61 }
 0x2bb   : > { %4404 = vst.msk [vmem:[%s235_s30] sm:$0x3] %vm4403_vm3, %v4402_v8 }
 0x2bc PF: > { %s16_s18 = sadd.s32 1, %s5858_s18  }
 0x2bd   : > { %p13_p4 = scmp.ge.s32.totalorder %s16_s18, 4  }
 0x2bf   :  { %15 = sbr.rel (!%p13_p4) target bundleno = 1 (0x1), region = 79 }

</bundles_post_ra>
